<compile_context>
chip_gen: v7x
topology: tpu7x:2x2x1
jax: 0.10.0
libtpu: 0.0.40
codegen_flags: <defaults>
</compile_context>

<pallas_src>
from functools import partial, reduce

import jax
import jax.numpy as jnp
from jax import lax
from jax.experimental import pallas as pl
from jax.experimental.pallas import tpu as pltpu


def _layer_norm(x, g, b, eps=1e-5):
    mu = jnp.mean(x, axis=-1, keepdims=True)
    var = jnp.mean(jnp.square(x - mu), axis=-1, keepdims=True)
    return (x - mu) * lax.rsqrt(var + eps) * g + b


def artspeech_kernel(
    x_ref, mask_ref,
    w0_ih, b0_gi, w0f_hh, w0b_hh, b0f_hn, b0b_hn,
    w1_ih, b1_gi, w1f_hh, w1b_hh, b1f_hn, b1b_hn,
    lin_w, lin_b,
    ln1_g, ln1_b, p1_w, p1_b,
    ln2_g, ln2_b, p2_w, p2_b,
    ln3_g, ln3_b, p3_w, p3_b,
    out_ref,
    gi0, gi1, o1, o2,
    *, T, Bp,
):
    H = w0f_hh.shape[0]

    def gru_layer(gi_ref, whh_f, whh_b, bhn_f, bhn_b, out_scr):
        """Fwd + bwd directions of one GRU layer in a single fused time loop.

        gi_ref holds the precomputed input projections: columns [0:3H] are the
        forward-direction gates (time-major), columns [3H:6H] the backward ones.
        PyTorch gate order (r, z, n); b_ih and b_hr/b_hz are already folded in.
        """
        def cell(gi, gh, bhn, h):
            r = jax.nn.sigmoid(gi[:, 0:H] + gh[:, 0:H])
            z = jax.nn.sigmoid(gi[:, H:2 * H] + gh[:, H:2 * H])
            n = jnp.tanh(gi[:, 2 * H:3 * H] + r * (gh[:, 2 * H:3 * H] + bhn))
            return n + z * (h - n)                      # == (1-z)*n + z*h

        def body(i, carry):
            h_f, h_b = carry
            rf = pl.multiple_of(i * Bp, Bp)             # fwd reads time i
            rb = pl.multiple_of((T - 1 - i) * Bp, Bp)   # bwd reads time T-1-i
            gi_f = gi_ref[pl.ds(rf, Bp), 0:3 * H]
            gi_b = gi_ref[pl.ds(rb, Bp), 3 * H:6 * H]
            m_f = mask_ref[pl.ds(rf, Bp), :] > 0.5
            m_b = mask_ref[pl.ds(rb, Bp), :] > 0.5
            # Two small independent recurrent matmuls -> pipeline on the MXU.
            gh_f = jnp.dot(h_f, whh_f, preferred_element_type=jnp.float32)
            gh_b = jnp.dot(h_b, whh_b, preferred_element_type=jnp.float32)
            hf_new = cell(gi_f, gh_f, bhn_f, h_f)
            hb_new = cell(gi_b, gh_b, bhn_b, h_b)
            # pad_packed_sequence semantics: zero outputs / frozen state on pads.
            out_scr[pl.ds(rf, Bp), 0:H] = jnp.where(m_f, hf_new, 0.0)
            out_scr[pl.ds(rb, Bp), H:2 * H] = jnp.where(m_b, hb_new, 0.0)
            return (jnp.where(m_f, hf_new, h_f), jnp.where(m_b, hb_new, h_b))

        h0 = jnp.zeros((Bp, H), jnp.float32)
        lax.fori_loop(0, T, body, (h0, h0))

    # ---- GRU layer 0: one batched input projection for both directions ----
    gi0[...] = jnp.dot(x_ref[...], w0_ih[...],
                       preferred_element_type=jnp.float32) + b0_gi[...]
    gru_layer(gi0, w0f_hh[...], w0b_hh[...], b0f_hn[...], b0b_hn[...], o1)

    # ---- GRU layer 1: input is the merged (fwd|bwd) layer-0 output buffer ----
    gi1[...] = jnp.dot(o1[...], w1_ih[...],
                       preferred_element_type=jnp.float32) + b1_gi[...]
    gru_layer(gi1, w1f_hh[...], w1b_hh[...], b1f_hn[...], b1b_hn[...], o2)

    # ---- MLP head on the full (T*Bp, 2H) slab, single dense output store ----
    # TODO(synk): for very long sequences tile this head over row chunks.
    y = jnp.maximum(jnp.dot(o2[...], lin_w[...],
                            preferred_element_type=jnp.float32) + lin_b[...], 0.0)
    y = _layer_norm(y, ln1_g[...], ln1_b[...])
    y = jnp.maximum(jnp.dot(y, p1_w[...],
                            preferred_element_type=jnp.float32) + p1_b[...], 0.0)
    y = _layer_norm(y, ln2_g[...], ln2_b[...])
    y = jnp.maximum(jnp.dot(y, p2_w[...],
                            preferred_element_type=jnp.float32) + p2_b[...], 0.0)
    y = _layer_norm(y, ln3_g[...], ln3_b[...])
    out_ref[...] = jnp.tanh(jnp.dot(y, p3_w[...],
                                    preferred_element_type=jnp.float32) + p3_b[...])


def _pack_gru_weights(params, layer):
    """Concat fwd|bwd input-projection weights; fold b_ih and the r/z halves of
    b_hh into one precomputable bias (the n-gate b_hn must stay in the loop)."""
    H = params[f"w{layer}f_hh"].shape[0]
    out = {}
    out["w_ih"] = jnp.concatenate(
        [params[f"w{layer}f_ih"], params[f"w{layer}b_ih"]], axis=1)       # (in, 6H)
    gi_bias = []
    for d in ("f", "b"):
        b_ih = params[f"b{layer}{d}_ih"]
        b_hh = params[f"b{layer}{d}_hh"]
        gi_bias.append(b_ih + jnp.concatenate(
            [b_hh[:, :2 * H], jnp.zeros((1, H), jnp.float32)], axis=1))
        out[f"b{d}_hn"] = b_hh[:, 2 * H:3 * H]                            # (1, H)
    out["b_gi"] = jnp.concatenate(gi_bias, axis=1)                        # (1, 6H)
    out["wf_hh"] = params[f"w{layer}f_hh"]
    out["wb_hh"] = params[f"w{layer}b_hh"]
    return out


def artspeech_forward(x_tokens, lengths, params):
    """x_tokens: (B, T) int32 token ids.  lengths: (B,) int32, decreasing,
    with lengths[0] == T (pad_packed_sequence output length)."""
    B, T = x_tokens.shape
    emb_table = params["embedding"]
    E = emb_table.shape[1]
    H = params["w0f_hh"].shape[0]
    HF = params["p1_w"].shape[1]
    L = params["p3_w"].shape[1]
    Bp = ((B + 7) // 8) * 8          # pad batch to full 8-sublane vregs
    TB = T * Bp

    # Glue: embedding gather, time-major layout, sublane padding, validity mask.
    embed = jnp.take(emb_table, x_tokens, axis=0)                      # (B, T, E)
    embed_t = jnp.transpose(embed, (1, 0, 2)).astype(jnp.float32)      # (T, B, E)
    embed_t = jnp.pad(embed_t, ((0, 0), (0, Bp - B), (0, 0)))          # (T, Bp, E)
    x_flat = embed_t.reshape(TB, E)

    len_p = jnp.pad(lengths, (0, Bp - B))                              # pads -> 0
    mask = (jnp.arange(T)[:, None] < len_p[None, :]).astype(jnp.float32)
    mask_flat = mask.reshape(TB, 1)

    g0 = _pack_gru_weights(params, 0)
    g1 = _pack_gru_weights(params, 1)
    weights = [
        g0["w_ih"], g0["b_gi"], g0["wf_hh"], g0["wb_hh"], g0["bf_hn"], g0["bb_hn"],
        g1["w_ih"], g1["b_gi"], g1["wf_hh"], g1["wb_hh"], g1["bf_hn"], g1["bb_hn"],
        params["lin_w"], params["lin_b"],
        params["ln1_g"], params["ln1_b"], params["p1_w"], params["p1_b"],
        params["ln2_g"], params["ln2_b"], params["p2_w"], params["p2_b"],
        params["ln3_g"], params["ln3_b"], params["p3_w"], params["p3_b"],
    ]
    n_in = 2 + len(weights)

    # VMEM budget from the actual footprint (v7x-safe), with 2x headroom.
    act_words = TB * (E + 2 * 6 * H + 2 * 2 * H + H + HF + HF // 2 + 128)
    est_bytes = 4 * (act_words + sum(int(w.size) for w in weights))
    vmem_limit = int(min(96 * 2 ** 20, max(8 * 2 ** 20, 2 * est_bytes)))

    out = pl.pallas_call(
        partial(artspeech_kernel, T=T, Bp=Bp),
        out_shape=jax.ShapeDtypeStruct((TB, L), jnp.float32),
        in_specs=[pl.BlockSpec(memory_space=pltpu.MemorySpace.VMEM)] * n_in,
        out_specs=pl.BlockSpec(memory_space=pltpu.MemorySpace.VMEM),
        scratch_shapes=[
            pltpu.VMEM((TB, 6 * H), jnp.float32),   # layer-0 input projections (fwd|bwd)
            pltpu.VMEM((TB, 6 * H), jnp.float32),   # layer-1 input projections (fwd|bwd)
            pltpu.VMEM((TB, 2 * H), jnp.float32),   # layer-0 outputs (fwd|bwd lanes)
            pltpu.VMEM((TB, 2 * H), jnp.float32),   # layer-1 outputs (fwd|bwd lanes)
        ],
        compiler_params=pltpu.CompilerParams(vmem_limit_bytes=vmem_limit),
    )(x_flat, mask_flat, *weights)

    out = out.reshape(T, Bp, L)[:, :B, :]                               # drop pad rows
    return jnp.transpose(out, (1, 0, 2))                                # (B, T, L)


def init_params(key, vocab_size, embed_dim, hidden_size, hidden_features, latent_size):
    keys = iter(jax.random.split(key, 64))

    def w(shape, scale=0.1):
        return scale * jax.random.normal(next(keys), shape, dtype=jnp.float32)

    H = hidden_size
    HF = hidden_features
    p = {"embedding": w((vocab_size, embed_dim))}
    # GRU weights stored pre-transposed so the kernel does x @ W (gate order r,z,n).
    for layer, in_dim in ((0, embed_dim), (1, 2 * H)):
        for d in ("f", "b"):
            p[f"w{layer}{d}_ih"] = w((in_dim, 3 * H))
            p[f"w{layer}{d}_hh"] = w((H, 3 * H))
            p[f"b{layer}{d}_ih"] = w((1, 3 * H))
            p[f"b{layer}{d}_hh"] = w((1, 3 * H))
    p["lin_w"] = w((2 * H, H))
    p["lin_b"] = w((1, H))
    p["ln1_g"] = jnp.ones((1, H), jnp.float32)
    p["ln1_b"] = jnp.zeros((1, H), jnp.float32)
    p["p1_w"] = w((H, HF))
    p["p1_b"] = w((1, HF))
    p["ln2_g"] = jnp.ones((1, HF), jnp.float32)
    p["ln2_b"] = jnp.zeros((1, HF), jnp.float32)
    p["p2_w"] = w((HF, HF // 2))
    p["p2_b"] = w((1, HF // 2))
    p["ln3_g"] = jnp.ones((1, HF // 2), jnp.float32)
    p["ln3_b"] = jnp.zeros((1, HF // 2), jnp.float32)
    p["p3_w"] = w((HF // 2, latent_size))
    p["p3_b"] = w((1, latent_size))
    return p


if __name__ == "__main__":
    vocab_size = 32
    embed_dim = 64
    hidden_size = 128
    hidden_features = 256
    indices_dict = {"tongue": [0, 1, 2], "lips": [3, 4, 5]}
    latent_size = 1 + max(set(reduce(lambda l1, l2: l1 + l2, indices_dict.values())))  # 6

    B, T = 2, 8
    key = jax.random.PRNGKey(0)
    k_tok, k_par = jax.random.split(key)
    x = jax.random.randint(k_tok, (B, T), 0, vocab_size, dtype=jnp.int32)
    lengths = jnp.array([T, 5], dtype=jnp.int32)  # sorted decreasing, max == T

    params = init_params(k_par, vocab_size, embed_dim, hidden_size,
                         hidden_features, latent_size)

    out = artspeech_forward(x, lengths, params)
    out = jax.block_until_ready(out)

    assert out.shape == (B, T, latent_size), out.shape
    assert bool(jnp.all(jnp.isfinite(out)))
    print("KERNEL_OK")
</pallas_src>

<mosaic_0001>
module attributes {stable_mosaic.version = 11 : i64} {
  func.func @artspeech_kernel(%arg0: memref<64x64xf32, #tpu.memory_space<vmem>>, %arg1: memref<64x1xf32, #tpu.memory_space<vmem>>, %arg2: memref<64x768xf32, #tpu.memory_space<vmem>>, %arg3: memref<1x768xf32, #tpu.memory_space<vmem>>, %arg4: memref<128x384xf32, #tpu.memory_space<vmem>>, %arg5: memref<128x384xf32, #tpu.memory_space<vmem>>, %arg6: memref<1x128xf32, #tpu.memory_space<vmem>>, %arg7: memref<1x128xf32, #tpu.memory_space<vmem>>, %arg8: memref<256x768xf32, #tpu.memory_space<vmem>>, %arg9: memref<1x768xf32, #tpu.memory_space<vmem>>, %arg10: memref<128x384xf32, #tpu.memory_space<vmem>>, %arg11: memref<128x384xf32, #tpu.memory_space<vmem>>, %arg12: memref<1x128xf32, #tpu.memory_space<vmem>>, %arg13: memref<1x128xf32, #tpu.memory_space<vmem>>, %arg14: memref<256x128xf32, #tpu.memory_space<vmem>>, %arg15: memref<1x128xf32, #tpu.memory_space<vmem>>, %arg16: memref<1x128xf32, #tpu.memory_space<vmem>>, %arg17: memref<1x128xf32, #tpu.memory_space<vmem>>, %arg18: memref<128x256xf32, #tpu.memory_space<vmem>>, %arg19: memref<1x256xf32, #tpu.memory_space<vmem>>, %arg20: memref<1x256xf32, #tpu.memory_space<vmem>>, %arg21: memref<1x256xf32, #tpu.memory_space<vmem>>, %arg22: memref<256x128xf32, #tpu.memory_space<vmem>>, %arg23: memref<1x128xf32, #tpu.memory_space<vmem>>, %arg24: memref<1x128xf32, #tpu.memory_space<vmem>>, %arg25: memref<1x128xf32, #tpu.memory_space<vmem>>, %arg26: memref<128x6xf32, #tpu.memory_space<vmem>>, %arg27: memref<1x6xf32, #tpu.memory_space<vmem>>, %arg28: memref<64x6xf32, #tpu.memory_space<vmem>>, %arg29: memref<64x768xf32, #tpu.memory_space<vmem>>, %arg30: memref<64x768xf32, #tpu.memory_space<vmem>>, %arg31: memref<64x256xf32, #tpu.memory_space<vmem>>, %arg32: memref<64x256xf32, #tpu.memory_space<vmem>>) attributes {dimension_semantics = [], scalar_prefetch = 0 : i64, scratch_operands = 4 : i64, tpu.core_type = #tpu.core_type<tc>} {
    %c0 = arith.constant 0 : index
    %c0_0 = arith.constant 0 : index
    %0 = vector.load %arg0[%c0, %c0_0] : memref<64x64xf32, #tpu.memory_space<vmem>>, vector<64x64xf32>
    %c0_1 = arith.constant 0 : index
    %c0_2 = arith.constant 0 : index
    %1 = vector.load %arg2[%c0_1, %c0_2] : memref<64x768xf32, #tpu.memory_space<vmem>>, vector<64x768xf32>
    %cst = arith.constant dense<0.000000e+00> : vector<64x768xf32>
    %2 = tpu.matmul %0, %1, %cst {dimension_numbers = #tpu.dot_dimension_numbers<[1], [0], [0], [1], [0, 0, 1, 1], [], []>} : vector<64x64xf32>, vector<64x768xf32>, vector<64x768xf32> -> vector<64x768xf32>
    %c0_3 = arith.constant 0 : index
    %c0_4 = arith.constant 0 : index
    %3 = vector.load %arg3[%c0_3, %c0_4] : memref<1x768xf32, #tpu.memory_space<vmem>>, vector<1x768xf32>
    %4 = vector.broadcast %3 : vector<1x768xf32> to vector<64x768xf32>
    %5 = arith.addf %2, %4 : vector<64x768xf32>
    %c0_5 = arith.constant 0 : index
    %c0_6 = arith.constant 0 : index
    %6 = vector.load %arg29[%c0_5, %c0_6] : memref<64x768xf32, #tpu.memory_space<vmem>>, vector<64x768xf32>
    tpu.vector_store %arg29[%c0_5, %c0_6], %5 {strides = array<i32>} : memref<64x768xf32, #tpu.memory_space<vmem>>, vector<64x768xf32>,
    %c0_7 = arith.constant 0 : index
    %c0_8 = arith.constant 0 : index
    %7 = vector.load %arg4[%c0_7, %c0_8] : memref<128x384xf32, #tpu.memory_space<vmem>>, vector<128x384xf32>
    %c0_9 = arith.constant 0 : index
    %c0_10 = arith.constant 0 : index
    %8 = vector.load %arg5[%c0_9, %c0_10] : memref<128x384xf32, #tpu.memory_space<vmem>>, vector<128x384xf32>
    %c0_11 = arith.constant 0 : index
    %c0_12 = arith.constant 0 : index
    %9 = vector.load %arg6[%c0_11, %c0_12] : memref<1x128xf32, #tpu.memory_space<vmem>>, vector<1x128xf32>
    %c0_13 = arith.constant 0 : index
    %c0_14 = arith.constant 0 : index
    %10 = vector.load %arg7[%c0_13, %c0_14] : memref<1x128xf32, #tpu.memory_space<vmem>>, vector<1x128xf32>
    %cst_15 = arith.constant 0.000000e+00 : f32
    %11 = vector.broadcast %cst_15 : f32 to vector<8x128xf32>
    %c0_i32 = arith.constant 0 : i32
    %c8_i32 = arith.constant 8 : i32
    %12 = arith.addi %c0_i32, %c8_i32 : i32
    %c1_i32 = arith.constant 1 : i32
    %13:2 = scf.for %arg33 = %c0_i32 to %12 step %c1_i32 iter_args(%arg34 = %11, %arg35 = %11) -> (vector<8x128xf32>, vector<8x128xf32>)  : i32 {
      %c8_i32_93 = arith.constant 8 : i32
      %129 = arith.muli %arg33, %c8_i32_93 : i32
      %130 = tpu.assume_multiple %129, 8 : i32
      %c7_i32 = arith.constant 7 : i32
      %131 = arith.subi %c7_i32, %arg33 : i32
      %c8_i32_94 = arith.constant 8 : i32
      %132 = arith.muli %131, %c8_i32_94 : i32
      %133 = tpu.assume_multiple %132, 8 : i32
      %134 = arith.index_cast %130 : i32 to index
      %c0_95 = arith.constant 0 : index
      %135 = vector.load %arg29[%134, %c0_95] : memref<64x768xf32, #tpu.memory_space<vmem>>, vector<8x384xf32>
      %136 = arith.index_cast %133 : i32 to index
      %c384 = arith.constant 384 : index
      %137 = vector.load %arg29[%136, %c384] : memref<64x768xf32, #tpu.memory_space<vmem>>, vector<8x384xf32>
      %138 = arith.index_cast %130 : i32 to index
      %c0_96 = arith.constant 0 : index
      %139 = vector.load %arg1[%138, %c0_96] : memref<64x1xf32, #tpu.memory_space<vmem>>, vector<8x1xf32>
      %cst_97 = arith.constant 5.000000e-01 : f32
      %140 = vector.broadcast %cst_97 : f32 to vector<8x1xf32>
      %141 = arith.cmpf ogt, %139, %140 : vector<8x1xf32>
      %142 = arith.index_cast %133 : i32 to index
      %c0_98 = arith.constant 0 : index
      %143 = vector.load %arg1[%142, %c0_98] : memref<64x1xf32, #tpu.memory_space<vmem>>, vector<8x1xf32>
      %cst_99 = arith.constant 5.000000e-01 : f32
      %144 = vector.broadcast %cst_99 : f32 to vector<8x1xf32>
      %145 = arith.cmpf ogt, %143, %144 : vector<8x1xf32>
      %cst_100 = arith.constant dense<0.000000e+00> : vector<8x384xf32>
      %146 = tpu.matmul %arg34, %7, %cst_100 {dimension_numbers = #tpu.dot_dimension_numbers<[1], [0], [0], [1], [0, 0, 1, 1], [], []>} : vector<8x128xf32>, vector<128x384xf32>, vector<8x384xf32> -> vector<8x384xf32>
      %cst_101 = arith.constant dense<0.000000e+00> : vector<8x384xf32>
      %147 = tpu.matmul %arg35, %8, %cst_101 {dimension_numbers = #tpu.dot_dimension_numbers<[1], [0], [0], [1], [0, 0, 1, 1], [], []>} : vector<8x128xf32>, vector<128x384xf32>, vector<8x384xf32> -> vector<8x384xf32>
      %148 = vector.extract_strided_slice %135 {offsets = [0, 0], sizes = [8, 128], strides = [1, 1]} : vector<8x384xf32> to vector<8x128xf32>
      %149 = vector.extract_strided_slice %146 {offsets = [0, 0], sizes = [8, 128], strides = [1, 1]} : vector<8x384xf32> to vector<8x128xf32>
      %150 = arith.addf %148, %149 : vector<8x128xf32>
      %151 = arith.negf %150 : vector<8x128xf32>
      %152 = math.exp %151 : vector<8x128xf32>
      %cst_102 = arith.constant 1.000000e+00 : f32
      %153 = vector.broadcast %cst_102 : f32 to vector<8x128xf32>
      %154 = arith.addf %153, %152 : vector<8x128xf32>
      %155 = arith.divf %153, %154 : vector<8x128xf32>
      %156 = vector.extract_strided_slice %135 {offsets = [0, 128], sizes = [8, 128], strides = [1, 1]} : vector<8x384xf32> to vector<8x128xf32>
      %157 = vector.extract_strided_slice %146 {offsets = [0, 128], sizes = [8, 128], strides = [1, 1]} : vector<8x384xf32> to vector<8x128xf32>
      %158 = arith.addf %156, %157 : vector<8x128xf32>
      %159 = arith.negf %158 : vector<8x128xf32>
      %160 = math.exp %159 : vector<8x128xf32>
      %cst_103 = arith.constant 1.000000e+00 : f32
      %161 = vector.broadcast %cst_103 : f32 to vector<8x128xf32>
      %162 = arith.addf %161, %160 : vector<8x128xf32>
      %163 = arith.divf %161, %162 : vector<8x128xf32>
      %164 = vector.extract_strided_slice %135 {offsets = [0, 256], sizes = [8, 128], strides = [1, 1]} : vector<8x384xf32> to vector<8x128xf32>
      %165 = vector.extract_strided_slice %146 {offsets = [0, 256], sizes = [8, 128], strides = [1, 1]} : vector<8x384xf32> to vector<8x128xf32>
      %166 = vector.broadcast %9 : vector<1x128xf32> to vector<8x128xf32>
      %167 = arith.addf %165, %166 : vector<8x128xf32>
      %168 = arith.mulf %155, %167 : vector<8x128xf32>
      %169 = arith.addf %164, %168 : vector<8x128xf32>
      %170 = math.tanh %169 : vector<8x128xf32>
      %171 = arith.subf %arg34, %170 : vector<8x128xf32>
      %172 = arith.mulf %163, %171 : vector<8x128xf32>
      %173 = arith.addf %170, %172 : vector<8x128xf32>
      %174 = vector.extract_strided_slice %137 {offsets = [0, 0], sizes = [8, 128], strides = [1, 1]} : vector<8x384xf32> to vector<8x128xf32>
      %175 = vector.extract_strided_slice %147 {offsets = [0, 0], sizes = [8, 128], strides = [1, 1]} : vector<8x384xf32> to vector<8x128xf32>
      %176 = arith.addf %174, %175 : vector<8x128xf32>
      %177 = arith.negf %176 : vector<8x128xf32>
      %178 = math.exp %177 : vector<8x128xf32>
      %cst_104 = arith.constant 1.000000e+00 : f32
      %179 = vector.broadcast %cst_104 : f32 to vector<8x128xf32>
      %180 = arith.addf %179, %178 : vector<8x128xf32>
      %181 = arith.divf %179, %180 : vector<8x128xf32>
      %182 = vector.extract_strided_slice %137 {offsets = [0, 128], sizes = [8, 128], strides = [1, 1]} : vector<8x384xf32> to vector<8x128xf32>
      %183 = vector.extract_strided_slice %147 {offsets = [0, 128], sizes = [8, 128], strides = [1, 1]} : vector<8x384xf32> to vector<8x128xf32>
      %184 = arith.addf %182, %183 : vector<8x128xf32>
      %185 = arith.negf %184 : vector<8x128xf32>
      %186 = math.exp %185 : vector<8x128xf32>
      %cst_105 = arith.constant 1.000000e+00 : f32
      %187 = vector.broadcast %cst_105 : f32 to vector<8x128xf32>
      %188 = arith.addf %187, %186 : vector<8x128xf32>
      %189 = arith.divf %187, %188 : vector<8x128xf32>
      %190 = vector.extract_strided_slice %137 {offsets = [0, 256], sizes = [8, 128], strides = [1, 1]} : vector<8x384xf32> to vector<8x128xf32>
      %191 = vector.extract_strided_slice %147 {offsets = [0, 256], sizes = [8, 128], strides = [1, 1]} : vector<8x384xf32> to vector<8x128xf32>
      %192 = vector.broadcast %10 : vector<1x128xf32> to vector<8x128xf32>
      %193 = arith.addf %191, %192 : vector<8x128xf32>
      %194 = arith.mulf %181, %193 : vector<8x128xf32>
      %195 = arith.addf %190, %194 : vector<8x128xf32>
      %196 = math.tanh %195 : vector<8x128xf32>
      %197 = arith.subf %arg35, %196 : vector<8x128xf32>
      %198 = arith.mulf %189, %197 : vector<8x128xf32>
      %199 = arith.addf %196, %198 : vector<8x128xf32>
      %cst_106 = arith.constant 0.000000e+00 : f32
      %200 = vector.shape_cast %141 : vector<8x1xi1> to vector<8x1xi1>
      %201 = vector.broadcast %200 : vector<8x1xi1> to vector<8x128xi1>
      %202 = vector.broadcast %cst_106 : f32 to vector<8x128xf32>
      %203 = arith.select %201, %173, %202 : vector<8x128xi1>, vector<8x128xf32>
      %204 = arith.index_cast %130 : i32 to index
      %c0_107 = arith.constant 0 : index
      %205 = vector.load %arg31[%204, %c0_107] : memref<64x256xf32, #tpu.memory_space<vmem>>, vector<8x128xf32>
      tpu.vector_store %arg31[%204, %c0_107], %203 {strides = array<i32>} : memref<64x256xf32, #tpu.memory_space<vmem>>, vector<8x128xf32>,
      %cst_108 = arith.constant 0.000000e+00 : f32
      %206 = vector.shape_cast %145 : vector<8x1xi1> to vector<8x1xi1>
      %207 = vector.broadcast %206 : vector<8x1xi1> to vector<8x128xi1>
      %208 = vector.broadcast %cst_108 : f32 to vector<8x128xf32>
      %209 = arith.select %207, %199, %208 : vector<8x128xi1>, vector<8x128xf32>
      %210 = arith.index_cast %133 : i32 to index
      %c128 = arith.constant 128 : index
      %211 = vector.load %arg31[%210, %c128] : memref<64x256xf32, #tpu.memory_space<vmem>>, vector<8x128xf32>
      tpu.vector_store %arg31[%210, %c128], %209 {strides = array<i32>} : memref<64x256xf32, #tpu.memory_space<vmem>>, vector<8x128xf32>,
      %212 = vector.shape_cast %141 : vector<8x1xi1> to vector<8x1xi1>
      %213 = vector.broadcast %212 : vector<8x1xi1> to vector<8x128xi1>
      %214 = arith.select %213, %173, %arg34 : vector<8x128xi1>, vector<8x128xf32>
      %215 = vector.shape_cast %145 : vector<8x1xi1> to vector<8x1xi1>
      %216 = vector.broadcast %215 : vector<8x1xi1> to vector<8x128xi1>
      %217 = arith.select %216, %199, %arg35 : vector<8x128xi1>, vector<8x128xf32>
      scf.yield %214, %217 : vector<8x128xf32>, vector<8x128xf32>
    }
    %c8_i32_16 = arith.constant 8 : i32
    %c0_17 = arith.constant 0 : index
    %c0_18 = arith.constant 0 : index
    %14 = vector.load %arg31[%c0_17, %c0_18] : memref<64x256xf32, #tpu.memory_space<vmem>>, vector<64x256xf32>
    %c0_19 = arith.constant 0 : index
    %c0_20 = arith.constant 0 : index
    %15 = vector.load %arg8[%c0_19, %c0_20] : memref<256x768xf32, #tpu.memory_space<vmem>>, vector<256x768xf32>
    %cst_21 = arith.constant dense<0.000000e+00> : vector<64x768xf32>
    %16 = tpu.matmul %14, %15, %cst_21 {dimension_numbers = #tpu.dot_dimension_numbers<[1], [0], [0], [1], [0, 0, 1, 1], [], []>} : vector<64x256xf32>, vector<256x768xf32>, vector<64x768xf32> -> vector<64x768xf32>
    %c0_22 = arith.constant 0 : index
    %c0_23 = arith.constant 0 : index
    %17 = vector.load %arg9[%c0_22, %c0_23] : memref<1x768xf32, #tpu.memory_space<vmem>>, vector<1x768xf32>
    %18 = vector.broadcast %17 : vector<1x768xf32> to vector<64x768xf32>
    %19 = arith.addf %16, %18 : vector<64x768xf32>
    %c0_24 = arith.constant 0 : index
    %c0_25 = arith.constant 0 : index
    %20 = vector.load %arg30[%c0_24, %c0_25] : memref<64x768xf32, #tpu.memory_space<vmem>>, vector<64x768xf32>
    tpu.vector_store %arg30[%c0_24, %c0_25], %19 {strides = array<i32>} : memref<64x768xf32, #tpu.memory_space<vmem>>, vector<64x768xf32>,
    %c0_26 = arith.constant 0 : index
    %c0_27 = arith.constant 0 : index
    %21 = vector.load %arg10[%c0_26, %c0_27] : memref<128x384xf32, #tpu.memory_space<vmem>>, vector<128x384xf32>
    %c0_28 = arith.constant 0 : index
    %c0_29 = arith.constant 0 : index
    %22 = vector.load %arg11[%c0_28, %c0_29] : memref<128x384xf32, #tpu.memory_space<vmem>>, vector<128x384xf32>
    %c0_30 = arith.constant 0 : index
    %c0_31 = arith.constant 0 : index
    %23 = vector.load %arg12[%c0_30, %c0_31] : memref<1x128xf32, #tpu.memory_space<vmem>>, vector<1x128xf32>
    %c0_32 = arith.constant 0 : index
    %c0_33 = arith.constant 0 : index
    %24 = vector.load %arg13[%c0_32, %c0_33] : memref<1x128xf32, #tpu.memory_space<vmem>>, vector<1x128xf32>
    %cst_34 = arith.constant 0.000000e+00 : f32
    %25 = vector.broadcast %cst_34 : f32 to vector<8x128xf32>
    %c0_i32_35 = arith.constant 0 : i32
    %c8_i32_36 = arith.constant 8 : i32
    %26 = arith.addi %c0_i32_35, %c8_i32_36 : i32
    %c1_i32_37 = arith.constant 1 : i32
    %27:2 = scf.for %arg33 = %c0_i32_35 to %26 step %c1_i32_37 iter_args(%arg34 = %25, %arg35 = %25) -> (vector<8x128xf32>, vector<8x128xf32>)  : i32 {
      %c8_i32_93 = arith.constant 8 : i32
      %129 = arith.muli %arg33, %c8_i32_93 : i32
      %130 = tpu.assume_multiple %129, 8 : i32
      %c7_i32 = arith.constant 7 : i32
      %131 = arith.subi %c7_i32, %arg33 : i32
      %c8_i32_94 = arith.constant 8 : i32
      %132 = arith.muli %131, %c8_i32_94 : i32
      %133 = tpu.assume_multiple %132, 8 : i32
      %134 = arith.index_cast %130 : i32 to index
      %c0_95 = arith.constant 0 : index
      %135 = vector.load %arg30[%134, %c0_95] : memref<64x768xf32, #tpu.memory_space<vmem>>, vector<8x384xf32>
      %136 = arith.index_cast %133 : i32 to index
      %c384 = arith.constant 384 : index
      %137 = vector.load %arg30[%136, %c384] : memref<64x768xf32, #tpu.memory_space<vmem>>, vector<8x384xf32>
      %138 = arith.index_cast %130 : i32 to index
      %c0_96 = arith.constant 0 : index
      %139 = vector.load %arg1[%138, %c0_96] : memref<64x1xf32, #tpu.memory_space<vmem>>, vector<8x1xf32>
      %cst_97 = arith.constant 5.000000e-01 : f32
      %140 = vector.broadcast %cst_97 : f32 to vector<8x1xf32>
      %141 = arith.cmpf ogt, %139, %140 : vector<8x1xf32>
      %142 = arith.index_cast %133 : i32 to index
      %c0_98 = arith.constant 0 : index
      %143 = vector.load %arg1[%142, %c0_98] : memref<64x1xf32, #tpu.memory_space<vmem>>, vector<8x1xf32>
      %cst_99 = arith.constant 5.000000e-01 : f32
      %144 = vector.broadcast %cst_99 : f32 to vector<8x1xf32>
      %145 = arith.cmpf ogt, %143, %144 : vector<8x1xf32>
      %cst_100 = arith.constant dense<0.000000e+00> : vector<8x384xf32>
      %146 = tpu.matmul %arg34, %21, %cst_100 {dimension_numbers = #tpu.dot_dimension_numbers<[1], [0], [0], [1], [0, 0, 1, 1], [], []>} : vector<8x128xf32>, vector<128x384xf32>, vector<8x384xf32> -> vector<8x384xf32>
      %cst_101 = arith.constant dense<0.000000e+00> : vector<8x384xf32>
      %147 = tpu.matmul %arg35, %22, %cst_101 {dimension_numbers = #tpu.dot_dimension_numbers<[1], [0], [0], [1], [0, 0, 1, 1], [], []>} : vector<8x128xf32>, vector<128x384xf32>, vector<8x384xf32> -> vector<8x384xf32>
      %148 = vector.extract_strided_slice %135 {offsets = [0, 0], sizes = [8, 128], strides = [1, 1]} : vector<8x384xf32> to vector<8x128xf32>
      %149 = vector.extract_strided_slice %146 {offsets = [0, 0], sizes = [8, 128], strides = [1, 1]} : vector<8x384xf32> to vector<8x128xf32>
      %150 = arith.addf %148, %149 : vector<8x128xf32>
      %151 = arith.negf %150 : vector<8x128xf32>
      %152 = math.exp %151 : vector<8x128xf32>
      %cst_102 = arith.constant 1.000000e+00 : f32
      %153 = vector.broadcast %cst_102 : f32 to vector<8x128xf32>
      %154 = arith.addf %153, %152 : vector<8x128xf32>
      %155 = arith.divf %153, %154 : vector<8x128xf32>
      %156 = vector.extract_strided_slice %135 {offsets = [0, 128], sizes = [8, 128], strides = [1, 1]} : vector<8x384xf32> to vector<8x128xf32>
      %157 = vector.extract_strided_slice %146 {offsets = [0, 128], sizes = [8, 128], strides = [1, 1]} : vector<8x384xf32> to vector<8x128xf32>
      %158 = arith.addf %156, %157 : vector<8x128xf32>
      %159 = arith.negf %158 : vector<8x128xf32>
      %160 = math.exp %159 : vector<8x128xf32>
      %cst_103 = arith.constant 1.000000e+00 : f32
      %161 = vector.broadcast %cst_103 : f32 to vector<8x128xf32>
      %162 = arith.addf %161, %160 : vector<8x128xf32>
      %163 = arith.divf %161, %162 : vector<8x128xf32>
      %164 = vector.extract_strided_slice %135 {offsets = [0, 256], sizes = [8, 128], strides = [1, 1]} : vector<8x384xf32> to vector<8x128xf32>
      %165 = vector.extract_strided_slice %146 {offsets = [0, 256], sizes = [8, 128], strides = [1, 1]} : vector<8x384xf32> to vector<8x128xf32>
      %166 = vector.broadcast %23 : vector<1x128xf32> to vector<8x128xf32>
      %167 = arith.addf %165, %166 : vector<8x128xf32>
      %168 = arith.mulf %155, %167 : vector<8x128xf32>
      %169 = arith.addf %164, %168 : vector<8x128xf32>
      %170 = math.tanh %169 : vector<8x128xf32>
      %171 = arith.subf %arg34, %170 : vector<8x128xf32>
      %172 = arith.mulf %163, %171 : vector<8x128xf32>
      %173 = arith.addf %170, %172 : vector<8x128xf32>
      %174 = vector.extract_strided_slice %137 {offsets = [0, 0], sizes = [8, 128], strides = [1, 1]} : vector<8x384xf32> to vector<8x128xf32>
      %175 = vector.extract_strided_slice %147 {offsets = [0, 0], sizes = [8, 128], strides = [1, 1]} : vector<8x384xf32> to vector<8x128xf32>
      %176 = arith.addf %174, %175 : vector<8x128xf32>
      %177 = arith.negf %176 : vector<8x128xf32>
      %178 = math.exp %177 : vector<8x128xf32>
      %cst_104 = arith.constant 1.000000e+00 : f32
      %179 = vector.broadcast %cst_104 : f32 to vector<8x128xf32>
      %180 = arith.addf %179, %178 : vector<8x128xf32>
      %181 = arith.divf %179, %180 : vector<8x128xf32>
      %182 = vector.extract_strided_slice %137 {offsets = [0, 128], sizes = [8, 128], strides = [1, 1]} : vector<8x384xf32> to vector<8x128xf32>
      %183 = vector.extract_strided_slice %147 {offsets = [0, 128], sizes = [8, 128], strides = [1, 1]} : vector<8x384xf32> to vector<8x128xf32>
      %184 = arith.addf %182, %183 : vector<8x128xf32>
      %185 = arith.negf %184 : vector<8x128xf32>
      %186 = math.exp %185 : vector<8x128xf32>
      %cst_105 = arith.constant 1.000000e+00 : f32
      %187 = vector.broadcast %cst_105 : f32 to vector<8x128xf32>
      %188 = arith.addf %187, %186 : vector<8x128xf32>
      %189 = arith.divf %187, %188 : vector<8x128xf32>
      %190 = vector.extract_strided_slice %137 {offsets = [0, 256], sizes = [8, 128], strides = [1, 1]} : vector<8x384xf32> to vector<8x128xf32>
      %191 = vector.extract_strided_slice %147 {offsets = [0, 256], sizes = [8, 128], strides = [1, 1]} : vector<8x384xf32> to vector<8x128xf32>
      %192 = vector.broadcast %24 : vector<1x128xf32> to vector<8x128xf32>
      %193 = arith.addf %191, %192 : vector<8x128xf32>
      %194 = arith.mulf %181, %193 : vector<8x128xf32>
      %195 = arith.addf %190, %194 : vector<8x128xf32>
      %196 = math.tanh %195 : vector<8x128xf32>
      %197 = arith.subf %arg35, %196 : vector<8x128xf32>
      %198 = arith.mulf %189, %197 : vector<8x128xf32>
      %199 = arith.addf %196, %198 : vector<8x128xf32>
      %cst_106 = arith.constant 0.000000e+00 : f32
      %200 = vector.shape_cast %141 : vector<8x1xi1> to vector<8x1xi1>
      %201 = vector.broadcast %200 : vector<8x1xi1> to vector<8x128xi1>
      %202 = vector.broadcast %cst_106 : f32 to vector<8x128xf32>
      %203 = arith.select %201, %173, %202 : vector<8x128xi1>, vector<8x128xf32>
      %204 = arith.index_cast %130 : i32 to index
      %c0_107 = arith.constant 0 : index
      %205 = vector.load %arg32[%204, %c0_107] : memref<64x256xf32, #tpu.memory_space<vmem>>, vector<8x128xf32>
      tpu.vector_store %arg32[%204, %c0_107], %203 {strides = array<i32>} : memref<64x256xf32, #tpu.memory_space<vmem>>, vector<8x128xf32>,
      %cst_108 = arith.constant 0.000000e+00 : f32
      %206 = vector.shape_cast %145 : vector<8x1xi1> to vector<8x1xi1>
      %207 = vector.broadcast %206 : vector<8x1xi1> to vector<8x128xi1>
      %208 = vector.broadcast %cst_108 : f32 to vector<8x128xf32>
      %209 = arith.select %207, %199, %208 : vector<8x128xi1>, vector<8x128xf32>
      %210 = arith.index_cast %133 : i32 to index
      %c128 = arith.constant 128 : index
      %211 = vector.load %arg32[%210, %c128] : memref<64x256xf32, #tpu.memory_space<vmem>>, vector<8x128xf32>
      tpu.vector_store %arg32[%210, %c128], %209 {strides = array<i32>} : memref<64x256xf32, #tpu.memory_space<vmem>>, vector<8x128xf32>,
      %212 = vector.shape_cast %141 : vector<8x1xi1> to vector<8x1xi1>
      %213 = vector.broadcast %212 : vector<8x1xi1> to vector<8x128xi1>
      %214 = arith.select %213, %173, %arg34 : vector<8x128xi1>, vector<8x128xf32>
      %215 = vector.shape_cast %145 : vector<8x1xi1> to vector<8x1xi1>
      %216 = vector.broadcast %215 : vector<8x1xi1> to vector<8x128xi1>
      %217 = arith.select %216, %199, %arg35 : vector<8x128xi1>, vector<8x128xf32>
      scf.yield %214, %217 : vector<8x128xf32>, vector<8x128xf32>
    }
    %c8_i32_38 = arith.constant 8 : i32
    %c0_39 = arith.constant 0 : index
    %c0_40 = arith.constant 0 : index
    %28 = vector.load %arg32[%c0_39, %c0_40] : memref<64x256xf32, #tpu.memory_space<vmem>>, vector<64x256xf32>
    %c0_41 = arith.constant 0 : index
    %c0_42 = arith.constant 0 : index
    %29 = vector.load %arg14[%c0_41, %c0_42] : memref<256x128xf32, #tpu.memory_space<vmem>>, vector<256x128xf32>
    %cst_43 = arith.constant dense<0.000000e+00> : vector<64x128xf32>
    %30 = tpu.matmul %28, %29, %cst_43 {dimension_numbers = #tpu.dot_dimension_numbers<[1], [0], [0], [1], [0, 0, 1, 1], [], []>} : vector<64x256xf32>, vector<256x128xf32>, vector<64x128xf32> -> vector<64x128xf32>
    %c0_44 = arith.constant 0 : index
    %c0_45 = arith.constant 0 : index
    %31 = vector.load %arg15[%c0_44, %c0_45] : memref<1x128xf32, #tpu.memory_space<vmem>>, vector<1x128xf32>
    %32 = vector.broadcast %31 : vector<1x128xf32> to vector<64x128xf32>
    %33 = arith.addf %30, %32 : vector<64x128xf32>
    %cst_46 = arith.constant 0.000000e+00 : f32
    %34 = vector.broadcast %cst_46 : f32 to vector<64x128xf32>
    %35 = arith.maximumf %33, %34 : vector<64x128xf32>
    %c0_47 = arith.constant 0 : index
    %c0_48 = arith.constant 0 : index
    %36 = vector.load %arg16[%c0_47, %c0_48] : memref<1x128xf32, #tpu.memory_space<vmem>>, vector<1x128xf32>
    %c0_49 = arith.constant 0 : index
    %c0_50 = arith.constant 0 : index
    %37 = vector.load %arg17[%c0_49, %c0_50] : memref<1x128xf32, #tpu.memory_space<vmem>>, vector<1x128xf32>
    %cst_51 = arith.constant dense<0.000000e+00> : vector<64xf32>
    %38 = vector.multi_reduction <add>, %35, %cst_51 [1] : vector<64x128xf32> to vector<64xf32>
    %39 = vector.shape_cast %38 : vector<64xf32> to vector<64x1xf32>
    %cst_52 = arith.constant 1.280000e+02 : f32
    %40 = vector.broadcast %cst_52 : f32 to vector<64x1xf32>
    %41 = arith.divf %39, %40 : vector<64x1xf32>
    %42 = vector.broadcast %41 : vector<64x1xf32> to vector<64x128xf32>
    %43 = arith.subf %35, %42 : vector<64x128xf32>
    %44 = arith.mulf %43, %43 : vector<64x128xf32>
    %cst_53 = arith.constant dense<0.000000e+00> : vector<64xf32>
    %45 = vector.multi_reduction <add>, %44, %cst_53 [1] : vector<64x128xf32> to vector<64xf32>
    %46 = vector.shape_cast %45 : vector<64xf32> to vector<64x1xf32>
    %cst_54 = arith.constant 1.280000e+02 : f32
    %47 = vector.broadcast %cst_54 : f32 to vector<64x1xf32>
    %48 = arith.divf %46, %47 : vector<64x1xf32>
    %49 = vector.broadcast %41 : vector<64x1xf32> to vector<64x128xf32>
    %50 = arith.subf %35, %49 : vector<64x128xf32>
    %cst_55 = arith.constant 9.99999974E-6 : f32
    %51 = vector.broadcast %cst_55 : f32 to vector<64x1xf32>
    %52 = arith.addf %48, %51 : vector<64x1xf32>
    %53 = math.rsqrt %52 : vector<64x1xf32>
    %54 = vector.broadcast %53 : vector<64x1xf32> to vector<64x128xf32>
    %55 = arith.mulf %50, %54 : vector<64x128xf32>
    %56 = vector.broadcast %36 : vector<1x128xf32> to vector<64x128xf32>
    %57 = arith.mulf %55, %56 : vector<64x128xf32>
    %58 = vector.broadcast %37 : vector<1x128xf32> to vector<64x128xf32>
    %59 = arith.addf %57, %58 : vector<64x128xf32>
    %c0_56 = arith.constant 0 : index
    %c0_57 = arith.constant 0 : index
    %60 = vector.load %arg18[%c0_56, %c0_57] : memref<128x256xf32, #tpu.memory_space<vmem>>, vector<128x256xf32>
    %cst_58 = arith.constant dense<0.000000e+00> : vector<64x256xf32>
    %61 = tpu.matmul %59, %60, %cst_58 {dimension_numbers = #tpu.dot_dimension_numbers<[1], [0], [0], [1], [0, 0, 1, 1], [], []>} : vector<64x128xf32>, vector<128x256xf32>, vector<64x256xf32> -> vector<64x256xf32>
    %c0_59 = arith.constant 0 : index
    %c0_60 = arith.constant 0 : index
    %62 = vector.load %arg19[%c0_59, %c0_60] : memref<1x256xf32, #tpu.memory_space<vmem>>, vector<1x256xf32>
    %63 = vector.broadcast %62 : vector<1x256xf32> to vector<64x256xf32>
    %64 = arith.addf %61, %63 : vector<64x256xf32>
    %cst_61 = arith.constant 0.000000e+00 : f32
    %65 = vector.broadcast %cst_61 : f32 to vector<64x256xf32>
    %66 = arith.maximumf %64, %65 : vector<64x256xf32>
    %c0_62 = arith.constant 0 : index
    %c0_63 = arith.constant 0 : index
    %67 = vector.load %arg20[%c0_62, %c0_63] : memref<1x256xf32, #tpu.memory_space<vmem>>, vector<1x256xf32>
    %c0_64 = arith.constant 0 : index
    %c0_65 = arith.constant 0 : index
    %68 = vector.load %arg21[%c0_64, %c0_65] : memref<1x256xf32, #tpu.memory_space<vmem>>, vector<1x256xf32>
    %cst_66 = arith.constant dense<0.000000e+00> : vector<64xf32>
    %69 = vector.multi_reduction <add>, %66, %cst_66 [1] : vector<64x256xf32> to vector<64xf32>
    %70 = vector.shape_cast %69 : vector<64xf32> to vector<64x1xf32>
    %cst_67 = arith.constant 2.560000e+02 : f32
    %71 = vector.broadcast %cst_67 : f32 to vector<64x1xf32>
    %72 = arith.divf %70, %71 : vector<64x1xf32>
    %73 = vector.broadcast %72 : vector<64x1xf32> to vector<64x256xf32>
    %74 = arith.subf %66, %73 : vector<64x256xf32>
    %75 = arith.mulf %74, %74 : vector<64x256xf32>
    %cst_68 = arith.constant dense<0.000000e+00> : vector<64xf32>
    %76 = vector.multi_reduction <add>, %75, %cst_68 [1] : vector<64x256xf32> to vector<64xf32>
    %77 = vector.shape_cast %76 : vector<64xf32> to vector<64x1xf32>
    %cst_69 = arith.constant 2.560000e+02 : f32
    %78 = vector.broadcast %cst_69 : f32 to vector<64x1xf32>
    %79 = arith.divf %77, %78 : vector<64x1xf32>
    %80 = vector.broadcast %72 : vector<64x1xf32> to vector<64x256xf32>
    %81 = arith.subf %66, %80 : vector<64x256xf32>
    %cst_70 = arith.constant 9.99999974E-6 : f32
    %82 = vector.broadcast %cst_70 : f32 to vector<64x1xf32>
    %83 = arith.addf %79, %82 : vector<64x1xf32>
    %84 = math.rsqrt %83 : vector<64x1xf32>
    %85 = vector.broadcast %84 : vector<64x1xf32> to vector<64x256xf32>
    %86 = arith.mulf %81, %85 : vector<64x256xf32>
    %87 = vector.broadcast %67 : vector<1x256xf32> to vector<64x256xf32>
    %88 = arith.mulf %86, %87 : vector<64x256xf32>
    %89 = vector.broadcast %68 : vector<1x256xf32> to vector<64x256xf32>
    %90 = arith.addf %88, %89 : vector<64x256xf32>
    %c0_71 = arith.constant 0 : index
    %c0_72 = arith.constant 0 : index
    %91 = vector.load %arg22[%c0_71, %c0_72] : memref<256x128xf32, #tpu.memory_space<vmem>>, vector<256x128xf32>
    %cst_73 = arith.constant dense<0.000000e+00> : vector<64x128xf32>
    %92 = tpu.matmul %90, %91, %cst_73 {dimension_numbers = #tpu.dot_dimension_numbers<[1], [0], [0], [1], [0, 0, 1, 1], [], []>} : vector<64x256xf32>, vector<256x128xf32>, vector<64x128xf32> -> vector<64x128xf32>
    %c0_74 = arith.constant 0 : index
    %c0_75 = arith.constant 0 : index
    %93 = vector.load %arg23[%c0_74, %c0_75] : memref<1x128xf32, #tpu.memory_space<vmem>>, vector<1x128xf32>
    %94 = vector.broadcast %93 : vector<1x128xf32> to vector<64x128xf32>
    %95 = arith.addf %92, %94 : vector<64x128xf32>
    %cst_76 = arith.constant 0.000000e+00 : f32
    %96 = vector.broadcast %cst_76 : f32 to vector<64x128xf32>
    %97 = arith.maximumf %95, %96 : vector<64x128xf32>
    %c0_77 = arith.constant 0 : index
    %c0_78 = arith.constant 0 : index
    %98 = vector.load %arg24[%c0_77, %c0_78] : memref<1x128xf32, #tpu.memory_space<vmem>>, vector<1x128xf32>
    %c0_79 = arith.constant 0 : index
    %c0_80 = arith.constant 0 : index
    %99 = vector.load %arg25[%c0_79, %c0_80] : memref<1x128xf32, #tpu.memory_space<vmem>>, vector<1x128xf32>
    %cst_81 = arith.constant dense<0.000000e+00> : vector<64xf32>
    %100 = vector.multi_reduction <add>, %97, %cst_81 [1] : vector<64x128xf32> to vector<64xf32>
    %101 = vector.shape_cast %100 : vector<64xf32> to vector<64x1xf32>
    %cst_82 = arith.constant 1.280000e+02 : f32
    %102 = vector.broadcast %cst_82 : f32 to vector<64x1xf32>
    %103 = arith.divf %101, %102 : vector<64x1xf32>
    %104 = vector.broadcast %103 : vector<64x1xf32> to vector<64x128xf32>
    %105 = arith.subf %97, %104 : vector<64x128xf32>
    %106 = arith.mulf %105, %105 : vector<64x128xf32>
    %cst_83 = arith.constant dense<0.000000e+00> : vector<64xf32>
    %107 = vector.multi_reduction <add>, %106, %cst_83 [1] : vector<64x128xf32> to vector<64xf32>
    %108 = vector.shape_cast %107 : vector<64xf32> to vector<64x1xf32>
    %cst_84 = arith.constant 1.280000e+02 : f32
    %109 = vector.broadcast %cst_84 : f32 to vector<64x1xf32>
    %110 = arith.divf %108, %109 : vector<64x1xf32>
    %111 = vector.broadcast %103 : vector<64x1xf32> to vector<64x128xf32>
    %112 = arith.subf %97, %111 : vector<64x128xf32>
    %cst_85 = arith.constant 9.99999974E-6 : f32
    %113 = vector.broadcast %cst_85 : f32 to vector<64x1xf32>
    %114 = arith.addf %110, %113 : vector<64x1xf32>
    %115 = math.rsqrt %114 : vector<64x1xf32>
    %116 = vector.broadcast %115 : vector<64x1xf32> to vector<64x128xf32>
    %117 = arith.mulf %112, %116 : vector<64x128xf32>
    %118 = vector.broadcast %98 : vector<1x128xf32> to vector<64x128xf32>
    %119 = arith.mulf %117, %118 : vector<64x128xf32>
    %120 = vector.broadcast %99 : vector<1x128xf32> to vector<64x128xf32>
    %121 = arith.addf %119, %120 : vector<64x128xf32>
    %c0_86 = arith.constant 0 : index
    %c0_87 = arith.constant 0 : index
    %122 = vector.load %arg26[%c0_86, %c0_87] : memref<128x6xf32, #tpu.memory_space<vmem>>, vector<128x6xf32>
    %cst_88 = arith.constant dense<0.000000e+00> : vector<64x6xf32>
    %123 = tpu.matmul %121, %122, %cst_88 {dimension_numbers = #tpu.dot_dimension_numbers<[1], [0], [0], [1], [0, 0, 1, 1], [], []>} : vector<64x128xf32>, vector<128x6xf32>, vector<64x6xf32> -> vector<64x6xf32>
    %c0_89 = arith.constant 0 : index
    %c0_90 = arith.constant 0 : index
    %124 = vector.load %arg27[%c0_89, %c0_90] : memref<1x6xf32, #tpu.memory_space<vmem>>, vector<1x6xf32>
    %125 = vector.broadcast %124 : vector<1x6xf32> to vector<64x6xf32>
    %126 = arith.addf %123, %125 : vector<64x6xf32>
    %127 = math.tanh %126 : vector<64x6xf32>
    %c0_91 = arith.constant 0 : index
    %c0_92 = arith.constant 0 : index
    %128 = vector.load %arg28[%c0_91, %c0_92] : memref<64x6xf32, #tpu.memory_space<vmem>>, vector<64x6xf32>
    tpu.vector_store %arg28[%c0_91, %c0_92], %127 {strides = array<i32>} : memref<64x6xf32, #tpu.memory_space<vmem>>, vector<64x6xf32>,
    return
  }
}

</mosaic_0001>

<bundles_post_ra>
// kernel: tpu_custom_call.1
= control target key start
LH: loop header
LB: loop body
LE: loop exit
PB: predicated region body
PF: predicated region fallthrough
CT: control target
= control target key end

     0   :  { %s7242_s0 = inlined_call_operand.hbm [shape: f32[64,64], index: 0, kind: input, shape index: {}]   ;;  %s7243_s1 = inlined_call_operand.vmem [shape: f32[64,1], index: 1, kind: input, shape index: {}]   ;;  %s7244_s2 = inlined_call_operand.hbm [shape: f32[64,768], index: 2, kind: input, shape index: {}]   ;;  %s7245_s3 = inlined_call_operand.vmem [shape: f32[1,768], index: 3, kind: input, shape index: {}]   ;;  %s7246_s4 = inlined_call_operand.hbm [shape: f32[128,384], index: 4, kind: input, shape index: {}]   ;;  %s7247_s5 = inlined_call_operand.hbm [shape: f32[128,384], index: 5, kind: input, shape index: {}]   ;;  %s7248_s6 = inlined_call_operand.hbm [shape: f32[1,128], index: 6, kind: input, shape index: {}]   ;;  %s7249_s7 = inlined_call_operand.hbm [shape: f32[1,128], index: 7, kind: input, shape index: {}]   ;;  %s7250_s8 = inlined_call_operand.hbm [shape: f32[256,768], index: 8, kind: input, shape index: {}]   ;;  %s7251_s9 = inlined_call_operand.hbm [shape: f32[1,768], index: 9, kind: input, shape index: {}]   ;;  %s7252_s10 = inlined_call_operand.hbm [shape: f32[128,384], index: 10, kind: input, shape index: {}]   ;;  %s7253_s11 = inlined_call_operand.hbm [shape: f32[128,384], index: 11, kind: input, shape index: {}]   ;;  %s7254_s12 = inlined_call_operand.hbm [shape: f32[1,128], index: 12, kind: input, shape index: {}]   ;;  %s7255_s13 = inlined_call_operand.hbm [shape: f32[1,128], index: 13, kind: input, shape index: {}]   ;;  %s7256_s14 = inlined_call_operand.hbm [shape: f32[256,128], index: 14, kind: input, shape index: {}]   ;;  %s7257_s15 = inlined_call_operand.hbm [shape: f32[1,128], index: 15, kind: input, shape index: {}]   ;;  %s7258_s16 = inlined_call_operand.hbm [shape: f32[1,128], index: 16, kind: input, shape index: {}]   ;;  %s7259_s17 = inlined_call_operand.hbm [shape: f32[1,128], index: 17, kind: input, shape index: {}]   ;;  %s7260_s18 = inlined_call_operand.vmem [shape: f32[128,256], index: 18, kind: input, shape index: {}]   ;;  %s7261_s19 = inlined_call_operand.vmem [shape: f32[1,256], index: 19, kind: input, shape index: {}]   ;;  %s7262_s20 = inlined_call_operand.vmem [shape: f32[1,256], index: 20, kind: input, shape index: {}]   ;;  %s7263_s21 = inlined_call_operand.vmem [shape: f32[1,256], index: 21, kind: input, shape index: {}]   ;;  %s7264_s22 = inlined_call_operand.hbm [shape: f32[256,128], index: 22, kind: input, shape index: {}]   ;;  %s7265_s23 = inlined_call_operand.vmem [shape: f32[1,128], index: 23, kind: input, shape index: {}]   ;;  %s7266_s24 = inlined_call_operand.vmem [shape: f32[1,128], index: 24, kind: input, shape index: {}]   ;;  %s7267_s25 = inlined_call_operand.vmem [shape: f32[1,128], index: 25, kind: input, shape index: {}]   ;;  %s7268_s26 = inlined_call_operand.vmem [shape: f32[128,6], index: 26, kind: input, shape index: {}]   ;;  %s7269_s27 = inlined_call_operand.vmem [shape: f32[1,6], index: 27, kind: input, shape index: {}]   ;;  %s7270_s28 = inlined_call_operand.vmem [shape: f32[64,6], index: 28, kind: output, shape index: {}]  }
   0x1   :  { %7300 = sst [smem:[#allocation105_spill]] %s7242_s0 }
   0x2   :  { %7301 = sst [smem:[#allocation106_spill]] %s7243_s1 }
   0x3   :  { %7302 = sst [smem:[#allocation107_spill]] %s7244_s2 }
   0x4   :  { %7303 = sst [smem:[#allocation108_spill]] %s7245_s3 }
   0x5   :  { %7304 = sst [smem:[#allocation109_spill]] %s7246_s4 }
   0x6   :  { %7305 = sst [smem:[#allocation110_spill]] %s7247_s5 }
   0x7   :  { %7306 = sst [smem:[#allocation111_spill]] %s7248_s6 }
   0x8   :  { %7307 = sst [smem:[#allocation112_spill]] %s7249_s7 }
   0x9   :  { %7308 = sst [smem:[#allocation113_spill]] %s7250_s8 }
   0xa   :  { %7309 = sst [smem:[#allocation114_spill]] %s7251_s9 }
   0xb   :  { %7310 = sst [smem:[#allocation115_spill]] %s7252_s10 }
   0xc   :  { %7311 = sst [smem:[#allocation116_spill]] %s7253_s11 }
   0xd   :  { %7312 = sst [smem:[#allocation117_spill]] %s7254_s12 }
   0xe   :  { %7313 = sst [smem:[#allocation118_spill]] %s7267_s25 }
   0xf   :  { %7314 = sst [smem:[#allocation119_spill]] %s7269_s27 }
  0x10   :  { %7315 = sst [smem:[#allocation120_spill]] %s7270_s28 }
  0x11   :  { %33 = vsyncpa [#allocation7], 0 }
  0x12   :  { %34 = vsyncpa [#allocation9], 0 }
  0x13   :  { %35 = vsyncpa [#allocation12], 0 }
  0x14   :  { %36 = vsyncpa [#allocation15], 0 }
  0x15   :  { %37 = vsyncpa [#allocation18], 0 }
  0x16   :  { %38 = vsyncpa [#allocation21], 0 }
  0x17   :  { %39 = vsyncpa [#allocation24], 0 }
  0x18   :  { %40 = vsyncpa [#allocation27], 0 }
  0x19   :  { %41 = vsyncpa [#allocation30], 0  ;;  %s5240_s8 = smov [#allocation8]   ;;  %s7316_s3 = sld [smem:[#allocation107_spill]] }
  0x1a   :  { %s61_s5 = sshll.u32 %s5240_s8, 4  ;;  %s62_s5 = int_to_ptr.vmem [resolvable:$true] %s61_s5 }
  0x1f   :  { %s4800_s6 = scalar_lea.hbm %s7316_s3, 6144 }
  0x20   :  { %p4801_p0 = scmp.ne.s32.totalorder %s7316_s3, %s4800_s6  ;;  %p4804_p1 = scmp.lt.u32.totalorder %s4800_s6, %s7316_s3 }
  0x22   :  { %p4806_p2 = pnand %p4804_p1, %p4801_p0 }
  0x24   :  { %4809 = shalt.err (!%p4806_p2)
}
  0x25   :  { %s4810_s2 = scalar_lea.vmem %s62_s5, 6144  ;;  %p4815_p4 = scmp.lt.s32.totalorder %s62_s5, %s62_s5 }
  0x26   :  { %p4811_p3 = scmp.ne.s32.totalorder %s62_s5, %s4810_s2  ;;  %p4816_p5 = scmp.lt.s32.totalorder %s4810_s2, %s4810_s2 }
  0x28   :  { %p4817_p6 = por %p4816_p5, %p4815_p4 }
  0x2a   :  { %p4818_p7 = pnand %p4817_p6, %p4811_p3 }
  0x2c   :  { %4821 = shalt.err (!%p4818_p7)
}
  0x2d   :  { %s7285_s7 = smov 768   ;;  %s7286_s12 = smov 48  }
  0x2e   :  { %67 = dma.hbm_to_vmem [thread:$0]  %s7316_s3, 6144, %s62_s5, [#allocation9], %s7285_s7, %s7285_s7, %s7286_s12  }
  0x2f   :  { %s5243_s8 = smov [#allocation11]   ;;  %s5244_s30 = smov [#allocation14]  }
  0x30   :  { %s87_s9 = sshll.u32 %s5243_s8, 4  ;;  %s110_s6 = sshll.u32 %s5244_s30, 4  ;;  %s88_s9 = int_to_ptr.vmem [resolvable:$true] %s87_s9  ;;  %s111_s6 = int_to_ptr.vmem [resolvable:$true] %s110_s6 }
  0x31   :  { %s7317_s11 = sld [smem:[#allocation110_spill]] }
  0x37   :  { %s4822_s29 = scalar_lea.hbm %s7317_s11, 6144 }
  0x38   :  { %p4823_p8 = scmp.ne.s32.totalorder %s7317_s11, %s4822_s29  ;;  %p4826_p9 = scmp.lt.u32.totalorder %s4822_s29, %s7317_s11 }
  0x3a   :  { %p4828_p10 = pnand %p4826_p9, %p4823_p8 }
  0x3c   :  { %4831 = shalt.err (!%p4828_p10)
}
  0x3d   :  { %s4832_s5 = scalar_lea.vmem %s88_s9, 6144  ;;  %p4837_p12 = scmp.lt.s32.totalorder %s88_s9, %s88_s9 }
  0x3e   :  { %p4833_p11 = scmp.ne.s32.totalorder %s88_s9, %s4832_s5  ;;  %p4838_p13 = scmp.lt.s32.totalorder %s4832_s5, %s4832_s5 }
  0x40   :  { %p4839_p0 = por %p4838_p13, %p4837_p12 }
  0x42   :  { %p4840_p1 = pnand %p4839_p0, %p4833_p11 }
  0x44   :  { %4843 = shalt.err (!%p4840_p1)
}
  0x45   :  { %s5245_s3 = smov 384   ;;  %s5246_s1 = smov 24  }
  0x46   :  { %93 = dma.hbm_to_vmem [thread:$0]  %s7317_s11, 6144, %s88_s9, [#allocation12], %s5245_s3, %s5245_s3, %s5246_s1  }
  0x47   :  { %s7318_s8 = sld [smem:[#allocation112_spill]] }
  0x4d   :  { %s4844_s30 = scalar_lea.hbm %s7318_s8, 16 }
  0x4e   :  { %p4845_p2 = scmp.ne.s32.totalorder %s7318_s8, %s4844_s30  ;;  %p4848_p3 = scmp.lt.u32.totalorder %s4844_s30, %s7318_s8 }
  0x50   :  { %p4850_p4 = pnand %p4848_p3, %p4845_p2 }
  0x52   :  { %4853 = shalt.err (!%p4850_p4)
}
  0x53   :  { %s4854_s5 = scalar_lea.vmem %s111_s6, 16  ;;  %s4858_s7 = scalar_lea.vmem %s111_s6, 32 }
  0x54   :  { %p4855_p5 = scmp.ne.s32.totalorder %s111_s6, %s4854_s5  ;;  %p4859_p6 = scmp.lt.s32.totalorder %s111_s6, %s111_s6 }
  0x55   :  { %p4860_p7 = scmp.lt.s32.totalorder %s4858_s7, %s4854_s5 }
  0x57   :  { %p4861_p8 = por %p4860_p7, %p4859_p6 }
  0x59   :  { %p4862_p9 = pnand %p4861_p8, %p4855_p5 }
  0x5b   :  { %4865 = shalt.err (!%p4862_p9)
}
  0x5c   :  { %113 = dma.hbm_to_vmem [thread:$0]  %s7318_s8, 16, %s111_s6, [#allocation15]  }
  0x5d   :  { %s5247_s28 = smov [#allocation17]   ;;  %s5248_s25 = smov [#allocation20]  }
  0x5e   :  { %s132_s4 = sshll.u32 %s5247_s28, 4  ;;  %s153_s27 = sshll.u32 %s5248_s25, 4  ;;  %s133_s4 = int_to_ptr.vmem [resolvable:$true] %s132_s4  ;;  %s154_s27 = int_to_ptr.vmem [resolvable:$true] %s153_s27 }
  0x5f   :  { %s7319_s0 = sld [smem:[#allocation114_spill]] }
  0x65   :  { %s4866_s29 = scalar_lea.hbm %s7319_s0, 96 }
  0x66   :  { %p4867_p10 = scmp.ne.s32.totalorder %s7319_s0, %s4866_s29  ;;  %p4870_p11 = scmp.lt.u32.totalorder %s4866_s29, %s7319_s0 }
  0x68   :  { %p4872_p12 = pnand %p4870_p11, %p4867_p10 }
  0x6a   :  { %4875 = shalt.err (!%p4872_p12)
}
  0x6b   :  { %s4876_s6 = scalar_lea.vmem %s133_s4, 96  ;;  %p4881_p0 = scmp.lt.s32.totalorder %s133_s4, %s133_s4 }
  0x6c   :  { %p4877_p13 = scmp.ne.s32.totalorder %s133_s4, %s4876_s6  ;;  %p4882_p1 = scmp.lt.s32.totalorder %s4876_s6, %s4876_s6 }
  0x6e   :  { %p4883_p2 = por %p4882_p1, %p4881_p0 }
  0x70   :  { %p4884_p3 = pnand %p4883_p2, %p4877_p13 }
  0x72   :  { %4887 = shalt.err (!%p4884_p3)
}
  0x73   :  { %135 = dma.hbm_to_vmem [thread:$0]  %s7319_s0, 96, %s133_s4, [#allocation18]  }
  0x74   :  { %s7320_s28 = sld [smem:[#allocation116_spill]] }
  0x7a   :  { %s4888_s25 = scalar_lea.hbm %s7320_s28, 6144 }
  0x7b   :  { %p4889_p4 = scmp.ne.s32.totalorder %s7320_s28, %s4888_s25  ;;  %p4892_p5 = scmp.lt.u32.totalorder %s4888_s25, %s7320_s28 }
  0x7d   :  { %p4894_p6 = pnand %p4892_p5, %p4889_p4 }
  0x7f   :  { %4897 = shalt.err (!%p4894_p6)
}
  0x80   :  { %s4898_s7 = scalar_lea.vmem %s154_s27, 6144  ;;  %p4903_p8 = scmp.lt.s32.totalorder %s154_s27, %s154_s27 }
  0x81   :  { %p4899_p7 = scmp.ne.s32.totalorder %s154_s27, %s4898_s7  ;;  %p4904_p9 = scmp.lt.s32.totalorder %s4898_s7, %s4898_s7 }
  0x83   :  { %p4905_p10 = por %p4904_p9, %p4903_p8 }
  0x85   :  { %p4906_p11 = pnand %p4905_p10, %p4899_p7 }
  0x87   :  { %4909 = shalt.err (!%p4906_p11)
}
  0x88   :  { %159 = dma.hbm_to_vmem [thread:$0]  %s7320_s28, 6144, %s154_s27, [#allocation21], %s5245_s3, %s5245_s3, %s5246_s1  }
  0x89   :  { %s5249_s5 = smov [#allocation23]   ;;  %s5250_s8 = smov [#allocation26]  }
  0x8a   :  { %s176_s6 = sshll.u32 %s5249_s5, 4  ;;  %s198_s9 = sshll.u32 %s5250_s8, 4  ;;  %s177_s6 = int_to_ptr.vmem [resolvable:$true] %s176_s6  ;;  %s199_s9 = int_to_ptr.vmem [resolvable:$true] %s198_s9 }
  0x8b   :  { %s4910_s25 = scalar_lea.hbm %s7255_s13, 16 }
  0x8c   :  { %p4911_p12 = scmp.ne.s32.totalorder %s7255_s13, %s4910_s25  ;;  %p4914_p13 = scmp.lt.u32.totalorder %s4910_s25, %s7255_s13 }
  0x8e   :  { %p4916_p0 = pnand %p4914_p13, %p4911_p12 }
  0x90   :  { %4919 = shalt.err (!%p4916_p0)
}
  0x91   :  { %s4920_s27 = scalar_lea.vmem %s177_s6, 16  ;;  %s4924_s28 = scalar_lea.vmem %s177_s6, 32 }
  0x92   :  { %p4921_p1 = scmp.ne.s32.totalorder %s177_s6, %s4920_s27  ;;  %p4925_p2 = scmp.lt.s32.totalorder %s177_s6, %s177_s6 }
  0x93   :  { %p4926_p3 = scmp.lt.s32.totalorder %s4924_s28, %s4920_s27 }
  0x95   :  { %p4927_p4 = por %p4926_p3, %p4925_p2 }
  0x97   :  { %p4928_p5 = pnand %p4927_p4, %p4921_p1 }
  0x99   :  { %4931 = shalt.err (!%p4928_p5)
}
  0x9a   :  { %179 = dma.hbm_to_vmem [thread:$0]  %s7255_s13, 16, %s177_s6, [#allocation24]  }
  0x9b   :  { %s4932_s8 = scalar_lea.hbm %s7257_s15, 16 }
  0x9c   :  { %p4933_p6 = scmp.ne.s32.totalorder %s7257_s15, %s4932_s8  ;;  %p4936_p7 = scmp.lt.u32.totalorder %s4932_s8, %s7257_s15 }
  0x9e   :  { %p4938_p8 = pnand %p4936_p7, %p4933_p6 }
  0xa0   :  { %4941 = shalt.err (!%p4938_p8)
}
  0xa1   :  { %s4942_s10 = scalar_lea.vmem %s199_s9, 16  ;;  %s4946_s29 = scalar_lea.vmem %s199_s9, 32 }
  0xa2   :  { %p4943_p9 = scmp.ne.s32.totalorder %s199_s9, %s4942_s10  ;;  %p4947_p10 = scmp.lt.s32.totalorder %s199_s9, %s199_s9 }
  0xa3   :  { %p4948_p11 = scmp.lt.s32.totalorder %s4946_s29, %s4942_s10 }
  0xa5   :  { %p4949_p12 = por %p4948_p11, %p4947_p10 }
  0xa7   :  { %p4950_p13 = pnand %p4949_p12, %p4943_p9 }
  0xa9   :  { %4953 = shalt.err (!%p4950_p13)
}
  0xaa   :  { %201 = dma.hbm_to_vmem [thread:$0]  %s7257_s15, 16, %s199_s9, [#allocation27]  }
  0xab   :  { %s5251_s2 = smov [#allocation29]   ;;  %s5252_s28 = smov [#allocation6]  }
  0xac   :  { %s218_s27 = sshll.u32 %s5251_s2, 4  ;;  %s47_s7 = sshll.u32 %s5252_s28, 4  ;;  %s219_s27 = int_to_ptr.vmem [resolvable:$true] %s218_s27  ;;  %s48_s7 = int_to_ptr.vmem [resolvable:$true] %s47_s7 }
  0xad   :  { %s4954_s5 = scalar_lea.hbm %s7259_s17, 16 }
  0xae   :  { %p4955_p0 = scmp.ne.s32.totalorder %s7259_s17, %s4954_s5  ;;  %p4958_p1 = scmp.lt.u32.totalorder %s4954_s5, %s7259_s17 }
  0xb0   :  { %p4960_p2 = pnand %p4958_p1, %p4955_p0 }
  0xb2   :  { %4963 = shalt.err (!%p4960_p2)
}
  0xb3   :  { %s4964_s15 = scalar_lea.vmem %s219_s27, 16  ;;  %s4968_s9 = scalar_lea.vmem %s219_s27, 32 }
  0xb4   :  { %p4965_p3 = scmp.ne.s32.totalorder %s219_s27, %s4964_s15  ;;  %p4969_p4 = scmp.lt.s32.totalorder %s219_s27, %s219_s27 }
  0xb5   :  { %p4970_p5 = scmp.lt.s32.totalorder %s4968_s9, %s4964_s15 }
  0xb7   :  { %p4971_p6 = por %p4970_p5, %p4969_p4 }
  0xb9   :  { %p4972_p7 = pnand %p4971_p6, %p4965_p3 }
  0xbb   :  { %4975 = shalt.err (!%p4972_p7)
}
  0xbc   :  { %221 = dma.hbm_to_vmem [thread:$0]  %s7259_s17, 16, %s219_s27, [#allocation30]  }
  0xbd   :  { %s7321_s6 = sld [smem:[#allocation105_spill]] }
  0xc3   :  { %s4976_s2 = scalar_lea.hbm %s7321_s6, 1024 }
  0xc4   :  { %p4977_p8 = scmp.ne.s32.totalorder %s7321_s6, %s4976_s2  ;;  %p4980_p9 = scmp.lt.u32.totalorder %s4976_s2, %s7321_s6 }
  0xc6   :  { %p4982_p10 = pnand %p4980_p9, %p4977_p8 }
  0xc8   :  { %4985 = shalt.err (!%p4982_p10)
}
  0xc9   :  { %s4986_s8 = scalar_lea.vmem %s48_s7, 1024  ;;  %p4991_p12 = scmp.lt.s32.totalorder %s48_s7, %s48_s7 }
  0xca   :  { %p4987_p11 = scmp.ne.s32.totalorder %s48_s7, %s4986_s8  ;;  %p4992_p13 = scmp.lt.s32.totalorder %s4986_s8, %s4986_s8 }
  0xcc   :  { %p4993_p0 = por %p4992_p13, %p4991_p12 }
  0xce   :  { %p4994_p1 = pnand %p4993_p0, %p4987_p11 }
  0xd0   :  { %4997 = shalt.err (!%p4994_p1)
}
  0xd1   :  { %s5253_s17 = smov 128   ;;  %s5254_s27 = smov 8  }
  0xd2   :  { %53 = dma.hbm_to_vmem [thread:$0]  %s7321_s6, 1024, %s48_s7, [#allocation7], %s5253_s17, %s5253_s17, %s5254_s27  }
  0xd3   :  { %s5255_s25 = smov [#allocation10]   ;;  %s5256_s9 = smov [#allocation13]  }
  0xd4   :  { %s75_s15 = sshll.u32 %s5255_s25, 4  ;;  %s100_s30 = sshll.u32 %s5256_s9, 4  ;;  %s76_s15 = int_to_ptr.vmem [resolvable:$true] %s75_s15  ;;  %s101_s30 = int_to_ptr.vmem [resolvable:$true] %s100_s30 }
  0xd5   :  { %s7322_s13 = sld [smem:[#allocation109_spill]] }
  0xdb   :  { %s4998_s2 = scalar_lea.hbm %s7322_s13, 6144 }
  0xdc   :  { %p4999_p2 = scmp.ne.s32.totalorder %s7322_s13, %s4998_s2  ;;  %p5002_p3 = scmp.lt.u32.totalorder %s4998_s2, %s7322_s13 }
  0xde   :  { %p5004_p4 = pnand %p5002_p3, %p4999_p2 }
  0xe0   :  { %5007 = shalt.err (!%p5004_p4)
}
  0xe1   :  { %s5008_s7 = scalar_lea.vmem %s76_s15, 6144  ;;  %p5013_p6 = scmp.lt.s32.totalorder %s76_s15, %s76_s15 }
  0xe2   :  { %p5009_p5 = scmp.ne.s32.totalorder %s76_s15, %s5008_s7  ;;  %p5014_p7 = scmp.lt.s32.totalorder %s5008_s7, %s5008_s7 }
  0xe4   :  { %p5015_p8 = por %p5014_p7, %p5013_p6 }
  0xe6   :  { %p5016_p9 = pnand %p5015_p8, %p5009_p5 }
  0xe8   :  { %5019 = shalt.err (!%p5016_p9)
}
  0xe9   :  { %81 = dma.hbm_to_vmem [thread:$0]  %s7322_s13, 6144, %s76_s15, [#allocation9], %s5245_s3, %s5245_s3, %s5246_s1  }
  0xea   :  { %s7323_s25 = sld [smem:[#allocation111_spill]] }
  0xf0   :  { %s5020_s9 = scalar_lea.hbm %s7323_s25, 16 }
  0xf1   :  { %p5021_p10 = scmp.ne.s32.totalorder %s7323_s25, %s5020_s9  ;;  %p5024_p11 = scmp.lt.u32.totalorder %s5020_s9, %s7323_s25 }
  0xf3   :  { %p5026_p12 = pnand %p5024_p11, %p5021_p10 }
  0xf5   :  { %5029 = shalt.err (!%p5026_p12)
}
  0xf6   :  { %s5030_s4 = scalar_lea.vmem %s101_s30, 16  ;;  %s5034_s0 = scalar_lea.vmem %s101_s30, 32 }
  0xf7   :  { %p5031_p13 = scmp.ne.s32.totalorder %s101_s30, %s5030_s4  ;;  %p5035_p0 = scmp.lt.s32.totalorder %s101_s30, %s101_s30 }
  0xf8   :  { %p5036_p1 = scmp.lt.s32.totalorder %s5034_s0, %s5030_s4 }
  0xfa   :  { %p5037_p2 = por %p5036_p1, %p5035_p0 }
  0xfc   :  { %p5038_p3 = pnand %p5037_p2, %p5031_p13 }
  0xfe   :  { %5041 = shalt.err (!%p5038_p3)
}
  0xff   :  { %103 = dma.hbm_to_vmem [thread:$0]  %s7323_s25, 16, %s101_s30, [#allocation12]  }
 0x100   :  { %s5257_s5 = smov [#allocation16]   ;;  %s5258_s6 = smov [#allocation19]  }
 0x101   :  { %s119_s7 = sshll.u32 %s5257_s5, 4  ;;  %s141_s8 = sshll.u32 %s5258_s6, 4  ;;  %s120_s7 = int_to_ptr.vmem [resolvable:$true] %s119_s7  ;;  %s142_s8 = int_to_ptr.vmem [resolvable:$true] %s141_s8 }
 0x102   :  { %s7324_s9 = sld [smem:[#allocation113_spill]] }
 0x108   :  { %s5042_s10 = scalar_lea.hbm %s7324_s9, 24576 }
 0x109   :  { %p5043_p4 = scmp.ne.s32.totalorder %s7324_s9, %s5042_s10  ;;  %p5046_p5 = scmp.lt.u32.totalorder %s5042_s10, %s7324_s9 }
 0x10b   :  { %p5048_p6 = pnand %p5046_p5, %p5043_p4 }
 0x10d   :  { %5051 = shalt.err (!%p5048_p6)
}
 0x10e   :  { %s5052_s30 = scalar_lea.vmem %s120_s7, 24576  ;;  %p5057_p8 = scmp.lt.s32.totalorder %s120_s7, %s120_s7 }
 0x10f   :  { %p5053_p7 = scmp.ne.s32.totalorder %s120_s7, %s5052_s30  ;;  %p5058_p9 = scmp.lt.s32.totalorder %s5052_s30, %s5052_s30 }
 0x111   :  { %p5059_p10 = por %p5058_p9, %p5057_p8 }
 0x113   :  { %p5060_p11 = pnand %p5059_p10, %p5053_p7 }
 0x115   :  { %5063 = shalt.err (!%p5060_p11)
}
 0x116   :  { %s7325_s25 = smov 48   ;;  %s7326_s0 = smov 768  }
 0x117   :  { %125 = dma.hbm_to_vmem [thread:$0]  %s7324_s9, 24576, %s120_s7, [#allocation15], %s7326_s0, %s7326_s0, %s7325_s25  }
 0x118   :  { %s7327_s12 = sld [smem:[#allocation115_spill]] }
 0x11e   :  { %s5064_s11 = scalar_lea.hbm %s7327_s12, 6144 }
 0x11f   :  { %p5065_p12 = scmp.ne.s32.totalorder %s7327_s12, %s5064_s11  ;;  %p5068_p13 = scmp.lt.u32.totalorder %s5064_s11, %s7327_s12 }
 0x121   :  { %p5070_p0 = pnand %p5068_p13, %p5065_p12 }
 0x123   :  { %5073 = shalt.err (!%p5070_p0)
}
 0x124   :  { %s5074_s4 = scalar_lea.vmem %s142_s8, 6144  ;;  %p5079_p2 = scmp.lt.s32.totalorder %s142_s8, %s142_s8 }
 0x125   :  { %p5075_p1 = scmp.ne.s32.totalorder %s142_s8, %s5074_s4  ;;  %p5080_p3 = scmp.lt.s32.totalorder %s5074_s4, %s5074_s4 }
 0x127   :  { %p5081_p4 = por %p5080_p3, %p5079_p2 }
 0x129   :  { %p5082_p5 = pnand %p5081_p4, %p5075_p1 }
 0x12b   :  { %5085 = shalt.err (!%p5082_p5)
}
 0x12c   :  { %147 = dma.hbm_to_vmem [thread:$0]  %s7327_s12, 6144, %s142_s8, [#allocation18], %s5245_s3, %s5245_s3, %s5246_s1  }
 0x12d   :  { %s5259_s30 = smov [#allocation22]   ;;  %s5260_s0 = smov [#allocation25]  }
 0x12e   :  { %s166_s25 = sshll.u32 %s5259_s30, 4  ;;  %s185_s15 = sshll.u32 %s5260_s0, 4  ;;  %s167_s25 = int_to_ptr.vmem [resolvable:$true] %s166_s25  ;;  %s186_s15 = int_to_ptr.vmem [resolvable:$true] %s185_s15 }
 0x12f   :  { %s7328_s6 = sld [smem:[#allocation117_spill]] }
 0x135   :  { %s5086_s11 = scalar_lea.hbm %s7328_s6, 16 }
 0x136   :  { %p5087_p6 = scmp.ne.s32.totalorder %s7328_s6, %s5086_s11  ;;  %p5090_p7 = scmp.lt.u32.totalorder %s5086_s11, %s7328_s6 }
 0x138   :  { %p5092_p8 = pnand %p5090_p7, %p5087_p6 }
 0x13a   :  { %5095 = shalt.err (!%p5092_p8)
}
 0x13b   :  { %s5096_s3 = scalar_lea.vmem %s167_s25, 16  ;;  %s5100_s1 = scalar_lea.vmem %s167_s25, 32 }
 0x13c   :  { %p5097_p9 = scmp.ne.s32.totalorder %s167_s25, %s5096_s3  ;;  %p5101_p10 = scmp.lt.s32.totalorder %s167_s25, %s167_s25 }
 0x13d   :  { %p5102_p11 = scmp.lt.s32.totalorder %s5100_s1, %s5096_s3 }
 0x13f   :  { %p5103_p12 = por %p5102_p11, %p5101_p10 }
 0x141   :  { %p5104_p13 = pnand %p5103_p12, %p5097_p9 }
 0x143   :  { %5107 = shalt.err (!%p5104_p13)
}
 0x144   :  { %169 = dma.hbm_to_vmem [thread:$0]  %s7328_s6, 16, %s167_s25, [#allocation21]  }
 0x145   :  { %s5108_s9 = scalar_lea.hbm %s7256_s14, 4096 }
 0x146   :  { %p5109_p0 = scmp.ne.s32.totalorder %s7256_s14, %s5108_s9  ;;  %p5112_p1 = scmp.lt.u32.totalorder %s5108_s9, %s7256_s14 }
 0x148   :  { %p5114_p2 = pnand %p5112_p1, %p5109_p0 }
 0x14a   :  { %5117 = shalt.err (!%p5114_p2)
}
 0x14b   :  { %s5118_s11 = scalar_lea.vmem %s186_s15, 4096  ;;  %p5123_p4 = scmp.lt.s32.totalorder %s186_s15, %s186_s15 }
 0x14c   :  { %p5119_p3 = scmp.ne.s32.totalorder %s186_s15, %s5118_s11  ;;  %p5124_p5 = scmp.lt.s32.totalorder %s5118_s11, %s5118_s11 }
 0x14e   :  { %p5125_p6 = por %p5124_p5, %p5123_p4 }
 0x150   :  { %p5126_p7 = pnand %p5125_p6, %p5119_p3 }
 0x152   :  { %5129 = shalt.err (!%p5126_p7)
}
 0x153   :  { %191 = dma.hbm_to_vmem [thread:$0]  %s7256_s14, 4096, %s186_s15, [#allocation24], %s5253_s17, %s5253_s17, %s5254_s27  }
 0x154   :  { %s5261_s10 = smov [#allocation28]   ;;  %s5262_s2 = smov [#allocation31]  }
 0x155   :  { %s208_s29 = sshll.u32 %s5261_s10, 4  ;;  %s235_s28 = sshll.u32 %s5262_s2, 4  ;;  %s209_s29 = int_to_ptr.vmem [resolvable:$true] %s208_s29  ;;  %s236_s28 = int_to_ptr.vmem [resolvable:$true] %s235_s28 }
 0x156   :  { %s5130_s8 = scalar_lea.hbm %s7258_s16, 16 }
 0x157   :  { %p5131_p8 = scmp.ne.s32.totalorder %s7258_s16, %s5130_s8  ;;  %p5134_p9 = scmp.lt.u32.totalorder %s5130_s8, %s7258_s16 }
 0x159   :  { %p5136_p10 = pnand %p5134_p9, %p5131_p8 }
 0x15b   :  { %5139 = shalt.err (!%p5136_p10)
}
 0x15c   :  { %s5140_s14 = scalar_lea.vmem %s209_s29, 16  ;;  %s5144_s15 = scalar_lea.vmem %s209_s29, 32 }
 0x15d   :  { %p5141_p11 = scmp.ne.s32.totalorder %s209_s29, %s5140_s14  ;;  %p5145_p12 = scmp.lt.s32.totalorder %s209_s29, %s209_s29 }
 0x15e   :  { %p5146_p13 = scmp.lt.s32.totalorder %s5144_s15, %s5140_s14 }
 0x160   :  { %p5147_p0 = por %p5146_p13, %p5145_p12 }
 0x162   :  { %p5148_p1 = pnand %p5147_p0, %p5141_p11 }
 0x164   :  { %5151 = shalt.err (!%p5148_p1)
}
 0x165   :  { %211 = dma.hbm_to_vmem [thread:$0]  %s7258_s16, 16, %s209_s29, [#allocation27]  }
 0x166   :  { %s5152_s11 = scalar_lea.hbm %s7264_s22, 4096 }
 0x167   :  { %p5153_p2 = scmp.ne.s32.totalorder %s7264_s22, %s5152_s11  ;;  %p5156_p3 = scmp.lt.u32.totalorder %s5152_s11, %s7264_s22 }
 0x169   :  { %p5158_p4 = pnand %p5156_p3, %p5153_p2 }
 0x16b   :  { %5161 = shalt.err (!%p5158_p4)
}
 0x16c   :  { %s5162_s3 = scalar_lea.vmem %s236_s28, 4096  ;;  %p5167_p6 = scmp.lt.s32.totalorder %s236_s28, %s236_s28 }
 0x16d   :  { %p5163_p5 = scmp.ne.s32.totalorder %s236_s28, %s5162_s3  ;;  %p5168_p7 = scmp.lt.s32.totalorder %s5162_s3, %s5162_s3 }
 0x16f   :  { %p5169_p8 = por %p5168_p7, %p5167_p6 }
 0x171   :  { %p5170_p9 = pnand %p5169_p8, %p5163_p5 }
 0x173   :  { %5173 = shalt.err (!%p5170_p9)
}
 0x174   :  { %241 = dma.hbm_to_vmem [thread:$0]  %s7264_s22, 4096, %s236_s28, [#allocation30], %s5253_s17, %s5253_s17, %s5254_s27  }
 0x175   :  { %5198 = dma.done.wait [#allocation7], 1024  }
 0x176   :  { %5199 = vsyncadd [#allocation7], 4294966272 }
 0x177   :  { %5200 = dma.done.wait [#allocation9], 12288  }
 0x178   :  { %5201 = vsyncadd [#allocation9], 4294955008 }
 0x179   :  { %5202 = dma.done.wait [#allocation12], 6160  }
 0x17a   :  { %5203 = vsyncadd [#allocation12], 4294961136 }
 0x17b   :  { %5204 = dma.done.wait [#allocation15], 24592  }
 0x17c   :  { %5205 = vsyncadd [#allocation15], 4294942704 }
 0x17d   :  { %5206 = dma.done.wait [#allocation18], 6240  }
 0x17e   :  { %5207 = vsyncadd [#allocation18], 4294961056 }
 0x17f   :  { %5208 = dma.done.wait [#allocation21], 6160  }
 0x180   :  { %5209 = vsyncadd [#allocation21], 4294961136 }
 0x181   :  { %5210 = dma.done.wait [#allocation24], 4112  }
 0x182   :  { %5211 = vsyncadd [#allocation24], 4294963184 }
 0x183   :  { %5212 = dma.done.wait [#allocation27], 32  }
 0x184   :  { %5213 = vsyncadd [#allocation27], 4294967264 }
 0x185   :  { %5214 = dma.done.wait [#allocation30], 4112  }
 0x186   :  { %5215 = vsyncadd [#allocation30], 4294963184  ;;  %v7287_v0 = vmov 0.0   ;;  %v5650_v1 = vld [vmem:[#allocation10] sm:$0xff]  ;;  %v5652_v2 = vld [vmem:[#allocation10 + $0x8] sm:$0xff]  ;;  %vm391_vm0 = vcmask 523264  }
 0x187   :  { %480 = vmatprep.mubr.f32.mxu0 %v7287_v0  ;;  %504 = vmatprep.mubr.f32.mxu1 %v7287_v0  ;;  %v5654_v3 = vld [vmem:[#allocation10 + $0x10] sm:$0xff]  ;;  %v5656_v4 = vld [vmem:[#allocation10 + $0x18] sm:$0xff]  ;;  %v5658_v5 = vld [vmem:[#allocation10 + $0x20] sm:$0xff]  ;;  %s7393_s27 = sld [smem:[#allocation108_spill]]  ;;  %s5976_s28 = smov 0  }
 0x188   :  { %v5660_v6 = vld [vmem:[#allocation10 + $0x28] sm:$0xff]  ;;  %v5662_v7 = vld [vmem:[#allocation10 + $0x30] sm:$0xff]  ;;  %v5664_v8 = vld [vmem:[#allocation10 + $0x38] sm:$0xff] }
 0x189   :  { %v5666_v9 = vld [vmem:[#allocation10 + $0x40] sm:$0xff]  ;;  %v5668_v10 = vld [vmem:[#allocation10 + $0x48] sm:$0xff]  ;;  %v5670_v11 = vld [vmem:[#allocation10 + $0x50] sm:$0xff] }
 0x18a   :  { %v5672_v12 = vld [vmem:[#allocation10 + $0x58] sm:$0xff]  ;;  %v5674_v13 = vld [vmem:[#allocation10 + $0x60] sm:$0xff]  ;;  %v5676_v14 = vld [vmem:[#allocation10 + $0x68] sm:$0xff] }
 0x18b   :  { %v5678_v15 = vld [vmem:[#allocation10 + $0x70] sm:$0xff]  ;;  %v5680_v16 = vld [vmem:[#allocation10 + $0x78] sm:$0xff]  ;;  %v5682_v17 = vld [vmem:[#allocation10 + $0x80] sm:$0xff] }
 0x18c   :  { %v5684_v18 = vld [vmem:[#allocation10 + $0x88] sm:$0xff]  ;;  %v5686_v19 = vld [vmem:[#allocation10 + $0x90] sm:$0xff]  ;;  %v5688_v20 = vld [vmem:[#allocation10 + $0x98] sm:$0xff] }
 0x18d   :  { %v5690_v21 = vld [vmem:[#allocation10 + $0xa0] sm:$0xff]  ;;  %v5692_v22 = vld [vmem:[#allocation10 + $0xa8] sm:$0xff]  ;;  %v5694_v23 = vld [vmem:[#allocation10 + $0xb0] sm:$0xff] }
 0x18e   :  { %v5696_v24 = vld [vmem:[#allocation10 + $0xb8] sm:$0xff]  ;;  %v5698_v25 = vld [vmem:[#allocation10 + $0xc0] sm:$0xff]  ;;  %v5700_v26 = vld [vmem:[#allocation10 + $0xc8] sm:$0xff] }
 0x18f   :  { %v5702_v27 = vld [vmem:[#allocation10 + $0xd0] sm:$0xff]  ;;  %v5704_v28 = vld [vmem:[#allocation10 + $0xd8] sm:$0xff]  ;;  %v5706_v29 = vld [vmem:[#allocation10 + $0xe0] sm:$0xff] }
 0x190   :  { %v5708_v30 = vld [vmem:[#allocation10 + $0xe8] sm:$0xff]  ;;  %v5710_v31 = vld [vmem:[#allocation10 + $0xf0] sm:$0xff]  ;;  %v5712_v32 = vld [vmem:[#allocation10 + $0xf8] sm:$0xff] }
 0x191   :  { %v5714_v33 = vld [vmem:[#allocation10 + $0x100] sm:$0xff]  ;;  %v5716_v34 = vld [vmem:[#allocation10 + $0x108] sm:$0xff]  ;;  %v5718_v35 = vld [vmem:[#allocation10 + $0x110] sm:$0xff] }
 0x192   :  { %7329 = vst [vmem:[#allocation41_spill] sm:$0xff] %v5714_v33  ;;  %v5720_v36 = vld [vmem:[#allocation10 + $0x118] sm:$0xff]  ;;  %v5722_v37 = vld [vmem:[#allocation10 + $0x120] sm:$0xff]  ;;  %v5724_v38 = vld [vmem:[#allocation10 + $0x128] sm:$0xff] }
 0x193   :  { %7330 = vst [vmem:[#allocation42_spill] sm:$0xff] %v5720_v36  ;;  %7331 = vst [vmem:[#allocation43_spill] sm:$0xff] %v5722_v37  ;;  %v5726_v39 = vld [vmem:[#allocation10 + $0x130] sm:$0xff]  ;;  %v5728_v40 = vld [vmem:[#allocation10 + $0x138] sm:$0xff] }
 0x194   :  { %7332 = vst [vmem:[#allocation44_spill] sm:$0xff] %v5726_v39  ;;  %7333 = vst [vmem:[#allocation45_spill] sm:$0xff] %v5728_v40  ;;  %v5730_v41 = vld [vmem:[#allocation10 + $0x140] sm:$0xff]  ;;  %v5732_v42 = vld [vmem:[#allocation10 + $0x148] sm:$0xff] }
 0x195   :  { %7334 = vst [vmem:[#allocation46_spill] sm:$0xff] %v5732_v42  ;;  %v5734_v43 = vld [vmem:[#allocation10 + $0x150] sm:$0xff]  ;;  %v5736_v44 = vld [vmem:[#allocation10 + $0x158] sm:$0xff]  ;;  %v5738_v45 = vld [vmem:[#allocation10 + $0x160] sm:$0xff] }
 0x196   :  { %7335 = vst [vmem:[#allocation47_spill] sm:$0xff] %v5734_v43  ;;  %7336 = vst [vmem:[#allocation48_spill] sm:$0xff] %v5736_v44  ;;  %v5740_v46 = vld [vmem:[#allocation10 + $0x168] sm:$0xff]  ;;  %v5742_v47 = vld [vmem:[#allocation10 + $0x170] sm:$0xff] }
 0x197   :  { %7337 = vst [vmem:[#allocation49_spill] sm:$0xff] %v5738_v45  ;;  %7338 = vst [vmem:[#allocation50_spill] sm:$0xff] %v5740_v46  ;;  %v5744_v48 = vld [vmem:[#allocation10 + $0x178] sm:$0xff]  ;;  %v5746_v49 = vld [vmem:[#allocation11] sm:$0xff] }
 0x198   :  { %7339 = vst [vmem:[#allocation51_spill] sm:$0xff] %v5742_v47  ;;  %7340 = vst [vmem:[#allocation52_spill] sm:$0xff] %v5744_v48  ;;  %v5748_v50 = vld [vmem:[#allocation11 + $0x8] sm:$0xff]  ;;  %v5750_v51 = vld [vmem:[#allocation11 + $0x10] sm:$0xff] }
 0x199   :  { %7341 = vst [vmem:[#allocation53_spill] sm:$0xff] %v5746_v49  ;;  %7342 = vst [vmem:[#allocation54_spill] sm:$0xff] %v5748_v50  ;;  %v5752_v52 = vld [vmem:[#allocation11 + $0x18] sm:$0xff]  ;;  %v5754_v53 = vld [vmem:[#allocation11 + $0x20] sm:$0xff] }
 0x19a   :  { %7343 = vst [vmem:[#allocation55_spill] sm:$0xff] %v5750_v51  ;;  %7344 = vst [vmem:[#allocation56_spill] sm:$0xff] %v5752_v52  ;;  %v5756_v54 = vld [vmem:[#allocation11 + $0x28] sm:$0xff]  ;;  %v5758_v55 = vld [vmem:[#allocation11 + $0x30] sm:$0xff] }
 0x19b   :  { %7345 = vst [vmem:[#allocation57_spill] sm:$0xff] %v5754_v53  ;;  %7346 = vst [vmem:[#allocation58_spill] sm:$0xff] %v5756_v54  ;;  %v5760_v56 = vld [vmem:[#allocation11 + $0x38] sm:$0xff]  ;;  %v5762_v57 = vld [vmem:[#allocation11 + $0x40] sm:$0xff] }
 0x19c   :  { %7347 = vst [vmem:[#allocation59_spill] sm:$0xff] %v5758_v55  ;;  %7348 = vst [vmem:[#allocation60_spill] sm:$0xff] %v5760_v56  ;;  %v5764_v58 = vld [vmem:[#allocation11 + $0x48] sm:$0xff]  ;;  %v5766_v59 = vld [vmem:[#allocation11 + $0x50] sm:$0xff] }
 0x19d   :  { %7349 = vst [vmem:[#allocation61_spill] sm:$0xff] %v5762_v57  ;;  %7350 = vst [vmem:[#allocation62_spill] sm:$0xff] %v5764_v58  ;;  %v5768_v60 = vld [vmem:[#allocation11 + $0x58] sm:$0xff]  ;;  %v5770_v61 = vld [vmem:[#allocation11 + $0x60] sm:$0xff] }
 0x19e   :  { %7351 = vst [vmem:[#allocation63_spill] sm:$0xff] %v5766_v59  ;;  %7352 = vst [vmem:[#allocation64_spill] sm:$0xff] %v5768_v60  ;;  %v5772_v62 = vld [vmem:[#allocation11 + $0x68] sm:$0xff]  ;;  %v5774_v63 = vld [vmem:[#allocation11 + $0x70] sm:$0xff] }
 0x19f   :  { %7353 = vst [vmem:[#allocation65_spill] sm:$0xff] %v5770_v61  ;;  %7354 = vst [vmem:[#allocation66_spill] sm:$0xff] %v5772_v62  ;;  %v5776_v0 = vld [vmem:[#allocation11 + $0x78] sm:$0xff]  ;;  %v5778_v54 = vld [vmem:[#allocation11 + $0x80] sm:$0xff] }
 0x1a0   :  { %7355 = vst [vmem:[#allocation67_spill] sm:$0xff] %v5774_v63  ;;  %7356 = vst [vmem:[#allocation68_spill] sm:$0xff] %v5776_v0  ;;  %v5780_v55 = vld [vmem:[#allocation11 + $0x88] sm:$0xff]  ;;  %v5782_v51 = vld [vmem:[#allocation11 + $0x90] sm:$0xff] }
 0x1a1   :  { %7357 = vst [vmem:[#allocation69_spill] sm:$0xff] %v5778_v54  ;;  %7358 = vst [vmem:[#allocation70_spill] sm:$0xff] %v5780_v55  ;;  %v5784_v57 = vld [vmem:[#allocation11 + $0x98] sm:$0xff]  ;;  %v5786_v58 = vld [vmem:[#allocation11 + $0xa0] sm:$0xff] }
 0x1a2   :  { %7359 = vst [vmem:[#allocation71_spill] sm:$0xff] %v5782_v51  ;;  %7360 = vst [vmem:[#allocation72_spill] sm:$0xff] %v5784_v57  ;;  %v5788_v59 = vld [vmem:[#allocation11 + $0xa8] sm:$0xff]  ;;  %v5790_v60 = vld [vmem:[#allocation11 + $0xb0] sm:$0xff] }
 0x1a3   :  { %7361 = vst [vmem:[#allocation73_spill] sm:$0xff] %v5786_v58  ;;  %7362 = vst [vmem:[#allocation74_spill] sm:$0xff] %v5788_v59  ;;  %v5792_v61 = vld [vmem:[#allocation11 + $0xb8] sm:$0xff]  ;;  %v5794_v62 = vld [vmem:[#allocation11 + $0xc0] sm:$0xff] }
 0x1a4   :  { %7363 = vst [vmem:[#allocation75_spill] sm:$0xff] %v5790_v60  ;;  %7364 = vst [vmem:[#allocation76_spill] sm:$0xff] %v5792_v61  ;;  %v5796_v63 = vld [vmem:[#allocation11 + $0xc8] sm:$0xff]  ;;  %v5798_v0 = vld [vmem:[#allocation11 + $0xd0] sm:$0xff] }
 0x1a5   :  { %7365 = vst [vmem:[#allocation77_spill] sm:$0xff] %v5794_v62  ;;  %7366 = vst [vmem:[#allocation78_spill] sm:$0xff] %v5796_v63  ;;  %v5800_v54 = vld [vmem:[#allocation11 + $0xd8] sm:$0xff]  ;;  %v5802_v55 = vld [vmem:[#allocation11 + $0xe0] sm:$0xff] }
 0x1a6   :  { %7367 = vst [vmem:[#allocation79_spill] sm:$0xff] %v5798_v0  ;;  %7368 = vst [vmem:[#allocation80_spill] sm:$0xff] %v5800_v54  ;;  %v5804_v51 = vld [vmem:[#allocation11 + $0xe8] sm:$0xff]  ;;  %v5806_v57 = vld [vmem:[#allocation11 + $0xf0] sm:$0xff] }
 0x1a7   :  { %7369 = vst [vmem:[#allocation81_spill] sm:$0xff] %v5802_v55  ;;  %7370 = vst [vmem:[#allocation82_spill] sm:$0xff] %v5804_v51  ;;  %v5808_v58 = vld [vmem:[#allocation11 + $0xf8] sm:$0xff]  ;;  %v5810_v59 = vld [vmem:[#allocation11 + $0x100] sm:$0xff] }
 0x1a8   :  { %7371 = vst [vmem:[#allocation83_spill] sm:$0xff] %v5806_v57  ;;  %7372 = vst [vmem:[#allocation84_spill] sm:$0xff] %v5808_v58  ;;  %v5812_v60 = vld [vmem:[#allocation11 + $0x108] sm:$0xff]  ;;  %v5814_v61 = vld [vmem:[#allocation11 + $0x110] sm:$0xff] }
 0x1a9   :  { %7373 = vst [vmem:[#allocation85_spill] sm:$0xff] %v5810_v59  ;;  %7374 = vst [vmem:[#allocation86_spill] sm:$0xff] %v5812_v60  ;;  %v5816_v62 = vld [vmem:[#allocation11 + $0x118] sm:$0xff]  ;;  %v5818_v63 = vld [vmem:[#allocation11 + $0x120] sm:$0xff] }
 0x1aa   :  { %7375 = vst [vmem:[#allocation87_spill] sm:$0xff] %v5814_v61  ;;  %7376 = vst [vmem:[#allocation88_spill] sm:$0xff] %v5816_v62  ;;  %v5820_v0 = vld [vmem:[#allocation11 + $0x128] sm:$0xff]  ;;  %v5822_v54 = vld [vmem:[#allocation11 + $0x130] sm:$0xff] }
 0x1ab   :  { %7377 = vst [vmem:[#allocation89_spill] sm:$0xff] %v5818_v63  ;;  %7378 = vst [vmem:[#allocation90_spill] sm:$0xff] %v5820_v0  ;;  %v5824_v55 = vld [vmem:[#allocation11 + $0x138] sm:$0xff]  ;;  %v5826_v51 = vld [vmem:[#allocation11 + $0x140] sm:$0xff] }
 0x1ac   :  { %7379 = vst [vmem:[#allocation91_spill] sm:$0xff] %v5822_v54  ;;  %7380 = vst [vmem:[#allocation92_spill] sm:$0xff] %v5824_v55  ;;  %v5828_v57 = vld [vmem:[#allocation11 + $0x148] sm:$0xff]  ;;  %v5830_v58 = vld [vmem:[#allocation11 + $0x150] sm:$0xff] }
 0x1ad   :  { %7381 = vst [vmem:[#allocation93_spill] sm:$0xff] %v5826_v51  ;;  %7382 = vst [vmem:[#allocation94_spill] sm:$0xff] %v5828_v57  ;;  %v5832_v59 = vld [vmem:[#allocation11 + $0x158] sm:$0xff]  ;;  %v5834_v60 = vld [vmem:[#allocation11 + $0x160] sm:$0xff] }
 0x1ae   :  { %7383 = vst [vmem:[#allocation95_spill] sm:$0xff] %v5830_v58  ;;  %7384 = vst [vmem:[#allocation96_spill] sm:$0xff] %v5832_v59  ;;  %v5836_v61 = vld [vmem:[#allocation11 + $0x168] sm:$0xff]  ;;  %v5838_v62 = vld [vmem:[#allocation11 + $0x170] sm:$0xff] }
 0x1af   :  { %7385 = vst [vmem:[#allocation97_spill] sm:$0xff] %v5834_v60  ;;  %7386 = vst [vmem:[#allocation98_spill] sm:$0xff] %v5836_v61  ;;  %v5840_v63 = vld [vmem:[#allocation11 + $0x178] sm:$0xff]  ;;  %v5842_v0 = vld [vmem:[#allocation13] ss:$0 sm:$0xff] }
 0x1b0   :  { %7387 = vst [vmem:[#allocation99_spill] sm:$0xff] %v5838_v62  ;;  %7388 = vst [vmem:[#allocation100_spill] sm:$0xff] %v5840_v63  ;;  %v5844_v54 = vld [vmem:[#allocation14] ss:$0 sm:$0xff]  ;;  %v312_v55 = vld [vmem:[#allocation8 + $0x8] sm:$0xff] }
 0x1b1   :  { %7389 = vst [vmem:[#allocation101_spill] sm:$0xff] %v5842_v0  ;;  %7390 = vst [vmem:[#allocation102_spill] sm:$0xff] %v5844_v54  ;;  %v318_v51 = vld [vmem:[#allocation8 + $0x38] sm:$0xff]  ;;  %v311_v56 = vld [vmem:[#allocation8] sm:$0xff] }
 0x1b2   :  { %v317_v57 = vld [vmem:[#allocation8 + $0x30] sm:$0xff]  ;;  %v3982_v52 = vpack.c.bf16 %v318_v51, %v312_v55  ;;  %v324_v49 = vld [vmem:[#allocation8 + $0x68] sm:$0xff]  ;;  %v330_v59 = vld [vmem:[#allocation8 + $0x98] sm:$0xff] }
 0x1b3   :  { %v3984_v58 = vpack.c.bf16 %v317_v57, %v311_v56  ;;  %v323_v48 = vld [vmem:[#allocation8 + $0x60] sm:$0xff]  ;;  %v3986_v60 = vpack.c.bf16 %v330_v59, %v324_v49  ;;  %v329_v45 = vld [vmem:[#allocation8 + $0x90] sm:$0xff]  ;;  %v336_v61 = vld [vmem:[#allocation8 + $0xc8] sm:$0xff] }
 0x1b4   :  { %v342_v53 = vld [vmem:[#allocation8 + $0xf8] sm:$0xff]  ;;  %3983 = vmatprep.subr.bf16.mxu0 %v3982_v52  ;;  %4574 = vmatprep.subr.bf16.mxu1 %v3982_v52  ;;  %v3988_v0 = vpack.c.bf16 %v329_v45, %v323_v48  ;;  %v335_v63 = vld [vmem:[#allocation8 + $0xc0] sm:$0xff]  ;;  %v341_v62 = vld [vmem:[#allocation8 + $0xf0] sm:$0xff] }
 0x1b5   :  { %3985 = vmatpush1.bf16.msra.mxu0 %v3984_v58  ;;  %4578 = vmatpush1.bf16.msra.mxu1 %v3984_v58  ;;  %v3990_v54 = vpack.c.bf16 %v342_v53, %v336_v61  ;;  %v348_v50 = vld [vmem:[#allocation8 + $0x128] sm:$0xff]  ;;  %v354_v51 = vld [vmem:[#allocation8 + $0x158] sm:$0xff]  ;;  %v3992_v55 = vpack.c.bf16 %v341_v62, %v335_v63  ;;  %v347_v56 = vld [vmem:[#allocation8 + $0x120] sm:$0xff] }
 0x1b6   :  { %3987 = vmatprep.subr.bf16.mxu0 %v3986_v60  ;;  %4575 = vmatprep.subr.bf16.mxu1 %v3986_v60  ;;  %v3994_v49 = vpack.c.bf16 %v354_v51, %v348_v50  ;;  %v353_v57 = vld [vmem:[#allocation8 + $0x150] sm:$0xff]  ;;  %v314_v59 = vld [vmem:[#allocation8 + $0x18] sm:$0xff]  ;;  %v320_v52 = vld [vmem:[#allocation8 + $0x48] sm:$0xff] }
 0x1b7   :  { %v316_v46 = vld [vmem:[#allocation8 + $0x28] sm:$0xff]  ;;  %v322_v58 = vld [vmem:[#allocation8 + $0x58] sm:$0xff]  ;;  %v3996_v45 = vpack.c.bf16 %v353_v57, %v347_v56  ;;  %v313_v48 = vld [vmem:[#allocation8 + $0x10] sm:$0xff]  ;;  %v3998_v53 = vpack.c.bf16 %v320_v52, %v314_v59 }
 0x1b8   :  { %v4014_v60 = vpack.c.bf16 %v322_v58, %v316_v46  ;;  %v319_v61 = vld [vmem:[#allocation8 + $0x40] sm:$0xff]  ;;  %v321_v62 = vld [vmem:[#allocation8 + $0x50] sm:$0xff]  ;;  %v326_v63 = vld [vmem:[#allocation8 + $0x78] sm:$0xff] }
 0x1b9   :  { %3989 = vmatpush1.bf16.msra.mxu0 %v3988_v0  ;;  %4579 = vmatpush1.bf16.msra.mxu1 %v3988_v0  ;;  %v315_v0 = vld [vmem:[#allocation8 + $0x20] sm:$0xff]  ;;  %v328_v50 = vld [vmem:[#allocation8 + $0x88] sm:$0xff]  ;;  %v334_v51 = vld [vmem:[#allocation8 + $0xb8] sm:$0xff] }
 0x1ba   :  { %3991 = vmatprep.subr.bf16.mxu0 %v3990_v54  ;;  %4576 = vmatprep.subr.bf16.mxu1 %v3990_v54  ;;  %v332_v54 = vld [vmem:[#allocation8 + $0xa8] sm:$0xff]  ;;  %v5846_v43 = vld [vmem:[#allocation6] sm:$0xff]  ;;  %v4016_v56 = vpack.c.bf16 %v321_v62, %v315_v0  ;;  %v325_v57 = vld [vmem:[#allocation8 + $0x70] sm:$0xff]  ;;  %v4018_v58 = vpack.c.bf16 %v334_v51, %v328_v50  ;;  %v7391_v62 = vmov 0.0  }
 0x1bb   :  { %v5848_v42 = vld [vmem:[#allocation6 + $0x20] sm:$0xff]  ;;  %v333_v59 = vld [vmem:[#allocation8 + $0xb0] sm:$0xff]  ;;  %v4002_v52 = vpack.c.bf16 %v332_v54, %v326_v63  ;;  %v338_v39 = vld [vmem:[#allocation8 + $0xd8] sm:$0xff] }
 0x1bc   :  { %v331_v46 = vld [vmem:[#allocation8 + $0xa0] sm:$0xff]  ;;  %v340_v47 = vld [vmem:[#allocation8 + $0xe8] sm:$0xff]  ;;  %v346_v44 = vld [vmem:[#allocation8 + $0x118] sm:$0xff] }
 0x1bd   :  { %3993 = vmatpush1.bf16.msra.mxu0 %v3992_v55  ;;  %4580 = vmatpush1.bf16.msra.mxu1 %v3992_v55  ;;  %v4000_v55 = vpack.c.bf16 %v319_v61, %v313_v48  ;;  %v304_v48 = vld [vmem:[#allocation6 + $0x8] sm:$0xff]  ;;  %v337_v0 = vld [vmem:[#allocation8 + $0xd0] sm:$0xff]  ;;  %v343_v63 = vld [vmem:[#allocation8 + $0x100] sm:$0xff]  ;;  %v4022_v40 = vpack.c.bf16 %v346_v44, %v340_v47 }
 0x1be   :  { %3995 = vmatprep.subr.bf16.mxu0 %v3994_v49  ;;  %4577 = vmatprep.subr.bf16.mxu1 %v3994_v49  ;;  %v327_v49 = vld [vmem:[#allocation8 + $0x80] sm:$0xff]  ;;  %v345_v50 = vld [vmem:[#allocation8 + $0x110] sm:$0xff]  ;;  %v350_v37 = vld [vmem:[#allocation8 + $0x138] sm:$0xff] }
 0x1bf   :  { %v4020_v61 = vpack.c.bf16 %v333_v59, %v327_v49  ;;  %v339_v54 = vld [vmem:[#allocation8 + $0xe0] sm:$0xff]  ;;  %v309_v49 = vld [vmem:[#allocation6 + $0x30] sm:$0xff]  ;;  %v4008_v59 = vpack.c.bf16 %v343_v63, %v337_v0 }
 0x1c0   :  { %v4024_v36 = vpack.c.bf16 %v345_v50, %v339_v54  ;;  %v349_v33 = vld [vmem:[#allocation8 + $0x130] sm:$0xff]  ;;  %v351_v44 = vld [vmem:[#allocation8 + $0x140] sm:$0xff] }
 0x1c1   :  { %3997 = vmatpush1.bf16.msra.mxu0 %v3996_v45  ;;  %4581 = vmatpush1.bf16.msra.mxu1 %v3996_v45  ;;  %v344_v45 = vld [vmem:[#allocation8 + $0x108] sm:$0xff]  ;;  %v357_v47 = vld [vmem:[#allocation8 + $0x170] sm:$0xff] }
 0x1c2   :  { %3999 = vmatprep.subr.bf16.mxu1 %v3998_v53  ;;  %4015 = vmatprep.subr.bf16.mxu0 %v4014_v60  ;;  %v5854_v53 = vld [vmem:[#allocation6 + $0x28] sm:$0xff]  ;;  %v4004_v60 = vpack.c.bf16 %v331_v46, %v325_v57  ;;  %v4006_v51 = vpack.c.bf16 %v344_v45, %v338_v39  ;;  %v358_v57 = vld [vmem:[#allocation8 + $0x178] sm:$0xff]  ;;  %v305_v46 = vld [vmem:[#allocation6 + $0x10] sm:$0xff]  ;;  %v4028_v0 = vpack.c.bf16 %v357_v47, %v351_v44 }
 0x1c3   :  { %v355_v39 = vld [vmem:[#allocation8 + $0x160] sm:$0xff]  ;;  %v306_v45 = vld [vmem:[#allocation6 + $0x18] sm:$0xff] }
 0x1c4   :  { %3527 = vmatmul.mubr.msk.f32.vlgmr.msra.gmra.mrb[0].mxu0 %vm391_vm0, %v5846_v43  ;;  %3531 = vmatmul.mubr.msk.f32.vlgmr.msra.gmra.mrb[0].mxu1 %vm391_vm0, %v5848_v42 }
 0x1c5   :  { %4001 = vmatpush1.bf16.msra.mxu1 %v4000_v55  ;;  %4017 = vmatpush1.bf16.msra.mxu0 %v4016_v56  ;;  %v356_v55 = vld [vmem:[#allocation8 + $0x168] sm:$0xff] }
 0x1c6   :  { %486 = vmatprep.mubr.f32.mxu0 %v7391_v62  ;;  %510 = vmatprep.mubr.f32.mxu1 %v7391_v62  ;;  %v352_v56 = vld [vmem:[#allocation8 + $0x148] sm:$0xff] }
 0x1c7   :  { %4003 = vmatprep.subr.bf16.mxu1 %v4002_v52  ;;  %4019 = vmatprep.subr.bf16.mxu0 %v4018_v58  ;;  %v4010_v52 = vpack.c.bf16 %v356_v55, %v350_v37  ;;  %v4026_v58 = vpack.c.bf16 %v358_v57, %v352_v56 }
 0x1c8   :  { %3528 = vmatmul.mubr.msk.f32.gmra.mrb[2].mxu0 %vm391_vm0, %v304_v48  ;;  %3532 = vmatmul.mubr.msk.f32.gmra.mrb[2].mxu1 %vm391_vm0, %v5854_v53 }
 0x1c9   :  { %4005 = vmatpush1.bf16.msra.mxu1 %v4004_v60  ;;  %4021 = vmatpush1.bf16.msra.mxu0 %v4020_v61  ;;  %v310_v60 = vld [vmem:[#allocation6 + $0x38] sm:$0xff]  ;;  %v4012_v61 = vpack.c.bf16 %v355_v39, %v349_v33  ;;  %v361_v33 = vlaneseq }
 0x1ca   :  { %492 = vmatprep.mubr.f32.mxu0 %v7391_v62  ;;  %516 = vmatprep.mubr.f32.mxu1 %v7391_v62 }
 0x1cb   :  { %4007 = vmatprep.subr.bf16.mxu1 %v4006_v51  ;;  %4023 = vmatprep.subr.bf16.mxu0 %v4022_v40  ;;  %v359_v40 = vld [vmem:[%s7393_s27] sm:$0x3f] }
 0x1cc   :  { %3529 = vmatmul.mubr.msk.f32.gmra.mrb[4].mxu0 %vm391_vm0, %v305_v46  ;;  %3533 = vmatmul.mubr.msk.f32.gmra.mrb[4].mxu1 %vm391_vm0, %v309_v49 }
 0x1cd   :  { %4009 = vmatpush1.bf16.msra.mxu1 %v4008_v59  ;;  %4025 = vmatpush1.bf16.msra.mxu0 %v4024_v36  ;;  %v5907_v36 = vshrl.u32 %v361_v33, 7 }
 0x1ce   :  { %498 = vmatprep.mubr.f32.mxu0 %v7391_v62  ;;  %522 = vmatprep.mubr.f32.mxu1 %v7391_v62 }
 0x1cf   :  { %4011 = vmatprep.subr.bf16.mxu1 %v4010_v52  ;;  %4027 = vmatprep.subr.bf16.mxu0 %v4026_v58  ;;  %v5910_v37 = vsub.s32 0, %v5907_v36 }
 0x1d0   :  { %3530 = vmatmul.mubr.msk.f32.gmra.mrb[6].mxu0 %vm391_vm0, %v306_v45  ;;  %3534 = vmatmul.mubr.msk.f32.gmra.mrb[6].mxu1 %vm391_vm0, %v310_v60 }
 0x1d1   :  { %4013 = vmatpush1.bf16.msra.mxu1 %v4012_v61  ;;  %4029 = vmatpush1.bf16.msra.mxu0 %v4028_v0  ;;  %7392 = vst [vmem:[#allocation103_spill] sm:$0xff] %v5910_v37 }
 0x1d2   :  { %593 = vmatprep.mubr.f32.mxu1 %v7391_v62  ;;  %706 = vmatprep.mubr.f32.mxu0 %v7391_v62 }
 0x1d4   :  { %3535 = vmatmul.mubr.msk.f32.vlgmr.msra.gmra.mrb[8].mxu1 %vm391_vm0, %v5846_v43  ;;  %3543 = vmatmul.mubr.msk.f32.vlgmr.msra.gmra.mrb[8].mxu0 %vm391_vm0, %v5846_v43  ;;  %v364_v43 = vrot.slane %v359_v40, %v5910_v37 }
 0x1d5   :  { %599 = vmatprep.mubr.f32.mxu1 %v7391_v62  ;;  %712 = vmatprep.mubr.f32.mxu0 %v7391_v62 }
 0x1d8   :  { %3536 = vmatmul.mubr.msk.f32.gmra.mrb[10].mxu1 %vm391_vm0, %v304_v48  ;;  %3544 = vmatmul.mubr.msk.f32.gmra.mrb[10].mxu0 %vm391_vm0, %v304_v48 }
 0x1d9   :  { %605 = vmatprep.mubr.f32.mxu1 %v7391_v62  ;;  %718 = vmatprep.mubr.f32.mxu0 %v7391_v62 }
 0x1dc   :  { %3537 = vmatmul.mubr.msk.f32.gmra.mrb[12].mxu1 %vm391_vm0, %v305_v46  ;;  %3545 = vmatmul.mubr.msk.f32.gmra.mrb[12].mxu0 %vm391_vm0, %v305_v46 }
 0x1dd   :  { %611 = vmatprep.mubr.f32.mxu1 %v7391_v62  ;;  %724 = vmatprep.mubr.f32.mxu0 %v7391_v62 }
 0x1e0   :  { %3538 = vmatmul.mubr.msk.f32.gmra.mrb[14].mxu1 %vm391_vm0, %v306_v45  ;;  %3546 = vmatmul.mubr.msk.f32.gmra.mrb[14].mxu0 %vm391_vm0, %v306_v45 }
 0x1e1   :  { %617 = vmatprep.mubr.f32.mxu1 %v7391_v62  ;;  %730 = vmatprep.mubr.f32.mxu0 %v7391_v62 }
 0x1e4   :  { %3539 = vmatmul.mubr.msk.f32.gmra.mrb[16].mxu1 %vm391_vm0, %v5848_v42  ;;  %3547 = vmatmul.mubr.msk.f32.gmra.mrb[16].mxu0 %vm391_vm0, %v5848_v42  ;;  %v5916_v42 = vsub.s32 1, %v5907_v36 }
 0x1e5   :  { %623 = vmatprep.mubr.f32.mxu1 %v7391_v62  ;;  %736 = vmatprep.mubr.f32.mxu0 %v7391_v62 }
 0x1e6   :  { %7394 = vst [vmem:[#allocation104_spill] sm:$0xff] %v5916_v42  ;;  %v368_v48 = vrot.slane %v359_v40, %v5916_v42 }
 0x1e8   :  { %3540 = vmatmul.mubr.msk.f32.gmra.mrb[18].mxu1 %vm391_vm0, %v5854_v53  ;;  %3548 = vmatmul.mubr.msk.f32.gmra.mrb[18].mxu0 %vm391_vm0, %v5854_v53 }
 0x1e9   :  { %629 = vmatprep.mubr.f32.mxu1 %v7391_v62  ;;  %742 = vmatprep.mubr.f32.mxu0 %v7391_v62 }
 0x1ec   :  { %3541 = vmatmul.mubr.msk.f32.gmra.mrb[20].mxu1 %vm391_vm0, %v309_v49  ;;  %3549 = vmatmul.mubr.msk.f32.gmra.mrb[20].mxu0 %vm391_vm0, %v309_v49 }
 0x1ed   :  { %635 = vmatprep.mubr.f32.mxu1 %v7391_v62  ;;  %748 = vmatprep.mubr.f32.mxu0 %v7391_v62 }
 0x1f0   :  { %3542 = vmatmul.mubr.msk.f32.gmra.mrb[22].mxu1 %vm391_vm0, %v310_v60  ;;  %3550 = vmatmul.mubr.msk.f32.gmra.mrb[22].mxu0 %vm391_vm0, %v310_v60 }
 0x297   :  { %v482_v53 = vpop.f32.mrb[0].mxu0  ;;  %v506_v62 = vpop.f32.mrb[0].mxu1 }
 0x298   :  { %v483_v63 = vadd.f32 %v482_v53, %v364_v43  ;;  %v507_v54 = vadd.f32 %v506_v62, %v364_v43  ;;  %v484_v50 = vpop.f32.mrb[1].mxu0  ;;  %v508_v51 = vpop.f32.mrb[1].mxu1  ;;  %v7293_v53 = vsub.s32 2, %v5907_v36  ;;  %v7291_v62 = vsub.s32 4, %v5907_v36 }
 0x299   :  { %v485_v55 = vadd.f32 %v484_v50, %v368_v48  ;;  %v509_v56 = vadd.f32 %v508_v51, %v368_v48  ;;  %v7292_v50 = vsub.s32 3, %v5907_v36  ;;  %v7290_v51 = vsub.s32 5, %v5907_v36 }
 0x29a   :  { %755 = vst [vmem:[#allocation2] sm:$0xff] %v483_v63  ;;  %779 = vst [vmem:[#allocation2 + $0xc0] sm:$0xff] %v507_v54 }
 0x29b   :  { %756 = vst [vmem:[#allocation2 + $0x8] sm:$0xff] %v485_v55  ;;  %780 = vst [vmem:[#allocation2 + $0xc8] sm:$0xff] %v509_v56  ;;  %v488_v57 = vpop.f32.mrb[2].mxu0  ;;  %v512_v46 = vpop.f32.mrb[2].mxu1 }
 0x29c   :  { %v489_v49 = vadd.f32 %v488_v57, %v364_v43  ;;  %v513_v59 = vadd.f32 %v512_v46, %v364_v43  ;;  %v490_v39 = vpop.f32.mrb[3].mxu0  ;;  %v514_v44 = vpop.f32.mrb[3].mxu1 }
 0x29d   :  { %v491_v47 = vadd.f32 %v490_v39, %v368_v48  ;;  %v515_v52 = vadd.f32 %v514_v44, %v368_v48  ;;  %v5926_v39 = vrot.slane %v359_v40, %v7293_v53  ;;  %v5930_v44 = vrot.slane %v359_v40, %v7291_v62 }
 0x29e   :  { %761 = vst [vmem:[#allocation2 + $0x30] sm:$0xff] %v489_v49  ;;  %785 = vst [vmem:[#allocation2 + $0xf0] sm:$0xff] %v513_v59 }
 0x29f   :  { %762 = vst [vmem:[#allocation2 + $0x38] sm:$0xff] %v491_v47  ;;  %786 = vst [vmem:[#allocation2 + $0xf8] sm:$0xff] %v515_v52  ;;  %v494_v58 = vpop.f32.mrb[4].mxu0  ;;  %v518_v45 = vpop.f32.mrb[4].mxu1 }
 0x2a0   :  { %v495_v60 = vadd.f32 %v494_v58, %v364_v43  ;;  %v519_v61 = vadd.f32 %v518_v45, %v364_v43  ;;  %v496_v0 = vpop.f32.mrb[5].mxu0  ;;  %v520_v33 = vpop.f32.mrb[5].mxu1  ;;  %v5934_v58 = vrot.slane %v359_v40, %v7292_v50  ;;  %v5938_v45 = vrot.slane %v359_v40, %v7290_v51 }
 0x2a1   :  { %v497_v63 = vadd.f32 %v496_v0, %v368_v48  ;;  %v521_v54 = vadd.f32 %v520_v33, %v368_v48 }
 0x2a2   :  { %767 = vst [vmem:[#allocation2 + $0x60] sm:$0xff] %v495_v60  ;;  %791 = vst [vmem:[#allocation2 + $0x120] sm:$0xff] %v519_v61 }
 0x2a3   :  { %768 = vst [vmem:[#allocation2 + $0x68] sm:$0xff] %v497_v63  ;;  %792 = vst [vmem:[#allocation2 + $0x128] sm:$0xff] %v521_v54  ;;  %v500_v55 = vpop.f32.mrb[6].mxu0  ;;  %v524_v56 = vpop.f32.mrb[6].mxu1 }
 0x2a4   :  { %v501_v57 = vadd.f32 %v500_v55, %v364_v43  ;;  %v525_v46 = vadd.f32 %v524_v56, %v364_v43  ;;  %v502_v49 = vpop.f32.mrb[7].mxu0  ;;  %v526_v59 = vpop.f32.mrb[7].mxu1 }
 0x2a5   :  { %v503_v47 = vadd.f32 %v502_v49, %v368_v48  ;;  %v527_v52 = vadd.f32 %v526_v59, %v368_v48 }
 0x2a6   :  { %773 = vst [vmem:[#allocation2 + $0x90] sm:$0xff] %v501_v57  ;;  %797 = vst [vmem:[#allocation2 + $0x150] sm:$0xff] %v525_v46 }
 0x2a7   :  { %774 = vst [vmem:[#allocation2 + $0x98] sm:$0xff] %v503_v47  ;;  %798 = vst [vmem:[#allocation2 + $0x158] sm:$0xff] %v527_v52  ;;  %v595_v43 = vpop.f32.mrb[8].mxu1  ;;  %v708_v60 = vpop.f32.mrb[8].mxu0 }
 0x2a8   :  { %v596_v61 = vadd.f32 %v595_v43, %v5926_v39  ;;  %v709_v0 = vadd.f32 %v708_v60, %v5930_v44  ;;  %v597_v33 = vpop.f32.mrb[9].mxu1  ;;  %v710_v48 = vpop.f32.mrb[9].mxu0 }
 0x2a9   :  { %v598_v63 = vadd.f32 %v597_v33, %v5934_v58  ;;  %v711_v54 = vadd.f32 %v710_v48, %v5938_v45 }
 0x2aa   :  { %757 = vst [vmem:[#allocation2 + $0x10] sm:$0xff] %v596_v61  ;;  %759 = vst [vmem:[#allocation2 + $0x20] sm:$0xff] %v709_v0 }
 0x2ab   :  { %758 = vst [vmem:[#allocation2 + $0x18] sm:$0xff] %v598_v63  ;;  %760 = vst [vmem:[#allocation2 + $0x28] sm:$0xff] %v711_v54  ;;  %v601_v40 = vpop.f32.mrb[10].mxu1  ;;  %v714_v55 = vpop.f32.mrb[10].mxu0 }
 0x2ac   :  { %v602_v56 = vadd.f32 %v601_v40, %v5926_v39  ;;  %v715_v57 = vadd.f32 %v714_v55, %v5930_v44  ;;  %v603_v46 = vpop.f32.mrb[11].mxu1  ;;  %v716_v49 = vpop.f32.mrb[11].mxu0 }
 0x2ad   :  { %v604_v59 = vadd.f32 %v603_v46, %v5934_v58  ;;  %v717_v47 = vadd.f32 %v716_v49, %v5938_v45 }
 0x2ae   :  { %763 = vst [vmem:[#allocation2 + $0x40] sm:$0xff] %v602_v56  ;;  %765 = vst [vmem:[#allocation2 + $0x50] sm:$0xff] %v715_v57 }
 0x2af   :  { %764 = vst [vmem:[#allocation2 + $0x48] sm:$0xff] %v604_v59  ;;  %766 = vst [vmem:[#allocation2 + $0x58] sm:$0xff] %v717_v47  ;;  %v607_v52 = vpop.f32.mrb[12].mxu1  ;;  %v720_v43 = vpop.f32.mrb[12].mxu0 }
 0x2b0   :  { %v608_v60 = vadd.f32 %v607_v52, %v5926_v39  ;;  %v721_v61 = vadd.f32 %v720_v43, %v5930_v44  ;;  %v609_v0 = vpop.f32.mrb[13].mxu1  ;;  %v722_v33 = vpop.f32.mrb[13].mxu0 }
 0x2b1   :  { %v610_v48 = vadd.f32 %v609_v0, %v5934_v58  ;;  %v723_v63 = vadd.f32 %v722_v33, %v5938_v45 }
 0x2b2   :  { %769 = vst [vmem:[#allocation2 + $0x70] sm:$0xff] %v608_v60  ;;  %771 = vst [vmem:[#allocation2 + $0x80] sm:$0xff] %v721_v61 }
 0x2b3   :  { %770 = vst [vmem:[#allocation2 + $0x78] sm:$0xff] %v610_v48  ;;  %772 = vst [vmem:[#allocation2 + $0x88] sm:$0xff] %v723_v63  ;;  %v613_v54 = vpop.f32.mrb[14].mxu1  ;;  %v726_v40 = vpop.f32.mrb[14].mxu0 }
 0x2b4   :  { %v614_v55 = vadd.f32 %v613_v54, %v5926_v39  ;;  %v727_v56 = vadd.f32 %v726_v40, %v5930_v44  ;;  %v615_v57 = vpop.f32.mrb[15].mxu1  ;;  %v728_v46 = vpop.f32.mrb[15].mxu0 }
 0x2b5   :  { %v616_v49 = vadd.f32 %v615_v57, %v5934_v58  ;;  %v729_v59 = vadd.f32 %v728_v46, %v5938_v45 }
 0x2b6   :  { %775 = vst [vmem:[#allocation2 + $0xa0] sm:$0xff] %v614_v55  ;;  %777 = vst [vmem:[#allocation2 + $0xb0] sm:$0xff] %v727_v56 }
 0x2b7   :  { %776 = vst [vmem:[#allocation2 + $0xa8] sm:$0xff] %v616_v49  ;;  %778 = vst [vmem:[#allocation2 + $0xb8] sm:$0xff] %v729_v59  ;;  %v619_v47 = vpop.f32.mrb[16].mxu1  ;;  %v732_v52 = vpop.f32.mrb[16].mxu0 }
 0x2b8   :  { %v620_v43 = vadd.f32 %v619_v47, %v5926_v39  ;;  %v733_v60 = vadd.f32 %v732_v52, %v5930_v44  ;;  %v621_v61 = vpop.f32.mrb[17].mxu1  ;;  %v734_v0 = vpop.f32.mrb[17].mxu0 }
 0x2b9   :  { %v622_v33 = vadd.f32 %v621_v61, %v5934_v58  ;;  %v735_v48 = vadd.f32 %v734_v0, %v5938_v45 }
 0x2ba   :  { %781 = vst [vmem:[#allocation2 + $0xd0] sm:$0xff] %v620_v43  ;;  %783 = vst [vmem:[#allocation2 + $0xe0] sm:$0xff] %v733_v60 }
 0x2bb   :  { %782 = vst [vmem:[#allocation2 + $0xd8] sm:$0xff] %v622_v33  ;;  %784 = vst [vmem:[#allocation2 + $0xe8] sm:$0xff] %v735_v48  ;;  %v625_v63 = vpop.f32.mrb[18].mxu1  ;;  %v738_v54 = vpop.f32.mrb[18].mxu0 }
 0x2bc   :  { %v626_v40 = vadd.f32 %v625_v63, %v5926_v39  ;;  %v739_v55 = vadd.f32 %v738_v54, %v5930_v44  ;;  %v627_v56 = vpop.f32.mrb[19].mxu1  ;;  %v740_v57 = vpop.f32.mrb[19].mxu0 }
 0x2bd   :  { %v628_v46 = vadd.f32 %v627_v56, %v5934_v58  ;;  %v741_v49 = vadd.f32 %v740_v57, %v5938_v45 }
 0x2be   :  { %787 = vst [vmem:[#allocation2 + $0x100] sm:$0xff] %v626_v40  ;;  %789 = vst [vmem:[#allocation2 + $0x110] sm:$0xff] %v739_v55 }
 0x2bf   :  { %788 = vst [vmem:[#allocation2 + $0x108] sm:$0xff] %v628_v46  ;;  %790 = vst [vmem:[#allocation2 + $0x118] sm:$0xff] %v741_v49  ;;  %v631_v59 = vpop.f32.mrb[20].mxu1  ;;  %v744_v47 = vpop.f32.mrb[20].mxu0  ;;  %v5972_v49 = vmov 0.0  }
 0x2c0   :  { %v632_v52 = vadd.f32 %v631_v59, %v5926_v39  ;;  %v745_v43 = vadd.f32 %v744_v47, %v5930_v44  ;;  %v633_v60 = vpop.f32.mrb[21].mxu1  ;;  %v746_v61 = vpop.f32.mrb[21].mxu0  ;;  %v5974_v59 = vmov 0.0  }
 0x2c1   :  { %v634_v0 = vadd.f32 %v633_v60, %v5934_v58  ;;  %v747_v33 = vadd.f32 %v746_v61, %v5938_v45 }
 0x2c2   :  { %793 = vst [vmem:[#allocation2 + $0x130] sm:$0xff] %v632_v52  ;;  %795 = vst [vmem:[#allocation2 + $0x140] sm:$0xff] %v745_v43 }
 0x2c3   :  { %794 = vst [vmem:[#allocation2 + $0x138] sm:$0xff] %v634_v0  ;;  %796 = vst [vmem:[#allocation2 + $0x148] sm:$0xff] %v747_v33  ;;  %v637_v48 = vpop.f32.mrb[22].mxu1  ;;  %v750_v63 = vpop.f32.mrb[22].mxu0 }
 0x2c4   :  { %v638_v54 = vadd.f32 %v637_v48, %v5926_v39  ;;  %v751_v40 = vadd.f32 %v750_v63, %v5930_v44  ;;  %v639_v55 = vpop.f32.mrb[23].mxu1  ;;  %v752_v56 = vpop.f32.mrb[23].mxu0 }
 0x2c5   :  { %v640_v57 = vadd.f32 %v639_v55, %v5934_v58  ;;  %v753_v46 = vadd.f32 %v752_v56, %v5938_v45 }
 0x2c6   :  { %799 = vst [vmem:[#allocation2 + $0x160] sm:$0xff] %v638_v54  ;;  %801 = vst [vmem:[#allocation2 + $0x170] sm:$0xff] %v751_v40 }
 0x2c7   :  { %800 = vst [vmem:[#allocation2 + $0x168] sm:$0xff] %v640_v57  ;;  %802 = vst [vmem:[#allocation2 + $0x178] sm:$0xff] %v753_v46 }
 0x2c8 LB: > { %v4030_v39 = vpack.c.bf16 %v5658_v5, %v5652_v2  ;;  %v4032_v44 = vpack.c.bf16 %v5656_v4, %v5650_v1  ;;  %v4034_v58 = vpack.c.bf16 %v5670_v11, %v5664_v8  ;;  %s910_s1 = ssub.s32 7, %s5226_s28  ;;  %v4036_v45 = vpack.c.bf16 %v5668_v10, %v5662_v7  ;;  %s3551_s8 = sshll.u32 %s5226_s28, 3  ;;  %s5226_s28 = sphi %s5976_s28, %s906_s28   ;;  %v5222_v59 = vphi %v5974_v59, %v1290_v59   ;;  %v5218_v49 = vphi %v5972_v49, %v1291_v49  }
 0x2c9   : > { %v4063_v47 = vpack.c.bf16 %v5660_v6, %v5654_v3  ;;  %v4038_v52 = vpack.c.bf16 %v5682_v17, %v5676_v14  ;;  %v5264_v43 = vmov 0.0|0.0   ;;  %v4066_v60 = vpack.c.bf16 %v5672_v12, %v5666_v9  ;;  %s6005_s12 = sshll.u32 %s910_s1, 3  ;;  %s7395_s9 = sld [smem:[#allocation106_spill]] }
 0x2ca   : > { %4031 = vmatprep.subr.bf16.mxu0 %v4030_v39  ;;  %4062 = vmatprep.subr.bf16.mxu1 %v5264_v43  ;;  %v5265_v61 = vmov 0.0   ;;  %v4040_v0 = vpack.c.bf16 %v5680_v16, %v5674_v13  ;;  %v4042_v33 = vpack.c.bf16 %v5694_v23, %v5688_v20  ;;  %v4069_v48 = vpack.c.bf16 %v5684_v18, %v5678_v15  ;;  %s6124_s13 = sshra.s32 %s3551_s8, 3  ;;  %s920_s25 = sshra.s32 %s6005_s12, 3 }
 0x2cb   : > { %4033 = vmatpush1.bf16.msra.mxu0 %v4032_v44  ;;  %4064 = vmatpush3.bf16.msra.mxu1 %v4063_v47  ;;  %v4044_v63 = vpack.c.bf16 %v5692_v22, %v5686_v19  ;;  %vm5266_vm1 = vmmov 0   ;;  %v4046_v55 = vpack.c.bf16 %v5706_v29, %v5700_v26  ;;  %v4072_v56 = vpack.c.bf16 %v5696_v24, %v5690_v21  ;;  %s3586_s5 = smul.u32 48, %s6124_s13  ;;  %s3588_s2 = sshll.u32 %s6124_s13, 4 }
 0x2cc   : > { %4035 = vmatprep.subr.bf16.mxu0 %v4034_v58  ;;  %998 = vmatprep.mubr.f32.mxu0 %v5265_v61  ;;  %v5267_v57 = vmov 0   ;;  %v4048_v46 = vpack.c.bf16 %v5704_v28, %v5698_v25  ;;  %v4050_v44 = vpack.c.bf16 %v5718_v35, %v5712_v32  ;;  %v4075_v58 = vpack.c.bf16 %v5708_v30, %v5702_v27  ;;  %s3587_s6 = smul.u32 48, %s920_s25  ;;  %s1278_s3 = scalar_lea.vmem [#allocation4], %s3588_s2 }
 0x2cd   : > { %4065 = vmatprep.subr.bf16.mxu1 %v5264_v43  ;;  %3830 = vmatprep.mubr.msk.f32.mxu1 %vm5266_vm1, %v5265_v61  ;;  %v4052_v47 = vpack.c.bf16 %v5716_v34, %v5710_v31  ;;  %s916_s11 = scalar_lea.vmem [#allocation2], %s3586_s5  ;;  %s3589_s16 = sshll.u32 %s920_s25, 4 }
 0x2ce   : > { %4694 = vset.pattern.permute.xlu0 %v5267_v57  ;;  %s6131_s10 = scalar_lea.vmem [#allocation2], %s3587_s6  ;;  %s1288_s29 = scalar_lea.vmem [#allocation4], %s3589_s16 }
 0x2cf   : > { %4037 = vmatpush1.bf16.msra.mxu0 %v4036_v45  ;;  %s928_s14 = scalar_lea.vmem %s7395_s9, %s3551_s8  ;;  %s931_s0 = scalar_lea.vmem %s7395_s9, %s6005_s12  ;;  %4067 = vmatpush3.bf16.msra.mxu1 %v4066_v60  ;;  %v7396_v60 = vld [vmem:[#allocation41_spill] sm:$0xff] }
 0x2d0   : > { %4039 = vmatprep.subr.bf16.mxu0 %v4038_v52  ;;  %4068 = vmatprep.subr.bf16.mxu1 %v5264_v43  ;;  %v929_v54 = vld [vmem:[%s928_s14] sm:$0xff]  ;;  %v4054_v52 = vpack.c.bf16 %v5730_v41, %v5724_v38  ;;  %s906_s28 = sadd.s32 1, %s5226_s28  }
 0x2d1   : > { %v932_v40 = vld [vmem:[%s931_s0] sm:$0xff]  ;;  %vm930_vm2 = vcmp.gt.f32.partialorder %v929_v54, 0.5  ;;  %p903_p10 = scmp.ge.s32.totalorder %s906_s28, 8  }
 0x2d2   : > { %vm933_vm3 = vcmp.gt.f32.partialorder %v932_v40, 0.5  ;;  %v1270_v39 = vsel %vm930_vm2, 1, %v5267_v57  ;;  %v7400_v40 = vld [vmem:[#allocation48_spill] sm:$0xff]  ;;  %v1320_v2 = vld [vmem:[#allocation16 + $0x60] sm:$0xff] (%p903_p10)  ;;  %v1326_v3 = vld [vmem:[#allocation16 + $0x90] sm:$0xff] (%p903_p10)  ;;  %s6489_s22 = smov (%p903_p10), 0  }
 0x2d3   : > { %4041 = vmatpush1.bf16.msra.mxu0 %v4040_v0  ;;  %4070 = vmatpush3.bf16.msra.mxu1 %v4069_v48  ;;  %v1280_v45 = vsel %vm933_vm3, 1, %v5267_v57  ;;  %v7397_v0 = vld [vmem:[#allocation42_spill] sm:$0xff]  ;;  %v7398_v48 = vld [vmem:[#allocation43_spill] sm:$0xff]  ;;  %v7402_v57 = vld [vmem:[#allocation44_spill] sm:$0xff]  ;;  %v4148_v5 = vpack.c.bf16 (%p903_p10), %v1326_v3, %v1320_v2 }
 0x2d4   : > { %4043 = vmatprep.subr.bf16.mxu0 %v4042_v33  ;;  %4071 = vmatprep.subr.bf16.mxu1 %v5264_v43  ;;  %v4078_v33 = vpack.c.bf16 %v7397_v0, %v7396_v60  ;;  %v7406_v60 = vld [vmem:[#allocation54_spill] sm:$0xff]  ;;  %v1322_v4 = vld [vmem:[#allocation16 + $0x70] sm:$0xff] (%p903_p10)  ;;  %v1328_v6 = vld [vmem:[#allocation16 + $0xa0] sm:$0xff] (%p903_p10) }
 0x2d5   : > { %1272 = vperm.xlu0 %4694, %v1270_v39   ;;  %v1333_v7 = vld [vmem:[#allocation16 + $0xc8] sm:$0xff] (%p903_p10)  ;;  %v1339_v8 = vld [vmem:[#allocation16 + $0xf8] sm:$0xff] (%p903_p10)  ;;  %v4212_v9 = vpack.c.bf16 (%p903_p10), %v1328_v6, %v1322_v4  ;;  %v1332_v13 = vld [vmem:[#allocation16 + $0xc0] sm:$0xff] (%p903_p10) }
 0x2d6   :  { %v4150_v10 = vpack.c.bf16 (%p903_p10), %v1339_v8, %v1333_v7  ;;  %v1335_v11 = vld [vmem:[#allocation16 + $0xd8] sm:$0xff] (%p903_p10)  ;;  %v1341_v12 = vld [vmem:[#allocation16 + $0x108] sm:$0xff] (%p903_p10)  ;;  %v1338_v15 = vld [vmem:[#allocation16 + $0xf0] sm:$0xff] (%p903_p10) }
 0x2d7   : > { %4045 = vmatpush1.bf16.msra.mxu0 %v4044_v63  ;;  %4073 = vmatpush3.bf16.msra.mxu1 %v4072_v56  ;;  %v7399_v63 = vld [vmem:[#allocation45_spill] sm:$0xff]  ;;  %v4214_v14 = vpack.c.bf16 (%p903_p10), %v1341_v12, %v1335_v11  ;;  %v1340_v17 = vld [vmem:[#allocation16 + $0x100] sm:$0xff] (%p903_p10)  ;;  %v4152_v18 = vpack.c.bf16 (%p903_p10), %v1338_v15, %v1332_v13  ;;  %v1345_v19 = vld [vmem:[#allocation16 + $0x128] sm:$0xff] (%p903_p10) }
 0x2d8   : > { %4047 = vmatprep.subr.bf16.mxu0 %v4046_v55  ;;  %4074 = vmatprep.subr.bf16.mxu1 %v5264_v43  ;;  %v4056_v54 = vpack.c.bf16 %v7399_v63, %v7398_v48  ;;  %v7401_v55 = vld [vmem:[#allocation51_spill] sm:$0xff]  ;;  %v7408_v48 = vld [vmem:[#allocation49_spill] sm:$0xff]  ;;  %v1351_v20 = vld [vmem:[#allocation16 + $0x158] sm:$0xff] (%p903_p10) }
 0x2d9   : > { %1282 = vperm.xlu0 %4694, %v1280_v45   ;;  %v4058_v56 = vpack.c.bf16 %v7401_v55, %v7400_v40  ;;  %v7411_v40 = vld [vmem:[#allocation56_spill] sm:$0xff]  ;;  %v1334_v16 = vld [vmem:[#allocation16 + $0xd0] sm:$0xff] (%p903_p10)  ;;  %v1347_v21 = vld [vmem:[#allocation16 + $0x138] sm:$0xff] (%p903_p10)  ;;  %v4154_v23 = vpack.c.bf16 (%p903_p10), %v1351_v20, %v1345_v19 }
 0x2da   :  { %v4216_v22 = vpack.c.bf16 (%p903_p10), %v1340_v17, %v1334_v16  ;;  %v1353_v24 = vld [vmem:[#allocation16 + $0x168] sm:$0xff] (%p903_p10)  ;;  %v1344_v25 = vld [vmem:[#allocation16 + $0x120] sm:$0xff] (%p903_p10)  ;;  %v1350_v26 = vld [vmem:[#allocation16 + $0x150] sm:$0xff] (%p903_p10) }
 0x2db   : > { %4049 = vmatpush1.bf16.msra.mxu0 %v4048_v46  ;;  %4076 = vmatpush3.bf16.msra.mxu1 %v4075_v58  ;;  %v7403_v46 = vld [vmem:[#allocation46_spill] sm:$0xff]  ;;  %v4218_v27 = vpack.c.bf16 (%p903_p10), %v1353_v24, %v1347_v21  ;;  %v1346_v28 = vld [vmem:[#allocation16 + $0x130] sm:$0xff] (%p903_p10)  ;;  %v1352_v29 = vld [vmem:[#allocation16 + $0x160] sm:$0xff] (%p903_p10)  ;;  %v4156_v35 = vpack.c.bf16 (%p903_p10), %v1350_v26, %v1344_v25 }
 0x2dc   : > { %4051 = vmatprep.subr.bf16.mxu0 %v4050_v44  ;;  %4077 = vmatprep.subr.bf16.mxu1 %v5264_v43  ;;  %v4081_v39 = vpack.c.bf16 %v7403_v46, %v7402_v57  ;;  %v7404_v44 = vld [vmem:[#allocation47_spill] sm:$0xff]  ;;  %v7405_v58 = vld [vmem:[#allocation50_spill] sm:$0xff]  ;;  %v7412_v57 = vld [vmem:[#allocation60_spill] sm:$0xff]  ;;  %v4220_v38 = vpack.c.bf16 (%p903_p10), %v1352_v29, %v1346_v28 }
 0x2dd   : > { %v4060_v45 = vpack.c.bf16 %v7405_v58, %v7404_v44  ;;  %v7414_v44 = vld [vmem:[#allocation55_spill] sm:$0xff]  ;;  %v1357_v30 = vld [vmem:[#allocation16 + $0x188] sm:$0xff] (%p903_p10)  ;;  %v1363_v31 = vld [vmem:[#allocation16 + $0x1b8] sm:$0xff] (%p903_p10) }
 0x2de   :  { %v1359_v32 = vld [vmem:[#allocation16 + $0x198] sm:$0xff] (%p903_p10)  ;;  %v1365_v34 = vld [vmem:[#allocation16 + $0x1c8] sm:$0xff] (%p903_p10)  ;;  %v4158_v41 = vpack.c.bf16 (%p903_p10), %v1363_v31, %v1357_v30  ;;  %v1380_v4 = vld [vmem:[#allocation16 + $0x240] sm:$0xff] (%p903_p10) }
 0x2df   : > { %4053 = vmatpush1.bf16.msra.mxu0 %v4052_v47  ;;  %4079 = vmatpush3.bf16.msra.mxu1 %v4078_v33  ;;  %v7407_v47 = vld [vmem:[#allocation57_spill] sm:$0xff]  ;;  %v1388_v8 = vld [vmem:[#allocation16 + $0x280] sm:$0xff] (%p903_p10)  ;;  %v1395_v11 = vld [vmem:[#allocation16 + $0x2b8] sm:$0xff] (%p903_p10) }
 0x2e0   : > { %4055 = vmatprep.subr.bf16.mxu0 %v4054_v52  ;;  %4080 = vmatprep.subr.bf16.mxu1 %v5264_v43  ;;  %v4086_v0 = vpack.c.bf16 %v7407_v47, %v7406_v60  ;;  %v7409_v52 = vld [vmem:[#allocation52_spill] sm:$0xff]  ;;  %v7410_v33 = vld [vmem:[#allocation53_spill] sm:$0xff]  ;;  %v7417_v60 = vld [vmem:[#allocation62_spill] sm:$0xff] }
 0x2e1   : > { %v4084_v63 = vpack.c.bf16 %v7409_v52, %v7408_v48  ;;  %v4088_v55 = vpack.c.bf16 %v7411_v40, %v7410_v33  ;;  %v7420_v52 = vld [vmem:[#allocation61_spill] sm:$0xff]  ;;  %v1401_v12 = vld [vmem:[#allocation16 + $0x2e8] sm:$0xff] (%p903_p10)  ;;  %v1392_v16 = vld [vmem:[#allocation16 + $0x2a0] sm:$0xff] (%p903_p10) }
 0x2e2   : > { %v7422_v40 = vld [vmem:[#allocation65_spill] sm:$0xff]  ;;  %v4234_v19 = vpack.c.bf16 (%p903_p10), %v1401_v12, %v1395_v11  ;;  %v1400_v20 = vld [vmem:[#allocation16 + $0x2e0] sm:$0xff] (%p903_p10)  ;;  %v1405_v21 = vld [vmem:[#allocation16 + $0x308] sm:$0xff] (%p903_p10) }
 0x2e3   : > { %4057 = vmatpush1.bf16.msra.mxu0 %v4056_v54  ;;  %4082 = vmatpush3.bf16.msra.mxu1 %v4081_v39  ;;  %v7413_v54 = vld [vmem:[#allocation63_spill] sm:$0xff]  ;;  %v1382_v6 = vld [vmem:[#allocation16 + $0x250] sm:$0xff] (%p903_p10)  ;;  %v1413_v24 = vld [vmem:[#allocation16 + $0x348] sm:$0xff] (%p903_p10) }
 0x2e4   : > { %4059 = vmatprep.subr.bf16.mxu0 %v4058_v56  ;;  %4083 = vmatprep.subr.bf16.mxu1 %v5264_v43  ;;  %v4090_v46 = vpack.c.bf16 %v7413_v54, %v7412_v57  ;;  %v7415_v56 = vld [vmem:[#allocation58_spill] sm:$0xff]  ;;  %v7416_v39 = vld [vmem:[#allocation59_spill] sm:$0xff]  ;;  %v7424_v54 = vld [vmem:[#allocation72_spill] sm:$0xff] }
 0x2e5   : > { %v4119_v58 = vpack.c.bf16 %v7415_v56, %v7414_v44  ;;  %v4092_v47 = vpack.c.bf16 %v7417_v60, %v7416_v39  ;;  %v7426_v56 = vld [vmem:[#allocation67_spill] sm:$0xff]  ;;  %v7427_v39 = vld [vmem:[#allocation70_spill] sm:$0xff]  ;;  %v1398_v17 = vld [vmem:[#allocation16 + $0x2d0] sm:$0xff] (%p903_p10) }
 0x2e6   : > { %v7428_v60 = vld [vmem:[#allocation71_spill] sm:$0xff]  ;;  %v4172_v25 = vpack.c.bf16 (%p903_p10), %v1398_v17, %v1392_v16  ;;  %v1410_v29 = vld [vmem:[#allocation16 + $0x330] sm:$0xff] (%p903_p10)  ;;  %v1453_v12 = vld [vmem:[#allocation16 + $0x488] sm:$0xff] (%p903_p10) }
 0x2e7   : > { %4061 = vmatpush1.bf16.msra.mxu0 %v4060_v45  ;;  %4085 = vmatpush3.bf16.msra.mxu1 %v4084_v63  ;;  %v7418_v45 = vld [vmem:[#allocation66_spill] sm:$0xff]  ;;  %v7421_v63 = vld [vmem:[#allocation64_spill] sm:$0xff]  ;;  %v1404_v28 = vld [vmem:[#allocation16 + $0x300] sm:$0xff] (%p903_p10) }
 0x2e8   : > { %4087 = vmatprep.subr.bf16.mxu0 %v4086_v0  ;;  %4118 = vmatprep.subr.bf16.mxu1 %v5264_v43  ;;  %v7419_v0 = vld [vmem:[#allocation69_spill] sm:$0xff]  ;;  %v4122_v33 = vpack.c.bf16 %v7421_v63, %v7420_v52  ;;  %v1461_v16 = vld [vmem:[#allocation16 + $0x4c8] sm:$0xff] (%p903_p10)  ;;  %v6349_v50 = vld [vmem:[#allocation20 + $0x58] sm:$0xff] (%p903_p10) }
 0x2e9   : > { %v4094_v48 = vpack.c.bf16 %v7419_v0, %v7418_v45  ;;  %v7429_v45 = vld [vmem:[#allocation74_spill] sm:$0xff]  ;;  %v7432_v63 = vld [vmem:[#allocation73_spill] sm:$0xff]  ;;  %7474 = vst [vmem:[#allocation57_spill] sm:$0xff] (%p903_p10), %v6349_v50  ;;  %v6351_v53 = vld [vmem:[#allocation20 + $0x60] sm:$0xff] (%p903_p10) }
 0x2ea   : > { %999 = vmatmul.mubr.f32.vlgmr.msra.gmra.mrb[0].mxu0 %v5222_v59  ;;  %3831 = vmatmul.mubr.f32.vlgmr.msra.gmra.mrb[0].mxu1 %v5222_v59  ;;  %v7430_v0 = vld [vmem:[#allocation78_spill] sm:$0xff]  ;;  %v1406_v30 = vld [vmem:[#allocation16 + $0x310] sm:$0xff] (%p903_p10)  ;;  %7475 = vst [vmem:[#allocation58_spill] sm:$0xff] (%p903_p10), %v6351_v53 }
 0x2eb   : > { %4089 = vmatpush1.bf16.msra.mxu0 %v4088_v55  ;;  %1139 = vmatprep.mubr.f32.mxu0 %v5265_v61  ;;  %v7423_v55 = vld [vmem:[#allocation68_spill] sm:$0xff]  ;;  %v6347_v62 = vld [vmem:[#allocation20 + $0x50] sm:$0xff] (%p903_p10)  ;;  %v6373_v53 = vld [vmem:[#allocation20 + $0xb8] sm:$0xff] (%p903_p10) }
 0x2ec   : > { %4091 = vmatprep.subr.bf16.mxu0 %v4090_v46  ;;  %4120 = vmatpush3.bf16.msra.mxu1 %v4119_v58  ;;  %v4096_v57 = vpack.c.bf16 %v7423_v55, %v7422_v40  ;;  %v7425_v46 = vld [vmem:[#allocation75_spill] sm:$0xff]  ;;  %v4125_v58 = vpack.c.bf16 %v7427_v39, %v7426_v56  ;;  %v7435_v55 = vld [vmem:[#allocation80_spill] sm:$0xff]  ;;  %7473 = vst [vmem:[#allocation56_spill] sm:$0xff] (%p903_p10), %v6347_v62  ;;  %v6371_v50 = vld [vmem:[#allocation20 + $0xb0] sm:$0xff] (%p903_p10) }
 0x2ed   : > { %3865 = vmatprep.mubr.msk.f32.mxu1 %vm5266_vm1, %v5265_v61  ;;  %4121 = vmatprep.subr.bf16.mxu1 %v5264_v43  ;;  %v4098_v44 = vpack.c.bf16 %v7425_v46, %v7424_v54  ;;  %v4100_v61 = vpack.c.bf16 %v7429_v45, %v7428_v60  ;;  %v7436_v46 = vld [vmem:[#allocation84_spill] sm:$0xff]  ;;  %v7438_v39 = vld [vmem:[#allocation79_spill] sm:$0xff]  ;;  %v7441_v45 = vld [vmem:[#allocation86_spill] sm:$0xff]  ;;  %7485 = vst [vmem:[#allocation68_spill] sm:$0xff] (%p903_p10), %v6371_v50 }
 0x2ee   :  { %v6345_v51 = vld [vmem:[#allocation20 + $0x48] sm:$0xff] (%p903_p10)  ;;  %7486 = vst [vmem:[#allocation69_spill] sm:$0xff] (%p903_p10), %v6373_v53  ;;  %v6395_v53 = vld [vmem:[#allocation20 + $0x110] sm:$0xff] (%p903_p10) }
 0x2ef   : > { %4093 = vmatpush1.bf16.msra.mxu0 %v4092_v47  ;;  %v7431_v47 = vld [vmem:[#allocation81_spill] sm:$0xff]  ;;  %7472 = vst [vmem:[#allocation55_spill] sm:$0xff] (%p903_p10), %v6345_v51  ;;  %v6367_v51 = vld [vmem:[#allocation20 + $0xa0] sm:$0xff] (%p903_p10)  ;;  %7497 = vst [vmem:[#allocation80_spill] sm:$0xff] (%p903_p10), %v6395_v53 }
 0x2f0   : > { %4095 = vmatprep.subr.bf16.mxu0 %v4094_v48  ;;  %4123 = vmatpush3.bf16.msra.mxu1 %v4122_v33  ;;  %v4102_v52 = vpack.c.bf16 %v7431_v47, %v7430_v0  ;;  %v7433_v48 = vld [vmem:[#allocation76_spill] sm:$0xff]  ;;  %v7434_v33 = vld [vmem:[#allocation77_spill] sm:$0xff]  ;;  %v7442_v47 = vld [vmem:[#allocation90_spill] sm:$0xff]  ;;  %7483 = vst [vmem:[#allocation66_spill] sm:$0xff] (%p903_p10), %v6367_v51 }
 0x2f1   : > { %4124 = vmatprep.subr.bf16.mxu1 %v5264_v43  ;;  %v4128_v40 = vpack.c.bf16 %v7433_v48, %v7432_v63  ;;  %v4104_v54 = vpack.c.bf16 %v7435_v55, %v7434_v33  ;;  %v7444_v48 = vld [vmem:[#allocation85_spill] sm:$0xff]  ;;  %v7447_v55 = vld [vmem:[#allocation92_spill] sm:$0xff]  ;;  %v6389_v51 = vld [vmem:[#allocation20 + $0xf8] sm:$0xff] (%p903_p10) }
 0x2f2   :  { %v6369_v62 = vld [vmem:[#allocation20 + $0xa8] sm:$0xff] (%p903_p10)  ;;  %7494 = vst [vmem:[#allocation77_spill] sm:$0xff] (%p903_p10), %v6389_v51  ;;  %v6411_v51 = vld [vmem:[#allocation20 + $0x150] sm:$0xff] (%p903_p10) }
 0x2f3   : > { %4097 = vmatpush1.bf16.msra.mxu0 %v4096_v57  ;;  %v7437_v57 = vld [vmem:[#allocation87_spill] sm:$0xff]  ;;  %7484 = vst [vmem:[#allocation67_spill] sm:$0xff] (%p903_p10), %v6369_v62  ;;  %v6393_v50 = vld [vmem:[#allocation20 + $0x108] sm:$0xff] (%p903_p10) }
 0x2f4   : > { %4099 = vmatprep.subr.bf16.mxu0 %v4098_v44  ;;  %4126 = vmatpush3.bf16.msra.mxu1 %v4125_v58  ;;  %v4106_v56 = vpack.c.bf16 %v7437_v57, %v7436_v46  ;;  %v7439_v44 = vld [vmem:[#allocation82_spill] sm:$0xff]  ;;  %v7440_v58 = vld [vmem:[#allocation83_spill] sm:$0xff]  ;;  %7496 = vst [vmem:[#allocation79_spill] sm:$0xff] (%p903_p10), %v6393_v50  ;;  %v6417_v53 = vld [vmem:[#allocation20 + $0x168] sm:$0xff] (%p903_p10) }
 0x2f5   : > { %4127 = vmatprep.subr.bf16.mxu1 %v5264_v43  ;;  %v4131_v60 = vpack.c.bf16 %v7439_v44, %v7438_v39  ;;  %v4108_v0 = vpack.c.bf16 %v7441_v45, %v7440_v58  ;;  %v7449_v57 = vld [vmem:[#allocation99_spill] sm:$0xff]  ;;  %v7451_v44 = vld [vmem:[#allocation94_spill] sm:$0xff] }
 0x2f6   : > { %v7453_v45 = vld [vmem:[#allocation98_spill] sm:$0xff]  ;;  %v6391_v62 = vld [vmem:[#allocation20 + $0x100] sm:$0xff] (%p903_p10) }
 0x2f7   : > { %4101 = vmatpush1.bf16.msra.mxu0 %v4100_v61  ;;  %v7443_v61 = vld [vmem:[#allocation93_spill] sm:$0xff]  ;;  %7495 = vst [vmem:[#allocation78_spill] sm:$0xff] (%p903_p10), %v6391_v62  ;;  %v6413_v62 = vld [vmem:[#allocation20 + $0x158] sm:$0xff] (%p903_p10)  ;;  %v6415_v50 = vld [vmem:[#allocation20 + $0x160] sm:$0xff] (%p903_p10) }
 0x2f8   : > { %4103 = vmatprep.subr.bf16.mxu0 %v4102_v52  ;;  %4129 = vmatpush3.bf16.msra.mxu1 %v4128_v40  ;;  %v4110_v63 = vpack.c.bf16 %v7443_v61, %v7442_v47  ;;  %v7445_v52 = vld [vmem:[#allocation88_spill] sm:$0xff]  ;;  %v7446_v40 = vld [vmem:[#allocation89_spill] sm:$0xff]  ;;  %7507 = vst [vmem:[#allocation90_spill] sm:$0xff] (%p903_p10), %v6415_v50 }
 0x2f9   : > { %4130 = vmatprep.subr.bf16.mxu1 %v5264_v43  ;;  %v4134_v33 = vpack.c.bf16 %v7445_v52, %v7444_v48  ;;  %v4112_v46 = vpack.c.bf16 %v7447_v55, %v7446_v40  ;;  %v7455_v61 = vld [vmem:[#allocation100_spill] sm:$0xff]  ;;  %7505 = vst [vmem:[#allocation88_spill] sm:$0xff] (%p903_p10), %v6411_v51  ;;  %7506 = vst [vmem:[#allocation89_spill] sm:$0xff] (%p903_p10), %v6413_v62  ;;  %v7513_v51 = vsub.s32 (%p903_p10), 2, %v5907_v36 }
 0x2fa   : > { %v918_v52 = vld [vmem:[%s916_s11 + $0x8] sm:$0xff] }
 0x2fb   : > { %4105 = vmatpush1.bf16.msra.mxu0 %v4104_v54  ;;  %v7448_v54 = vld [vmem:[#allocation96_spill] sm:$0xff] }
 0x2fc   : > { %4107 = vmatprep.subr.bf16.mxu0 %v4106_v56  ;;  %4132 = vmatpush3.bf16.msra.mxu1 %v4131_v60  ;;  %v4114_v39 = vpack.c.bf16 %v7449_v57, %v7448_v54  ;;  %v7450_v56 = vld [vmem:[#allocation91_spill] sm:$0xff] }
 0x2fd   : > { %4133 = vmatprep.subr.bf16.mxu1 %v5264_v43  ;;  %v4137_v58 = vpack.c.bf16 %v7451_v44, %v7450_v56  ;;  %v7452_v60 = vld [vmem:[#allocation95_spill] sm:$0xff]  ;;  %7508 = vst [vmem:[#allocation91_spill] sm:$0xff] (%p903_p10), %v6417_v53 }
 0x2fe   : > { %v4116_v47 = vpack.c.bf16 %v7453_v45, %v7452_v60 }
 0x2ff   : > { %4109 = vmatpush1.bf16.msra.mxu0 %v4108_v0  ;;  %v7454_v0 = vld [vmem:[#allocation97_spill] sm:$0xff] }
 0x300   : > { %4111 = vmatprep.subr.bf16.mxu0 %v4110_v63  ;;  %4135 = vmatpush3.bf16.msra.mxu1 %v4134_v33  ;;  %v4140_v48 = vpack.c.bf16 %v7455_v61, %v7454_v0  ;;  %v917_v63 = vld [vmem:[%s916_s11] sm:$0xff]  ;;  %v919_v0 = vld [vmem:[%s916_s11 + $0x10] sm:$0xff] }
 0x301   : > { %4136 = vmatprep.subr.bf16.mxu1 %v5264_v43 }
 0x303   : > { %4113 = vmatpush1.bf16.msra.mxu0 %v4112_v46 }
 0x304   : > { %4115 = vmatprep.subr.bf16.mxu0 %v4114_v39  ;;  %4138 = vmatpush3.bf16.msra.mxu1 %v4137_v58  ;;  %v7456_v58 = vld [vmem:[#allocation101_spill] sm:$0xff] }
 0x305   : > { %4139 = vmatprep.subr.bf16.mxu1 %v5264_v43 }
 0x307   : > { %4117 = vmatpush1.bf16.msra.mxu0 %v4116_v47 }
 0x308   : > { %4141 = vmatpush3.bf16.msra.mxu1 %v4140_v48  ;;  %v925_v48 = vld [vmem:[%s6131_s10 + $0x18] sm:$0xff] }
 0x30a   : > { %1140 = vmatmul.mubr.f32.vlgmr.msra.gmra.mrb[2].mxu0 %v5218_v49 }
 0x30b   : > { %3866 = vmatmul.mubr.f32.vlgmr.msra.gmra.mrb[2].mxu1 %v5218_v49 }
 0x3bd   : > { %v1000_v33 = vpop.f32.mrb[0].mxu0  ;;  %v1071_v46 = vpop.f32.mrb[0].mxu1 }
 0x3be   : > { %v1216_v40 = vadd.f32 %v1000_v33, %v917_v63  ;;  %v1002_v55 = vpop.f32.mrb[1].mxu0  ;;  %v3832_v57 = vpop.f32.mrb[1].mxu1  ;;  %v1236_v60 = vadd.f32 %v7456_v58, %v1071_v46 }
 0x3bf   : > { %v1223_v43 = vadd.f32 %v1002_v55, %v918_v52  ;;  %v926_v57 = vld [vmem:[%s6131_s10 + $0x20] sm:$0xff] }
 0x3c0   : > { %v3555_v54 = vmul.f32 -1.442695, %v1216_v40 }
 0x3c1   : > { %v3556_v39 = vmul.f32 -1.442695, %v1223_v43 }
 0x3c2   : > { %4695 = vpow2.f32 %v3555_v54 }
 0x3c3   : > { %4697 = vpow2.f32 %v3556_v39 }
 0x3cc   : > { %v4696_v56 = vpop.eup %4695 }
 0x3cd   : > { %v1220_v44 = vadd.f32 1.0, %v4696_v56  ;;  %v4698_v45 = vpop.eup %4697 }
 0x3ce   : > { %v1227_v63 = vadd.f32 1.0, %v4698_v45 }
 0x3cf   : > { %4699 = vrcp.f32 %v1220_v44  ;;  %v1273_v44 = vpop.permute.xlu0 %1272 }
 0x3d0   : > { %vm1274_vm4 = vcmp.eq.s32.totalorder %v1273_v44, 1 }
 0x3d9   : > { %v4700_v47 = vpop.eup %4699 }
 0x3da   : > { %v1237_v61 = vmul.f32 %v4700_v47, %v1236_v60 }
 0x3dc   : > { %v1238_v52 = vadd.f32 %v1237_v61, %v919_v0 }
 0x3dd   : > { %v1141_v33 = vpop.f32.mrb[2].mxu0 }
 0x3de   : > { %4701 = vtanh.f32 %v1238_v52  ;;  %v1243_v40 = vadd.f32 %v1141_v33, %v925_v48  ;;  %v1143_v55 = vpop.f32.mrb[3].mxu0  ;;  %v1212_v43 = vpop.f32.mrb[2].mxu1  ;;  %v7457_v52 = vld [vmem:[#allocation102_spill] sm:$0xff] }
 0x3df   : > { %4703 = vrcp.f32 %v1227_v63  ;;  %v3867_v46 = vpop.f32.mrb[3].mxu1  ;;  %v1250_v39 = vadd.f32 %v1143_v55, %v926_v57  ;;  %v1263_v33 = vadd.f32 %v7457_v52, %v1212_v43  ;;  %v1309_v43 = vld [vmem:[#allocation16 + $0x8] sm:$0xff] (%p903_p10) }
 0x3e0   : > { %v3558_v54 = vmul.f32 -1.442695, %v1243_v40  ;;  %v1317_v52 = vld [vmem:[#allocation16 + $0x48] sm:$0xff] (%p903_p10) }
 0x3e1   : > { %v3559_v47 = vmul.f32 -1.442695, %v1250_v39 }
 0x3e2   : > { %4705 = vpow2.f32 %v3558_v54  ;;  %v927_v54 = vld [vmem:[%s6131_s10 + $0x28] sm:$0xff] }
 0x3e3   : > { %4707 = vpow2.f32 %v3559_v47 }
 0x3e8   : > { %v4702_v56 = vpop.eup %4701 }
 0x3e9   : > { %v1240_v58 = vsub.f32 %v5222_v59, %v4702_v56  ;;  %v4704_v60 = vpop.eup %4703 }
 0x3eb   : > { %v1241_v45 = vmul.f32 %v4704_v60, %v1240_v58  ;;  %v1283_v60 = vpop.permute.xlu0 %1282 }
 0x3ec   : > { %v4706_v0 = vpop.eup %4705  ;;  %vm1284_vm5 = vcmp.eq.s32.totalorder %v1283_v60, 1 }
 0x3ed   : > { %v1247_v61 = vadd.f32 1.0, %v4706_v0  ;;  %v1242_v48 = vadd.f32 %v4702_v56, %v1241_v45  ;;  %v4708_v40 = vpop.eup %4707 }
 0x3ee   : > { %v1254_v57 = vadd.f32 1.0, %v4708_v40  ;;  %v1314_v40 = vld [vmem:[#allocation16 + $0x30] sm:$0xff] (%p903_p10) }
 0x3ef   : > { %4709 = vrcp.f32 %v1247_v61  ;;  %v1275_v63 = vsel %vm1274_vm4, %v1242_v48, 0.0  ;;  %v1290_v59 = vsel %vm1274_vm4, %v1242_v48, %v5222_v59   ;;  %v1315_v61 = vld [vmem:[#allocation16 + $0x38] sm:$0xff] (%p903_p10) }
 0x3f0   : > { %1279 = vst [vmem:[%s1278_s3] sm:$0xff] %v1275_v63  ;;  %v1311_v48 = vld [vmem:[#allocation16 + $0x18] sm:$0xff] (%p903_p10)  ;;  %v4142_v63 = vpack.c.bf16 (%p903_p10), %v1315_v61, %v1309_v43  ;;  %v1329_v59 = vld [vmem:[#allocation16 + $0xa8] sm:$0xff] (%p903_p10)  ;;  %v1364_v43 = vld [vmem:[#allocation16 + $0x1c0] sm:$0xff] (%p903_p10) }
 0x3f1   :  { %v1369_v61 = vld [vmem:[#allocation16 + $0x1e8] sm:$0xff] (%p903_p10) }
 0x3f2   :  { %4143 = vmatprep.subr.bf16.mxu0 (%p903_p10), %v4142_v63  ;;  %v1371_v63 = vld [vmem:[#allocation16 + $0x1f8] sm:$0xff] (%p903_p10) }
 0x3f9   : > { %v4710_v55 = vpop.eup %4709 }
 0x3fa   : > { %v1264_v46 = vmul.f32 %v4710_v55, %v1263_v33  ;;  %v1308_v33 = vld [vmem:[#allocation16] sm:$0xff] (%p903_p10)  ;;  %v4206_v55 = vpack.c.bf16 (%p903_p10), %v1317_v52, %v1311_v48  ;;  %v1375_v48 = vld [vmem:[#allocation16 + $0x218] sm:$0xff] (%p903_p10)  ;;  %v1377_v52 = vld [vmem:[#allocation16 + $0x228] sm:$0xff] (%p903_p10) }
 0x3fc   : > { %v1265_v39 = vadd.f32 %v1264_v46, %v927_v54  ;;  %v4144_v54 = vpack.c.bf16 (%p903_p10), %v1314_v40, %v1308_v33  ;;  %v1310_v46 = vld [vmem:[#allocation16 + $0x10] sm:$0xff] (%p903_p10)  ;;  %4207 = vmatprep.subr.bf16.mxu1 (%p903_p10), %v4206_v55  ;;  %v4162_v55 = vpack.c.bf16 (%p903_p10), %v1375_v48, %v1369_v61 }
 0x3fd   :  { %v1418_v61 = vld [vmem:[#allocation16 + $0x370] sm:$0xff] (%p903_p10) }
 0x3fe   : > { %4711 = vtanh.f32 %v1265_v39  ;;  %v1321_v39 = vld [vmem:[#allocation16 + $0x68] sm:$0xff] (%p903_p10)  ;;  %4145 = vmatpush1.bf16.msra.mxu0 (%p903_p10), %v4144_v54  ;;  %v1368_v54 = vld [vmem:[#allocation16 + $0x1e0] sm:$0xff] (%p903_p10) }
 0x3ff   : > { %4713 = vrcp.f32 %v1254_v57  ;;  %v1316_v57 = vld [vmem:[#allocation16 + $0x40] sm:$0xff] (%p903_p10) }
 0x408   : > { %v4712_v44 = vpop.eup %4711 }
 0x409   : > { %v1267_v56 = vsub.f32 %v5218_v49, %v4712_v44  ;;  %v4714_v58 = vpop.eup %4713 }
 0x40a   :  { %905 = sbr.rel (!%p903_p10) target bundleno = 712 (0x2c8), region = 226 }
 0x40b   : > { %v1268_v47 = vmul.f32 %v4714_v58, %v1267_v56  ;;  %v1327_v56 = vld [vmem:[#allocation16 + $0x98] sm:$0xff] (%p903_p10) }
 0x40c   :  { %v1323_v58 = vld [vmem:[#allocation16 + $0x78] sm:$0xff] (%p903_p10)  ;;  %v4146_v60 = vpack.c.bf16 (%p903_p10), %v1327_v56, %v1321_v39  ;;  %v4226_v39 = vpack.c.bf16 (%p903_p10), %v1377_v52, %v1371_v63  ;;  %v1381_v56 = vld [vmem:[#allocation16 + $0x248] sm:$0xff] (%p903_p10)  ;;  %v1424_v63 = vld [vmem:[#allocation16 + $0x3a0] sm:$0xff] (%p903_p10) }
 0x40d   : > { %v1269_v45 = vadd.f32 %v4712_v44, %v1268_v47  ;;  %v4208_v44 = vpack.c.bf16 (%p903_p10), %v1316_v57, %v1310_v46  ;;  %v4210_v1 = vpack.c.bf16 (%p903_p10), %v1329_v59, %v1323_v58  ;;  %v1362_v47 = vld [vmem:[#allocation16 + $0x1b0] sm:$0xff] (%p903_p10)  ;;  %v1387_v58 = vld [vmem:[#allocation16 + $0x278] sm:$0xff] (%p903_p10)  ;;  %v1429_v52 = vld [vmem:[#allocation16 + $0x3c8] sm:$0xff] (%p903_p10) }
 0x40e   :  { %4147 = vmatprep.subr.bf16.mxu0 (%p903_p10), %v4146_v60  ;;  %v1374_v46 = vld [vmem:[#allocation16 + $0x210] sm:$0xff] (%p903_p10)  ;;  %v1383_v59 = vld [vmem:[#allocation16 + $0x258] sm:$0xff] (%p903_p10)  ;;  %v1389_v60 = vld [vmem:[#allocation16 + $0x288] sm:$0xff] (%p903_p10)  ;;  %v4166_v3 = vpack.c.bf16 (%p903_p10), %v1387_v58, %v1381_v56 }
 0x40f   : > { %v1285_v0 = vsel %vm1284_vm5, %v1269_v45, 0.0  ;;  %v1291_v49 = vsel %vm1284_vm5, %v1269_v45, %v5218_v49   ;;  %4209 = vmatpush1.bf16.msra.mxu1 (%p903_p10), %v4208_v44  ;;  %4149 = vmatpush1.bf16.msra.mxu0 (%p903_p10), %v4148_v5  ;;  %v1358_v45 = vld [vmem:[#allocation16 + $0x190] sm:$0xff] (%p903_p10)  ;;  %v1376_v44 = vld [vmem:[#allocation16 + $0x220] sm:$0xff] (%p903_p10)  ;;  %v4230_v7 = vpack.c.bf16 (%p903_p10), %v1389_v60, %v1383_v59  ;;  %v1441_v60 = vld [vmem:[#allocation16 + $0x428] sm:$0xff] (%p903_p10) }
 0x410   : > { %1289 = vst [vmem:[%s1288_s29 + $0x8] sm:$0xff] %v1285_v0  ;;  %4211 = vmatprep.subr.bf16.mxu1 (%p903_p10), %v4210_v1  ;;  %4151 = vmatprep.subr.bf16.mxu0 (%p903_p10), %v4150_v10  ;;  %v1356_v49 = vld [vmem:[#allocation16 + $0x180] sm:$0xff] (%p903_p10)  ;;  %v4222_v0 = vpack.c.bf16 (%p903_p10), %v1365_v34, %v1359_v32  ;;  %v4224_v40 = vpack.c.bf16 (%p903_p10), %v1364_v43, %v1358_v45  ;;  %v1370_v57 = vld [vmem:[#allocation16 + $0x1f0] sm:$0xff] (%p903_p10)  ;;  %v1399_v10 = vld [vmem:[#allocation16 + $0x2d8] sm:$0xff] (%p903_p10) }
 0x411   :  { %v4160_v33 = vpack.c.bf16 %v1362_v47, %v1356_v49  ;;  %v4164_v1 = vpack.c.bf16 %v1374_v46, %v1368_v54  ;;  %v4228_v2 = vpack.c.bf16 %v1376_v44, %v1370_v57  ;;  %v1386_v5 = vld [vmem:[#allocation16 + $0x270] sm:$0xff]  ;;  %v1412_v32 = vld [vmem:[#allocation16 + $0x340] sm:$0xff]  ;;  %v1417_v34 = vld [vmem:[#allocation16 + $0x368] sm:$0xff]  ;;  %v4176_v49 = vpack.c.bf16 %v1410_v29, %v1404_v28 }
 0x412   :  { %v4168_v13 = vpack.c.bf16 %v1386_v5, %v1380_v4  ;;  %v4240_v47 = vpack.c.bf16 %v1412_v32, %v1406_v30  ;;  %v1422_v43 = vld [vmem:[#allocation16 + $0x390] sm:$0xff]  ;;  %v4244_v46 = vpack.c.bf16 %v1424_v63, %v1418_v61  ;;  %v1436_v59 = vld [vmem:[#allocation16 + $0x400] sm:$0xff]  ;;  %v1473_v28 = vld [vmem:[#allocation16 + $0x528] sm:$0xff] }
 0x413   :  { %4213 = vmatpush1.bf16.msra.mxu1 %v4212_v9  ;;  %4153 = vmatpush1.bf16.msra.mxu0 %v4152_v18  ;;  %v1393_v9 = vld [vmem:[#allocation16 + $0x2a8] sm:$0xff]  ;;  %v1394_v18 = vld [vmem:[#allocation16 + $0x2b0] sm:$0xff]  ;;  %v1440_v5 = vld [vmem:[#allocation16 + $0x420] sm:$0xff] }
 0x414   :  { %4215 = vmatprep.subr.bf16.mxu1 %v4214_v14  ;;  %4155 = vmatprep.subr.bf16.mxu0 %v4154_v23  ;;  %v4232_v14 = vpack.c.bf16 %v1388_v8, %v1382_v6  ;;  %v4170_v15 = vpack.c.bf16 %v1399_v10, %v1393_v9  ;;  %v1407_v23 = vld [vmem:[#allocation16 + $0x318] sm:$0xff]  ;;  %v4236_v26 = vpack.c.bf16 %v1400_v20, %v1394_v18  ;;  %v1434_v44 = vld [vmem:[#allocation16 + $0x3f0] sm:$0xff]  ;;  %v1448_v10 = vld [vmem:[#allocation16 + $0x460] sm:$0xff] }
 0x415   :  { %v4238_v31 = vpack.c.bf16 %v1413_v24, %v1407_v23  ;;  %v1430_v56 = vld [vmem:[#allocation16 + $0x3d0] sm:$0xff]  ;;  %v1452_v20 = vld [vmem:[#allocation16 + $0x480] sm:$0xff] }
 0x416   :  { %v4248_v6 = vpack.c.bf16 %v1436_v59, %v1430_v56  ;;  %v1446_v8 = vld [vmem:[#allocation16 + $0x450] sm:$0xff]  ;;  %v1460_v24 = vld [vmem:[#allocation16 + $0x4c0] sm:$0xff] }
 0x417   :  { %4217 = vmatpush1.bf16.msra.mxu1 %v4216_v22  ;;  %4157 = vmatpush1.bf16.msra.mxu0 %v4156_v35  ;;  %v1411_v22 = vld [vmem:[#allocation16 + $0x338] sm:$0xff]  ;;  %v1442_v9 = vld [vmem:[#allocation16 + $0x430] sm:$0xff]  ;;  %v4188_v17 = vpack.c.bf16 %v1446_v8, %v1440_v5  ;;  %v1464_v32 = vld [vmem:[#allocation16 + $0x4e0] sm:$0xff] }
 0x418   :  { %4219 = vmatprep.subr.bf16.mxu1 %v4218_v27  ;;  %4159 = vmatprep.subr.bf16.mxu0 %v4158_v41  ;;  %v4174_v27 = vpack.c.bf16 %v1411_v22, %v1405_v21  ;;  %v1423_v35 = vld [vmem:[#allocation16 + $0x398] sm:$0xff]  ;;  %v1425_v41 = vld [vmem:[#allocation16 + $0x3a8] sm:$0xff]  ;;  %v4252_v18 = vpack.c.bf16 %v1448_v10, %v1442_v9  ;;  %v1458_v21 = vld [vmem:[#allocation16 + $0x4b0] sm:$0xff] }
 0x419   :  { %v4178_v45 = vpack.c.bf16 %v1423_v35, %v1417_v34  ;;  %v1454_v22 = vld [vmem:[#allocation16 + $0x490] sm:$0xff]  ;;  %v4192_v29 = vpack.c.bf16 %v1458_v21, %v1452_v20  ;;  %v1476_v63 = vld [vmem:[#allocation16 + $0x540] sm:$0xff]  ;;  %v1319_v5 = vld [vmem:[#allocation16 + $0x58] sm:$0xff] }
 0x41a   :  { %v4256_v30 = vpack.c.bf16 %v1460_v24, %v1454_v22  ;;  %v1470_v34 = vld [vmem:[#allocation16 + $0x510] sm:$0xff]  ;;  %v1488_v59 = vld [vmem:[#allocation16 + $0x5a0] sm:$0xff]  ;;  %v1343_v20 = vld [vmem:[#allocation16 + $0x118] sm:$0xff] }
 0x41b   :  { %4221 = vmatpush1.bf16.msra.mxu1 %v4220_v38  ;;  %4161 = vmatpush1.bf16.msra.mxu0 %v4160_v33  ;;  %v1419_v38 = vld [vmem:[#allocation16 + $0x378] sm:$0xff]  ;;  %v1466_v35 = vld [vmem:[#allocation16 + $0x4f0] sm:$0xff]  ;;  %v1312_v9 = vld [vmem:[#allocation16 + $0x20] sm:$0xff] }
 0x41c   :  { %4223 = vmatprep.subr.bf16.mxu1 %v4222_v0  ;;  %4163 = vmatprep.subr.bf16.mxu0 %v4162_v55  ;;  %v1416_v0 = vld [vmem:[#allocation16 + $0x360] sm:$0xff]  ;;  %v4242_v48 = vpack.c.bf16 %v1425_v41, %v1419_v38  ;;  %v1435_v33 = vld [vmem:[#allocation16 + $0x3f8] sm:$0xff]  ;;  %v1437_v55 = vld [vmem:[#allocation16 + $0x408] sm:$0xff] }
 0x41d   :  { %v4180_v54 = vpack.c.bf16 %v1422_v43, %v1416_v0  ;;  %v4182_v57 = vpack.c.bf16 %v1435_v33, %v1429_v52  ;;  %v1472_v41 = vld [vmem:[#allocation16 + $0x520] sm:$0xff]  ;;  %v1485_v0 = vld [vmem:[#allocation16 + $0x588] sm:$0xff]  ;;  %v4196_v43 = vpack.c.bf16 %v1470_v34, %v1464_v32  ;;  %v1482_v52 = vld [vmem:[#allocation16 + $0x570] sm:$0xff] }
 0x41e   :  { %v4260_v61 = vpack.c.bf16 %v1472_v41, %v1466_v35  ;;  %v1478_v33 = vld [vmem:[#allocation16 + $0x550] sm:$0xff]  ;;  %v1348_v34 = vld [vmem:[#allocation16 + $0x140] sm:$0xff]  ;;  %v1367_v41 = vld [vmem:[#allocation16 + $0x1d8] sm:$0xff] }
 0x41f   :  { %4225 = vmatpush1.bf16.msra.mxu1 %v4224_v40  ;;  %4165 = vmatpush1.bf16.msra.mxu0 %v4164_v1  ;;  %v1431_v40 = vld [vmem:[#allocation16 + $0x3d8] sm:$0xff]  ;;  %v1318_v10 = vld [vmem:[#allocation16 + $0x50] sm:$0xff] }
 0x420   :  { %4227 = vmatprep.subr.bf16.mxu1 %v4226_v39  ;;  %4167 = vmatprep.subr.bf16.mxu0 %v4166_v3  ;;  %v1428_v39 = vld [vmem:[#allocation16 + $0x3c0] sm:$0xff]  ;;  %v4246_v58 = vpack.c.bf16 %v1437_v55, %v1431_v40  ;;  %v1447_v1 = vld [vmem:[#allocation16 + $0x458] sm:$0xff]  ;;  %v1449_v3 = vld [vmem:[#allocation16 + $0x468] sm:$0xff] }
 0x421   :  { %v4184_v4 = vpack.c.bf16 %v1434_v44, %v1428_v39  ;;  %v1484_v55 = vld [vmem:[#allocation16 + $0x580] sm:$0xff]  ;;  %v1497_v39 = vld [vmem:[#allocation16 + $0x5e8] sm:$0xff]  ;;  %v4200_v44 = vpack.c.bf16 %v1482_v52, %v1476_v63  ;;  %v6158_v21 = vld [vmem:[#allocation4 + $0x18] sm:$0xff] }
 0x422   :  { %v4264_v56 = vpack.c.bf16 %v1484_v55, %v1478_v33  ;;  %v1354_v35 = vld [vmem:[#allocation16 + $0x170] sm:$0xff]  ;;  %v1379_v63 = vld [vmem:[#allocation16 + $0x238] sm:$0xff]  ;;  %v6182_v52 = vld [vmem:[#allocation4 + $0x48] sm:$0xff] }
 0x423   :  { %4229 = vmatpush1.bf16.msra.mxu1 %v4228_v2  ;;  %4169 = vmatpush1.bf16.msra.mxu0 %v4168_v13  ;;  %v1443_v2 = vld [vmem:[#allocation16 + $0x438] sm:$0xff] }
 0x424   :  { %4231 = vmatprep.subr.bf16.mxu1 %v4230_v7  ;;  %4171 = vmatprep.subr.bf16.mxu0 %v4170_v15  ;;  %v4186_v7 = vpack.c.bf16 %v1447_v1, %v1441_v60  ;;  %v4250_v11 = vpack.c.bf16 %v1449_v3, %v1443_v2  ;;  %v1459_v13 = vld [vmem:[#allocation16 + $0x4b8] sm:$0xff]  ;;  %v1494_v60 = vld [vmem:[#allocation16 + $0x5d0] sm:$0xff]  ;;  %v1496_v3 = vld [vmem:[#allocation16 + $0x5e0] sm:$0xff] }
 0x425   :  { %v1455_v15 = vld [vmem:[#allocation16 + $0x498] sm:$0xff]  ;;  %v1490_v1 = vld [vmem:[#allocation16 + $0x5b0] sm:$0xff] }
 0x426   :  { %v4254_v23 = vpack.c.bf16 %v1461_v16, %v1455_v15  ;;  %v4272_v15 = vpack.c.bf16 %v1318_v10, %v1312_v9  ;;  %v1402_v9 = vld [vmem:[#allocation16 + $0x2f0] sm:$0xff]  ;;  %v1409_v10 = vld [vmem:[#allocation16 + $0x328] sm:$0xff] }
 0x427   :  { %4233 = vmatpush1.bf16.msra.mxu1 %v4232_v14  ;;  %4173 = vmatpush1.bf16.msra.mxu0 %v4172_v25  ;;  %v6151_v14 = vld [vmem:[#allocation4 + $0x8] sm:$0xff] }
 0x428   :  { %4235 = vmatprep.subr.bf16.mxu1 %v4234_v19  ;;  %4175 = vmatprep.subr.bf16.mxu0 %v4174_v27  ;;  %v4190_v19 = vpack.c.bf16 %v1459_v13, %v1453_v12  ;;  %v1465_v25 = vld [vmem:[#allocation16 + $0x4e8] sm:$0xff]  ;;  %v1467_v27 = vld [vmem:[#allocation16 + $0x4f8] sm:$0xff] }
 0x429   :  { %1596 = vmatprep.mubr.f32.mxu0 %v6151_v14  ;;  %1709 = vmatprep.mubr.f32.mxu1 %v6151_v14  ;;  %v4258_v38 = vpack.c.bf16 %v1473_v28, %v1467_v27  ;;  %v1331_v12 = vld [vmem:[#allocation16 + $0xb8] sm:$0xff]  ;;  %v1349_v27 = vld [vmem:[#allocation16 + $0x148] sm:$0xff] }
 0x42a   :  { %v6155_v13 = vld [vmem:[#allocation4] sm:$0xff] }
 0x42b   :  { %4237 = vmatpush1.bf16.msra.mxu1 %v4236_v26  ;;  %4177 = vmatpush1.bf16.msra.mxu0 %v4176_v49  ;;  %v1471_v26 = vld [vmem:[#allocation16 + $0x518] sm:$0xff]  ;;  %v1477_v49 = vld [vmem:[#allocation16 + $0x548] sm:$0xff] }
 0x42c   :  { %4239 = vmatprep.subr.bf16.mxu1 %v4238_v31  ;;  %4179 = vmatprep.subr.bf16.mxu0 %v4178_v45  ;;  %v4194_v31 = vpack.c.bf16 %v1471_v26, %v1465_v25  ;;  %v1479_v45 = vld [vmem:[#allocation16 + $0x558] sm:$0xff]  ;;  %v1336_v25 = vld [vmem:[#allocation16 + $0xe0] sm:$0xff]  ;;  %v1342_v26 = vld [vmem:[#allocation16 + $0x110] sm:$0xff] }
 0x42d   :  { %v4262_v40 = vpack.c.bf16 %v1485_v0, %v1479_v45  ;;  %v1355_v28 = vld [vmem:[#allocation16 + $0x178] sm:$0xff]  ;;  %v6177_v45 = vld [vmem:[#allocation4 + $0x30] sm:$0xff] }
 0x42e   :  { %v4282_v32 = vpack.c.bf16 %v1355_v28, %v1349_v27  ;;  %v1426_v27 = vld [vmem:[#allocation16 + $0x3b0] sm:$0xff]  ;;  %v1433_v28 = vld [vmem:[#allocation16 + $0x3e8] sm:$0xff] }
 0x42f   :  { %4241 = vmatpush1.bf16.msra.mxu1 %v4240_v47  ;;  %4181 = vmatpush1.bf16.msra.mxu0 %v4180_v54  ;;  %v1483_v47 = vld [vmem:[#allocation16 + $0x578] sm:$0xff]  ;;  %v1489_v54 = vld [vmem:[#allocation16 + $0x5a8] sm:$0xff] }
 0x430   :  { %4243 = vmatprep.subr.bf16.mxu1 %v4242_v48  ;;  %4183 = vmatprep.subr.bf16.mxu0 %v4182_v57  ;;  %v4198_v48 = vpack.c.bf16 %v1483_v47, %v1477_v49  ;;  %v1491_v57 = vld [vmem:[#allocation16 + $0x5b8] sm:$0xff]  ;;  %v4284_v47 = vpack.c.bf16 %v1354_v35, %v1348_v34  ;;  %v1432_v35 = vld [vmem:[#allocation16 + $0x3e0] sm:$0xff] }
 0x431   :  { %v4266_v2 = vpack.c.bf16 %v1497_v39, %v1491_v57  ;;  %v6174_v49 = vld [vmem:[#allocation4 + $0x38] sm:$0xff]  ;;  %v1385_v57 = vld [vmem:[#allocation16 + $0x268] sm:$0xff] }
 0x432   :  { %v1391_v39 = vld [vmem:[#allocation16 + $0x298] sm:$0xff] }
 0x433   :  { %4245 = vmatpush1.bf16.msra.mxu1 %v4244_v46  ;;  %4185 = vmatpush1.bf16.msra.mxu0 %v4184_v4  ;;  %v1495_v46 = vld [vmem:[#allocation16 + $0x5d8] sm:$0xff]  ;;  %v1313_v4 = vld [vmem:[#allocation16 + $0x28] sm:$0xff] }
 0x434   :  { %4247 = vmatprep.subr.bf16.mxu1 %v4246_v58  ;;  %4187 = vmatprep.subr.bf16.mxu0 %v4186_v7  ;;  %v4202_v58 = vpack.c.bf16 %v1495_v46, %v1489_v54  ;;  %v4268_v7 = vpack.c.bf16 %v1496_v3, %v1490_v1  ;;  %v4270_v8 = vpack.c.bf16 %v1319_v5, %v1313_v4  ;;  %v1372_v54 = vld [vmem:[#allocation16 + $0x200] sm:$0xff]  ;;  %v1378_v46 = vld [vmem:[#allocation16 + $0x230] sm:$0xff]  ;;  %v1403_v3 = vld [vmem:[#allocation16 + $0x2f8] sm:$0xff] }
 0x435   :  { %v1390_v1 = vld [vmem:[#allocation16 + $0x290] sm:$0xff]  ;;  %v6198_v4 = vld [vmem:[#allocation4 + $0x68] sm:$0xff] }
 0x437   :  { %4249 = vmatpush1.bf16.msra.mxu1 %v4248_v6  ;;  %4189 = vmatpush1.bf16.msra.mxu0 %v4188_v17  ;;  %v4204_v6 = vpack.c.bf16 %v1494_v60, %v1488_v59  ;;  %v1324_v17 = vld [vmem:[#allocation16 + $0x80] sm:$0xff]  ;;  %v4294_v59 = vpack.c.bf16 %v1391_v39, %v1385_v57  ;;  %v1475_v57 = vld [vmem:[#allocation16 + $0x538] sm:$0xff] }
 0x438   :  { %4251 = vmatprep.subr.bf16.mxu1 %v4250_v11  ;;  %4191 = vmatprep.subr.bf16.mxu0 %v4190_v19  ;;  %v1325_v11 = vld [vmem:[#allocation16 + $0x88] sm:$0xff]  ;;  %v1384_v60 = vld [vmem:[#allocation16 + $0x260] sm:$0xff] }
 0x439   :  { %v4274_v16 = vpack.c.bf16 %v1331_v12, %v1325_v11  ;;  %v1337_v19 = vld [vmem:[#allocation16 + $0xe8] sm:$0xff]  ;;  %v4296_v5 = vpack.c.bf16 %v1390_v1, %v1384_v60  ;;  %v1415_v11 = vld [vmem:[#allocation16 + $0x358] sm:$0xff]  ;;  %v1474_v60 = vld [vmem:[#allocation16 + $0x530] sm:$0xff] }
 0x43a   :  { %v4278_v24 = vpack.c.bf16 %v1343_v20, %v1337_v19  ;;  %v6206_v12 = vld [vmem:[#allocation4 + $0x78] sm:$0xff]  ;;  %v1421_v20 = vld [vmem:[#allocation16 + $0x388] sm:$0xff] }
 0x43b   :  { %4253 = vmatpush1.bf16.msra.mxu1 %v4252_v18  ;;  %4193 = vmatpush1.bf16.msra.mxu0 %v4192_v29  ;;  %v1330_v18 = vld [vmem:[#allocation16 + $0xb0] sm:$0xff]  ;;  %v6166_v29 = vld [vmem:[#allocation4 + $0x28] sm:$0xff] }
 0x43c   :  { %4255 = vmatprep.subr.bf16.mxu1 %v4254_v23  ;;  %4195 = vmatprep.subr.bf16.mxu0 %v4194_v31  ;;  %v4276_v22 = vpack.c.bf16 %v1330_v18, %v1324_v17  ;;  %v6161_v23 = vld [vmem:[#allocation4 + $0x10] sm:$0xff]  ;;  %v6169_v31 = vld [vmem:[#allocation4 + $0x20] sm:$0xff]  ;;  %v4302_v17 = vpack.c.bf16 %v1415_v11, %v1409_v10 }
 0x43d   :  { %v1408_v18 = vld [vmem:[#allocation16 + $0x320] sm:$0xff]  ;;  %v1414_v19 = vld [vmem:[#allocation16 + $0x350] sm:$0xff]  ;;  %v1481_v1 = vld [vmem:[#allocation16 + $0x568] sm:$0xff] }
 0x43e   :  { %v1499_v10 = vld [vmem:[#allocation16 + $0x5f8] sm:$0xff] }
 0x43f   :  { %4257 = vmatpush1.bf16.msra.mxu1 %v4256_v30  ;;  %4197 = vmatpush1.bf16.msra.mxu0 %v4196_v43  ;;  %v4280_v30 = vpack.c.bf16 %v1342_v26, %v1336_v25  ;;  %v1360_v43 = vld [vmem:[#allocation16 + $0x1a0] sm:$0xff] }
 0x440   :  { %4259 = vmatprep.subr.bf16.mxu1 %v4258_v38  ;;  %4199 = vmatprep.subr.bf16.mxu0 %v4198_v48  ;;  %v1361_v38 = vld [vmem:[#allocation16 + $0x1a8] sm:$0xff]  ;;  %v1420_v26 = vld [vmem:[#allocation16 + $0x380] sm:$0xff] }
 0x441   :  { %v4286_v0 = vpack.c.bf16 %v1367_v41, %v1361_v38  ;;  %v1373_v48 = vld [vmem:[#allocation16 + $0x208] sm:$0xff]  ;;  %v1438_v38 = vld [vmem:[#allocation16 + $0x410] sm:$0xff] }
 0x442   :  { %v4290_v55 = vpack.c.bf16 %v1379_v63, %v1373_v48  ;;  %v1445_v41 = vld [vmem:[#allocation16 + $0x448] sm:$0xff]  ;;  %v1450_v48 = vld [vmem:[#allocation16 + $0x470] sm:$0xff]  ;;  %v1463_v63 = vld [vmem:[#allocation16 + $0x4d8] sm:$0xff] }
 0x443   :  { %4261 = vmatpush1.bf16.msra.mxu1 %v4260_v61  ;;  %4201 = vmatpush1.bf16.msra.mxu0 %v4200_v44  ;;  %v1366_v61 = vld [vmem:[#allocation16 + $0x1d0] sm:$0xff] }
 0x444   :  { %4263 = vmatprep.subr.bf16.mxu1 %v4262_v40  ;;  %4203 = vmatprep.subr.bf16.mxu0 %v4202_v58  ;;  %v4288_v33 = vpack.c.bf16 %v1366_v61, %v1360_v43  ;;  %v6185_v40 = vld [vmem:[#allocation4 + $0x40] sm:$0xff]  ;;  %v6190_v44 = vld [vmem:[#allocation4 + $0x58] sm:$0xff]  ;;  %v6193_v58 = vld [vmem:[#allocation4 + $0x50] sm:$0xff] }
 0x445   :  { %v1444_v61 = vld [vmem:[#allocation16 + $0x440] sm:$0xff] }
 0x447   :  { %4265 = vmatpush1.bf16.msra.mxu1 %v4264_v56  ;;  %4205 = vmatpush1.bf16.msra.mxu0 %v4204_v6  ;;  %v4292_v56 = vpack.c.bf16 %v1378_v46, %v1372_v54  ;;  %v6201_v6 = vld [vmem:[#allocation4 + $0x60] sm:$0xff]  ;;  %v1462_v54 = vld [vmem:[#allocation16 + $0x4d0] sm:$0xff]  ;;  %v1469_v46 = vld [vmem:[#allocation16 + $0x508] sm:$0xff] }
 0x448   :  { %4267 = vmatprep.subr.bf16.mxu1 %v4266_v2  ;;  %4271 = vmatprep.subr.bf16.mxu0 %v4270_v8  ;;  %v1397_v2 = vld [vmem:[#allocation16 + $0x2c8] sm:$0xff] }
 0x44a   :  { %1597 = vmatmul.mubr.f32.vlgmr.msra.gmra.mrb[0].mxu0 %v6155_v13 }
 0x44b   :  { %4269 = vmatpush1.bf16.msra.mxu1 %v4268_v7  ;;  %4273 = vmatpush1.bf16.msra.mxu0 %v4272_v15  ;;  %v4298_v7 = vpack.c.bf16 %v1403_v3, %v1397_v2  ;;  %v1487_v2 = vld [vmem:[#allocation16 + $0x598] sm:$0xff] }
 0x44c   :  { %4582 = vmatprep.subr.bf16.mxu1 %v4270_v8  ;;  %4275 = vmatprep.subr.bf16.mxu0 %v4274_v16  ;;  %v1396_v8 = vld [vmem:[#allocation16 + $0x2c0] sm:$0xff] }
 0x44d   :  { %1602 = vmatprep.mubr.f32.mxu0 %v6158_v21 }
 0x44e   :  { %1710 = vmatmul.mubr.f32.vlgmr.msra.gmra.mrb[0].mxu1 %v6155_v13  ;;  %1603 = vmatmul.mubr.f32.gmra.mrb[2].mxu0 %v6161_v23 }
 0x44f   :  { %4598 = vmatpush1.bf16.msra.mxu1 %v4272_v15  ;;  %1715 = vmatprep.mubr.f32.mxu1 %v6158_v21  ;;  %v4300_v15 = vpack.c.bf16 %v1402_v9, %v1396_v8  ;;  %v1486_v8 = vld [vmem:[#allocation16 + $0x590] sm:$0xff]  ;;  %v1493_v9 = vld [vmem:[#allocation16 + $0x5c8] sm:$0xff] }
 0x450   :  { %4583 = vmatprep.subr.bf16.mxu1 %v4274_v16  ;;  %4277 = vmatpush1.bf16.msra.mxu0 %v4276_v22  ;;  %v6209_v16 = vld [vmem:[#allocation4 + $0x70] sm:$0xff] }
 0x451   :  { %4279 = vmatprep.subr.bf16.mxu0 %v4278_v24  ;;  %1608 = vmatprep.mubr.f32.mxu0 %v6166_v29 }
 0x452   :  { %1716 = vmatmul.mubr.f32.gmra.mrb[2].mxu1 %v6161_v23  ;;  %1609 = vmatmul.mubr.f32.gmra.mrb[4].mxu0 %v6169_v31 }
 0x453   :  { %4599 = vmatpush1.bf16.msra.mxu1 %v4276_v22  ;;  %1721 = vmatprep.mubr.f32.mxu1 %v6166_v29  ;;  %v1427_v22 = vld [vmem:[#allocation16 + $0x3b8] sm:$0xff] }
 0x454   :  { %4584 = vmatprep.subr.bf16.mxu1 %v4278_v24  ;;  %4281 = vmatpush1.bf16.msra.mxu0 %v4280_v30  ;;  %v4304_v24 = vpack.c.bf16 %v1414_v19, %v1408_v18  ;;  %v4306_v25 = vpack.c.bf16 %v1427_v22, %v1421_v20  ;;  %v1498_v18 = vld [vmem:[#allocation16 + $0x5f0] sm:$0xff]  ;;  %v6261_v22 = vld [vmem:[#allocation19 + $0x78] sm:$0xff] }
 0x455   :  { %4283 = vmatprep.subr.bf16.mxu0 %v4282_v32  ;;  %1614 = vmatprep.mubr.f32.mxu0 %v6174_v49  ;;  %v6259_v20 = vld [vmem:[#allocation19 + $0x70] sm:$0xff] }
 0x456   :  { %1722 = vmatmul.mubr.f32.gmra.mrb[4].mxu1 %v6169_v31  ;;  %1615 = vmatmul.mubr.f32.gmra.mrb[6].mxu0 %v6177_v45 }
 0x457   :  { %4600 = vmatpush1.bf16.msra.mxu1 %v4280_v30  ;;  %1727 = vmatprep.mubr.f32.mxu1 %v6174_v49  ;;  %v1439_v30 = vld [vmem:[#allocation16 + $0x418] sm:$0xff] }
 0x458   :  { %4585 = vmatprep.subr.bf16.mxu1 %v4282_v32  ;;  %4285 = vmatpush1.bf16.msra.mxu0 %v4284_v47  ;;  %v4308_v32 = vpack.c.bf16 %v1426_v27, %v1420_v26  ;;  %v4310_v34 = vpack.c.bf16 %v1439_v30, %v1433_v28  ;;  %v6267_v26 = vld [vmem:[#allocation19 + $0x90] sm:$0xff]  ;;  %v6269_v27 = vld [vmem:[#allocation19 + $0x98] sm:$0xff]  ;;  %v6271_v28 = vld [vmem:[#allocation19 + $0xa0] sm:$0xff] }
 0x459   :  { %4287 = vmatprep.subr.bf16.mxu0 %v4286_v0  ;;  %1620 = vmatprep.mubr.f32.mxu0 %v6182_v52  ;;  %v6273_v30 = vld [vmem:[#allocation19 + $0xa8] sm:$0xff] }
 0x45a   :  { %1728 = vmatmul.mubr.f32.gmra.mrb[6].mxu1 %v6177_v45  ;;  %1621 = vmatmul.mubr.f32.gmra.mrb[8].mxu0 %v6185_v40 }
 0x45b   :  { %4601 = vmatpush1.bf16.msra.mxu1 %v4284_v47  ;;  %1733 = vmatprep.mubr.f32.mxu1 %v6182_v52  ;;  %v1451_v47 = vld [vmem:[#allocation16 + $0x478] sm:$0xff] }
 0x45c   :  { %4586 = vmatprep.subr.bf16.mxu1 %v4286_v0  ;;  %4289 = vmatpush1.bf16.msra.mxu0 %v4288_v33  ;;  %v4312_v0 = vpack.c.bf16 %v1438_v38, %v1432_v35  ;;  %v4314_v43 = vpack.c.bf16 %v1451_v47, %v1445_v41  ;;  %v6279_v35 = vld [vmem:[#allocation19 + $0xc0] sm:$0xff]  ;;  %v6281_v38 = vld [vmem:[#allocation19 + $0xc8] sm:$0xff]  ;;  %v6283_v41 = vld [vmem:[#allocation19 + $0xd0] sm:$0xff] }
 0x45d   :  { %4291 = vmatprep.subr.bf16.mxu0 %v4290_v55  ;;  %1626 = vmatprep.mubr.f32.mxu0 %v6190_v44  ;;  %v6285_v47 = vld [vmem:[#allocation19 + $0xd8] sm:$0xff] }
 0x45e   :  { %1734 = vmatmul.mubr.f32.gmra.mrb[8].mxu1 %v6185_v40  ;;  %1627 = vmatmul.mubr.f32.gmra.mrb[10].mxu0 %v6193_v58 }
 0x45f   :  { %4602 = vmatpush1.bf16.msra.mxu1 %v4288_v33  ;;  %1739 = vmatprep.mubr.f32.mxu1 %v6190_v44 }
 0x460   :  { %4587 = vmatprep.subr.bf16.mxu1 %v4290_v55  ;;  %4293 = vmatpush1.bf16.msra.mxu0 %v4292_v56  ;;  %v1456_v55 = vld [vmem:[#allocation16 + $0x4a0] sm:$0xff] }
 0x461   :  { %4295 = vmatprep.subr.bf16.mxu0 %v4294_v59  ;;  %1632 = vmatprep.mubr.f32.mxu0 %v6198_v4  ;;  %v4320_v39 = vpack.c.bf16 %v1462_v54, %v1456_v55  ;;  %v6303_v55 = vld [vmem:[#allocation19 + $0x120] sm:$0xff]  ;;  %v6305_v54 = vld [vmem:[#allocation19 + $0x128] sm:$0xff] }
 0x462   :  { %1740 = vmatmul.mubr.f32.gmra.mrb[10].mxu1 %v6193_v58  ;;  %1633 = vmatmul.mubr.f32.gmra.mrb[12].mxu0 %v6201_v6 }
 0x463   :  { %4603 = vmatpush1.bf16.msra.mxu1 %v4292_v56  ;;  %1745 = vmatprep.mubr.f32.mxu1 %v6198_v4  ;;  %v4322_v56 = vpack.c.bf16 %v1475_v57, %v1469_v46  ;;  %v6307_v46 = vld [vmem:[#allocation19 + $0x130] sm:$0xff]  ;;  %v6309_v57 = vld [vmem:[#allocation19 + $0x138] sm:$0xff] }
 0x464   :  { %4588 = vmatprep.subr.bf16.mxu1 %v4294_v59  ;;  %4297 = vmatpush1.bf16.msra.mxu0 %v4296_v5  ;;  %v1468_v59 = vld [vmem:[#allocation16 + $0x500] sm:$0xff] }
 0x465   :  { %4299 = vmatprep.subr.bf16.mxu0 %v4298_v7  ;;  %1638 = vmatprep.mubr.f32.mxu0 %v6206_v12  ;;  %v4324_v3 = vpack.c.bf16 %v1474_v60, %v1468_v59  ;;  %v6315_v59 = vld [vmem:[#allocation19 + $0x150] sm:$0xff]  ;;  %v6317_v60 = vld [vmem:[#allocation19 + $0x158] sm:$0xff] }
 0x466   :  { %1746 = vmatmul.mubr.f32.gmra.mrb[12].mxu1 %v6201_v6  ;;  %1639 = vmatmul.mubr.f32.gmra.mrb[14].mxu0 %v6209_v16  ;;  %7459 = vst [vmem:[#allocation42_spill] sm:$0xff] %v6315_v59 }
 0x467   :  { %4604 = vmatpush1.bf16.msra.mxu1 %v4296_v5  ;;  %1751 = vmatprep.mubr.f32.mxu1 %v6206_v12  ;;  %v4326_v5 = vpack.c.bf16 %v1487_v2, %v1481_v1  ;;  %v6319_v1 = vld [vmem:[#allocation19 + $0x160] sm:$0xff]  ;;  %v6321_v2 = vld [vmem:[#allocation19 + $0x168] sm:$0xff] }
 0x468   :  { %4589 = vmatprep.subr.bf16.mxu1 %v4298_v7  ;;  %4301 = vmatpush1.bf16.msra.mxu0 %v4300_v15  ;;  %v1480_v7 = vld [vmem:[#allocation16 + $0x560] sm:$0xff]  ;;  %7460 = vst [vmem:[#allocation43_spill] sm:$0xff] %v6319_v1  ;;  %7461 = vst [vmem:[#allocation44_spill] sm:$0xff] %v6321_v2 }
 0x469   :  { %4303 = vmatprep.subr.bf16.mxu0 %v4302_v17  ;;  %1822 = vmatprep.mubr.f32.mxu0 %v6151_v14  ;;  %v1457_v14 = vld [vmem:[#allocation16 + $0x4a8] sm:$0xff]  ;;  %v4328_v11 = vpack.c.bf16 %v1486_v8, %v1480_v7 }
 0x46a   :  { %1752 = vmatmul.mubr.f32.gmra.mrb[14].mxu1 %v6209_v16  ;;  %v4318_v33 = vpack.c.bf16 %v1463_v63, %v1457_v14  ;;  %v6295_v14 = vld [vmem:[#allocation19 + $0x100] sm:$0xff]  ;;  %v6297_v63 = vld [vmem:[#allocation19 + $0x108] sm:$0xff] }
 0x46b   :  { %4605 = vmatpush1.bf16.msra.mxu1 %v4300_v15  ;;  %1846 = vmatprep.mubr.f32.mxu1 %v6182_v52  ;;  %v4316_v52 = vpack.c.bf16 %v1450_v48, %v1444_v61  ;;  %v4330_v15 = vpack.c.bf16 %v1499_v10, %v1493_v9  ;;  %v6291_v61 = vld [vmem:[#allocation19 + $0xf0] sm:$0xff]  ;;  %v6293_v48 = vld [vmem:[#allocation19 + $0xf8] sm:$0xff]  ;;  %v6327_v7 = vld [vmem:[#allocation20] sm:$0xff] }
 0x46c   :  { %4590 = vmatprep.subr.bf16.mxu1 %v4302_v17  ;;  %4305 = vmatpush1.bf16.msra.mxu0 %v4304_v24  ;;  %v1492_v17 = vld [vmem:[#allocation16 + $0x5c0] sm:$0xff]  ;;  %7463 = vst [vmem:[#allocation46_spill] sm:$0xff] %v6327_v7  ;;  %v6329_v8 = vld [vmem:[#allocation20 + $0x8] sm:$0xff]  ;;  %v6331_v9 = vld [vmem:[#allocation20 + $0x10] sm:$0xff] }
 0x46d   :  { %4307 = vmatprep.subr.bf16.mxu0 %v4306_v25  ;;  %v4332_v19 = vpack.c.bf16 %v1498_v18, %v1492_v17  ;;  %7464 = vst [vmem:[#allocation47_spill] sm:$0xff] %v6329_v8  ;;  %7465 = vst [vmem:[#allocation48_spill] sm:$0xff] %v6331_v9  ;;  %v6333_v10 = vld [vmem:[#allocation20 + $0x18] sm:$0xff]  ;;  %v6339_v17 = vld [vmem:[#allocation20 + $0x30] sm:$0xff] }
 0x46e   :  { %7466 = vst [vmem:[#allocation49_spill] sm:$0xff] %v6333_v10  ;;  %7469 = vst [vmem:[#allocation52_spill] sm:$0xff] %v6339_v17  ;;  %v6341_v18 = vld [vmem:[#allocation20 + $0x38] sm:$0xff]  ;;  %v6353_v9 = vld [vmem:[#allocation20 + $0x68] sm:$0xff] }
 0x46f   :  { %4606 = vmatpush1.bf16.msra.mxu1 %v4304_v24  ;;  %v6263_v24 = vld [vmem:[#allocation19 + $0x80] sm:$0xff]  ;;  %7470 = vst [vmem:[#allocation53_spill] sm:$0xff] %v6341_v18  ;;  %7476 = vst [vmem:[#allocation59_spill] sm:$0xff] %v6353_v9  ;;  %v6355_v10 = vld [vmem:[#allocation20 + $0x70] sm:$0xff] }
 0x470   :  { %4591 = vmatprep.subr.bf16.mxu1 %v4306_v25  ;;  %4309 = vmatpush1.bf16.msra.mxu0 %v4308_v32  ;;  %v6265_v25 = vld [vmem:[#allocation19 + $0x88] sm:$0xff]  ;;  %7477 = vst [vmem:[#allocation60_spill] sm:$0xff] %v6355_v10  ;;  %v6357_v7 = vld [vmem:[#allocation20 + $0x78] sm:$0xff]  ;;  %v6363_v18 = vld [vmem:[#allocation20 + $0x90] sm:$0xff] }
 0x471   :  { %4311 = vmatprep.subr.bf16.mxu0 %v4310_v34  ;;  %7478 = vst [vmem:[#allocation61_spill] sm:$0xff] %v6357_v7  ;;  %v6361_v17 = vld [vmem:[#allocation20 + $0x88] sm:$0xff]  ;;  %7481 = vst [vmem:[#allocation64_spill] sm:$0xff] %v6363_v18  ;;  %v6375_v9 = vld [vmem:[#allocation20 + $0xc0] sm:$0xff] }
 0x472   :  { %7480 = vst [vmem:[#allocation63_spill] sm:$0xff] %v6361_v17  ;;  %7487 = vst [vmem:[#allocation70_spill] sm:$0xff] %v6375_v9  ;;  %v6377_v10 = vld [vmem:[#allocation20 + $0xc8] sm:$0xff]  ;;  %v6379_v7 = vld [vmem:[#allocation20 + $0xd0] sm:$0xff] }
 0x473   :  { %4607 = vmatpush1.bf16.msra.mxu1 %v4308_v32  ;;  %v6275_v32 = vld [vmem:[#allocation19 + $0xb0] sm:$0xff]  ;;  %7488 = vst [vmem:[#allocation71_spill] sm:$0xff] %v6377_v10  ;;  %7489 = vst [vmem:[#allocation72_spill] sm:$0xff] %v6379_v7  ;;  %v6383_v17 = vld [vmem:[#allocation20 + $0xe0] sm:$0xff] }
 0x474   :  { %4592 = vmatprep.subr.bf16.mxu1 %v4310_v34  ;;  %4313 = vmatpush1.bf16.msra.mxu0 %v4312_v0  ;;  %v6277_v34 = vld [vmem:[#allocation19 + $0xb8] sm:$0xff]  ;;  %7491 = vst [vmem:[#allocation74_spill] sm:$0xff] %v6383_v17  ;;  %v6385_v18 = vld [vmem:[#allocation20 + $0xe8] sm:$0xff]  ;;  %v6399_v10 = vld [vmem:[#allocation20 + $0x120] sm:$0xff] }
 0x475   :  { %4315 = vmatprep.subr.bf16.mxu0 %v4314_v43  ;;  %7492 = vst [vmem:[#allocation75_spill] sm:$0xff] %v6385_v18  ;;  %v6397_v9 = vld [vmem:[#allocation20 + $0x118] sm:$0xff]  ;;  %7499 = vst [vmem:[#allocation82_spill] sm:$0xff] %v6399_v10  ;;  %v6401_v7 = vld [vmem:[#allocation20 + $0x128] sm:$0xff] }
 0x476   :  { %7498 = vst [vmem:[#allocation81_spill] sm:$0xff] %v6397_v9  ;;  %7500 = vst [vmem:[#allocation83_spill] sm:$0xff] %v6401_v7  ;;  %v6405_v17 = vld [vmem:[#allocation20 + $0x138] sm:$0xff]  ;;  %v6407_v18 = vld [vmem:[#allocation20 + $0x140] sm:$0xff] }
 0x477   :  { %4608 = vmatpush1.bf16.msra.mxu1 %v4312_v0  ;;  %v6287_v0 = vld [vmem:[#allocation19 + $0xe0] sm:$0xff]  ;;  %7502 = vst [vmem:[#allocation85_spill] sm:$0xff] %v6405_v17  ;;  %7503 = vst [vmem:[#allocation86_spill] sm:$0xff] %v6407_v18  ;;  %v6419_v9 = vld [vmem:[#allocation20 + $0x170] sm:$0xff] }
 0x478   :  { %4593 = vmatprep.subr.bf16.mxu1 %v4314_v43  ;;  %4317 = vmatpush1.bf16.msra.mxu0 %v4316_v52  ;;  %7458 = vst [vmem:[#allocation41_spill] sm:$0xff] %v6287_v0  ;;  %v6289_v43 = vld [vmem:[#allocation19 + $0xe8] sm:$0xff]  ;;  %7509 = vst [vmem:[#allocation92_spill] sm:$0xff] %v6419_v9  ;;  %v6421_v10 = vld [vmem:[#allocation20 + $0x178] sm:$0xff] }
 0x479   :  { %4319 = vmatprep.subr.bf16.mxu0 %v4318_v33  ;;  %7510 = vst [vmem:[#allocation93_spill] sm:$0xff] %v6421_v10  ;;  %v6423_v7 = vld [vmem:[#allocation22] ss:$0 sm:$0xff]  ;;  %v6427_v17 = vld [vmem:[#allocation17] sm:$0x3f]  ;;  %v7514_v10 = vsub.s32 3, %v5907_v36 }
 0x47a   :  { %7511 = vst [vmem:[#allocation94_spill] sm:$0xff] %v6423_v7  ;;  %v6436_v50 = vrot.slane %v6427_v17, %v7513_v51  ;;  %v6440_v53 = vrot.slane %v6427_v17, %v5916_v42 }
 0x47b   :  { %4609 = vmatpush1.bf16.msra.mxu1 %v4316_v52  ;;  %v6299_v52 = vld [vmem:[#allocation19 + $0x110] sm:$0xff]  ;;  %v6445_v7 = vrot.slane %v6427_v17, %v7514_v10 }
 0x47c   :  { %4594 = vmatprep.subr.bf16.mxu1 %v4318_v33  ;;  %4321 = vmatpush1.bf16.msra.mxu0 %v4320_v39  ;;  %v6301_v33 = vld [vmem:[#allocation19 + $0x118] sm:$0xff] }
 0x47d   :  { %4323 = vmatprep.subr.bf16.mxu0 %v4322_v56 }
 0x47f   :  { %4610 = vmatpush1.bf16.msra.mxu1 %v4320_v39  ;;  %v6311_v39 = vld [vmem:[#allocation19 + $0x140] sm:$0xff] }
 0x480   :  { %4595 = vmatprep.subr.bf16.mxu1 %v4322_v56  ;;  %4325 = vmatpush1.bf16.msra.mxu0 %v4324_v3  ;;  %v6313_v56 = vld [vmem:[#allocation19 + $0x148] sm:$0xff] }
 0x481   :  { %4327 = vmatprep.subr.bf16.mxu0 %v4326_v5 }
 0x483   :  { %4611 = vmatpush1.bf16.msra.mxu1 %v4324_v3  ;;  %v6323_v3 = vld [vmem:[#allocation19 + $0x170] sm:$0xff] }
 0x484   :  { %4596 = vmatprep.subr.bf16.mxu1 %v4326_v5  ;;  %4329 = vmatpush1.bf16.msra.mxu0 %v4328_v11  ;;  %v6325_v5 = vld [vmem:[#allocation19 + $0x178] sm:$0xff] }
 0x485   :  { %4331 = vmatprep.subr.bf16.mxu0 %v4330_v15  ;;  %7462 = vst [vmem:[#allocation45_spill] sm:$0xff] %v6325_v5 }
 0x487   :  { %4612 = vmatpush1.bf16.msra.mxu1 %v4328_v11  ;;  %v6335_v11 = vld [vmem:[#allocation20 + $0x20] sm:$0xff] }
 0x488   :  { %4597 = vmatprep.subr.bf16.mxu1 %v4330_v15  ;;  %4333 = vmatpush1.bf16.msra.mxu0 %v4332_v19  ;;  %7467 = vst [vmem:[#allocation50_spill] sm:$0xff] %v6335_v11  ;;  %v6337_v15 = vld [vmem:[#allocation20 + $0x28] sm:$0xff] }
 0x489   :  { %7468 = vst [vmem:[#allocation51_spill] sm:$0xff] %v6337_v15  ;;  %v6359_v15 = vld [vmem:[#allocation20 + $0x80] sm:$0xff] }
 0x48a   :  { %7479 = vst [vmem:[#allocation62_spill] sm:$0xff] %v6359_v15  ;;  %v6381_v15 = vld [vmem:[#allocation20 + $0xd8] sm:$0xff] }
 0x48b   :  { %4613 = vmatpush1.bf16.msra.mxu1 %v4332_v19  ;;  %1823 = vmatmul.mubr.f32.vlgmr.msra.gmra.mrb[16].mxu0 %v6155_v13  ;;  %v6231_v13 = vld [vmem:[#allocation19] sm:$0xff]  ;;  %7490 = vst [vmem:[#allocation73_spill] sm:$0xff] %v6381_v15  ;;  %v6403_v15 = vld [vmem:[#allocation20 + $0x130] sm:$0xff] }
 0x48c   :  { %1828 = vmatprep.mubr.f32.mxu0 %v6158_v21  ;;  %v6233_v21 = vld [vmem:[#allocation19 + $0x8] sm:$0xff]  ;;  %v6343_v19 = vld [vmem:[#allocation20 + $0x40] sm:$0xff]  ;;  %7501 = vst [vmem:[#allocation84_spill] sm:$0xff] %v6403_v15 }
 0x48d   :  { %7471 = vst [vmem:[#allocation54_spill] sm:$0xff] %v6343_v19  ;;  %v6365_v19 = vld [vmem:[#allocation20 + $0x98] sm:$0xff]  ;;  %v6425_v15 = vld [vmem:[#allocation23] ss:$0 sm:$0xff] }
 0x48e   :  { %1847 = vmatmul.mubr.f32.vlgmr.msra.gmra.mrb[16].mxu1 %v6185_v40  ;;  %v6239_v40 = vld [vmem:[#allocation19 + $0x20] sm:$0xff]  ;;  %7482 = vst [vmem:[#allocation65_spill] sm:$0xff] %v6365_v19  ;;  %v6387_v19 = vld [vmem:[#allocation20 + $0xf0] sm:$0xff]  ;;  %7512 = vst [vmem:[#allocation95_spill] sm:$0xff] %v6425_v15 }
 0x48f   :  { %1852 = vmatprep.mubr.f32.mxu1 %v6190_v44  ;;  %1829 = vmatmul.mubr.f32.gmra.mrb[18].mxu0 %v6161_v23  ;;  %v6235_v23 = vld [vmem:[#allocation19 + $0x10] sm:$0xff]  ;;  %7493 = vst [vmem:[#allocation76_spill] sm:$0xff] %v6387_v19  ;;  %v6409_v19 = vld [vmem:[#allocation20 + $0x148] sm:$0xff] }
 0x490   :  { %1834 = vmatprep.mubr.f32.mxu0 %v6166_v29  ;;  %v6237_v29 = vld [vmem:[#allocation19 + $0x18] sm:$0xff]  ;;  %v6243_v44 = vld [vmem:[#allocation19 + $0x30] sm:$0xff]  ;;  %7504 = vst [vmem:[#allocation87_spill] sm:$0xff] %v6409_v19  ;;  %v6431_v19 = vrot.slane %v6427_v17, %v5910_v37 }
 0x492   :  { %1853 = vmatmul.mubr.f32.gmra.mrb[18].mxu1 %v6193_v58  ;;  %v6247_v58 = vld [vmem:[#allocation19 + $0x40] sm:$0xff] }
 0x493   :  { %1858 = vmatprep.mubr.f32.mxu1 %v6198_v4  ;;  %1835 = vmatmul.mubr.f32.gmra.mrb[20].mxu0 %v6169_v31  ;;  %v6241_v31 = vld [vmem:[#allocation19 + $0x28] sm:$0xff]  ;;  %v6251_v4 = vld [vmem:[#allocation19 + $0x50] sm:$0xff] }
 0x494   :  { %1840 = vmatprep.mubr.f32.mxu0 %v6174_v49  ;;  %v6245_v49 = vld [vmem:[#allocation19 + $0x38] sm:$0xff] }
 0x496   :  { %1859 = vmatmul.mubr.f32.gmra.mrb[20].mxu1 %v6201_v6  ;;  %v6253_v6 = vld [vmem:[#allocation19 + $0x58] sm:$0xff] }
 0x497   :  { %1864 = vmatprep.mubr.f32.mxu1 %v6206_v12  ;;  %1841 = vmatmul.mubr.f32.gmra.mrb[22].mxu0 %v6177_v45  ;;  %v6249_v45 = vld [vmem:[#allocation19 + $0x48] sm:$0xff]  ;;  %v6255_v12 = vld [vmem:[#allocation19 + $0x60] sm:$0xff] }
 0x49a   :  { %1865 = vmatmul.mubr.f32.gmra.mrb[22].mxu1 %v6209_v16  ;;  %v6257_v16 = vld [vmem:[#allocation19 + $0x68] sm:$0xff] }
 0x51d   :  { %v1598_v15 = vpop.f32.mrb[0].mxu0 }
 0x51e   :  { %v1599_v9 = vadd.f32 %v1598_v15, %v6431_v19  ;;  %v1600_v37 = vpop.f32.mrb[1].mxu0 }
 0x51f   :  { %v1601_v5 = vadd.f32 %v1600_v37, %v6440_v53 }
 0x520   :  { %1871 = vst [vmem:[#allocation3] sm:$0xff] %v1599_v9 }
 0x521   :  { %v1711_v62 = vpop.f32.mrb[0].mxu1  ;;  %1872 = vst [vmem:[#allocation3 + $0x8] sm:$0xff] %v1601_v5  ;;  %v1604_v42 = vpop.f32.mrb[2].mxu0 }
 0x522   :  { %v1712_v18 = vadd.f32 %v1711_v62, %v6436_v50  ;;  %v1713_v51 = vpop.f32.mrb[1].mxu1  ;;  %v1605_v10 = vadd.f32 %v1604_v42, %v6431_v19  ;;  %v1606_v8 = vpop.f32.mrb[3].mxu0 }
 0x523   :  { %v1714_v1 = vadd.f32 %v1713_v51, %v6445_v7  ;;  %v1607_v2 = vadd.f32 %v1606_v8, %v6440_v53 }
 0x524   :  { %1873 = vst [vmem:[#allocation3 + $0x10] sm:$0xff] %v1712_v18  ;;  %1877 = vst [vmem:[#allocation3 + $0x30] sm:$0xff] %v1605_v10 }
 0x525   :  { %1874 = vst [vmem:[#allocation3 + $0x18] sm:$0xff] %v1714_v1  ;;  %v1717_v11 = vpop.f32.mrb[2].mxu1  ;;  %1878 = vst [vmem:[#allocation3 + $0x38] sm:$0xff] %v1607_v2  ;;  %v1610_v62 = vpop.f32.mrb[4].mxu0 }
 0x526   :  { %v1718_v15 = vadd.f32 %v1717_v11, %v6436_v50  ;;  %v1719_v59 = vpop.f32.mrb[3].mxu1  ;;  %v1611_v5 = vadd.f32 %v1610_v62, %v6431_v19  ;;  %v1612_v1 = vpop.f32.mrb[5].mxu0 }
 0x527   :  { %v1720_v37 = vadd.f32 %v1719_v59, %v6445_v7  ;;  %v1613_v18 = vadd.f32 %v1612_v1, %v6440_v53 }
 0x528   :  { %1879 = vst [vmem:[#allocation3 + $0x40] sm:$0xff] %v1718_v15  ;;  %1883 = vst [vmem:[#allocation3 + $0x60] sm:$0xff] %v1611_v5 }
 0x529   :  { %1880 = vst [vmem:[#allocation3 + $0x48] sm:$0xff] %v1720_v37  ;;  %v1723_v9 = vpop.f32.mrb[4].mxu1  ;;  %1884 = vst [vmem:[#allocation3 + $0x68] sm:$0xff] %v1613_v18  ;;  %v1616_v11 = vpop.f32.mrb[6].mxu0 }
 0x52a   :  { %v1724_v42 = vadd.f32 %v1723_v9, %v6436_v50  ;;  %v1725_v51 = vpop.f32.mrb[5].mxu1  ;;  %v1617_v59 = vadd.f32 %v1616_v11, %v6431_v19  ;;  %v1618_v10 = vpop.f32.mrb[7].mxu0 }
 0x52b   :  { %v1726_v8 = vadd.f32 %v1725_v51, %v6445_v7  ;;  %v1619_v37 = vadd.f32 %v1618_v10, %v6440_v53 }
 0x52c   :  { %1885 = vst [vmem:[#allocation3 + $0x70] sm:$0xff] %v1724_v42  ;;  %1889 = vst [vmem:[#allocation3 + $0x90] sm:$0xff] %v1617_v59 }
 0x52d   :  { %1886 = vst [vmem:[#allocation3 + $0x78] sm:$0xff] %v1726_v8  ;;  %v1729_v2 = vpop.f32.mrb[6].mxu1  ;;  %1890 = vst [vmem:[#allocation3 + $0x98] sm:$0xff] %v1619_v37  ;;  %v1622_v5 = vpop.f32.mrb[8].mxu0 }
 0x52e   :  { %v1730_v15 = vadd.f32 %v1729_v2, %v6436_v50  ;;  %v1731_v62 = vpop.f32.mrb[7].mxu1  ;;  %v1623_v1 = vadd.f32 %v1622_v5, %v6431_v19  ;;  %v1624_v18 = vpop.f32.mrb[9].mxu0 }
 0x52f   :  { %v1732_v9 = vadd.f32 %v1731_v62, %v6445_v7  ;;  %v1625_v8 = vadd.f32 %v1624_v18, %v6440_v53 }
 0x530   :  { %1891 = vst [vmem:[#allocation3 + $0xa0] sm:$0xff] %v1730_v15  ;;  %1895 = vst [vmem:[#allocation3 + $0xc0] sm:$0xff] %v1623_v1 }
 0x531   :  { %1892 = vst [vmem:[#allocation3 + $0xa8] sm:$0xff] %v1732_v9  ;;  %v1735_v42 = vpop.f32.mrb[8].mxu1  ;;  %1896 = vst [vmem:[#allocation3 + $0xc8] sm:$0xff] %v1625_v8  ;;  %v1628_v59 = vpop.f32.mrb[10].mxu0 }
 0x532   :  { %v1736_v51 = vadd.f32 %v1735_v42, %v6436_v50  ;;  %v1737_v11 = vpop.f32.mrb[9].mxu1  ;;  %v1629_v10 = vadd.f32 %v1628_v59, %v6431_v19  ;;  %v1630_v37 = vpop.f32.mrb[11].mxu0 }
 0x533   :  { %v1738_v2 = vadd.f32 %v1737_v11, %v6445_v7  ;;  %v1631_v9 = vadd.f32 %v1630_v37, %v6440_v53 }
 0x534   :  { %1897 = vst [vmem:[#allocation3 + $0xd0] sm:$0xff] %v1736_v51  ;;  %1901 = vst [vmem:[#allocation3 + $0xf0] sm:$0xff] %v1629_v10 }
 0x535   :  { %1898 = vst [vmem:[#allocation3 + $0xd8] sm:$0xff] %v1738_v2  ;;  %v1741_v15 = vpop.f32.mrb[10].mxu1  ;;  %1902 = vst [vmem:[#allocation3 + $0xf8] sm:$0xff] %v1631_v9  ;;  %v1634_v1 = vpop.f32.mrb[12].mxu0 }
 0x536   :  { %v1742_v62 = vadd.f32 %v1741_v15, %v6436_v50  ;;  %v1743_v5 = vpop.f32.mrb[11].mxu1  ;;  %v1635_v18 = vadd.f32 %v1634_v1, %v6431_v19  ;;  %v1636_v8 = vpop.f32.mrb[13].mxu0 }
 0x537   :  { %v1744_v42 = vadd.f32 %v1743_v5, %v6445_v7  ;;  %v1637_v2 = vadd.f32 %v1636_v8, %v6440_v53 }
 0x538   :  { %1903 = vst [vmem:[#allocation3 + $0x100] sm:$0xff] %v1742_v62  ;;  %1907 = vst [vmem:[#allocation3 + $0x120] sm:$0xff] %v1635_v18  ;;  %v7515_v18 = vsub.s32 4, %v5907_v36 }
 0x539   :  { %1904 = vst [vmem:[#allocation3 + $0x108] sm:$0xff] %v1744_v42  ;;  %v1747_v51 = vpop.f32.mrb[12].mxu1  ;;  %1908 = vst [vmem:[#allocation3 + $0x128] sm:$0xff] %v1637_v2  ;;  %v1640_v10 = vpop.f32.mrb[14].mxu0 }
 0x53a   :  { %v1748_v11 = vadd.f32 %v1747_v51, %v6436_v50  ;;  %v1749_v59 = vpop.f32.mrb[13].mxu1  ;;  %v1641_v37 = vadd.f32 %v1640_v10, %v6431_v19  ;;  %v1642_v9 = vpop.f32.mrb[15].mxu0  ;;  %v1521_v8 = vrot.slane %v6427_v17, %v7515_v18 }
 0x53b   :  { %v1750_v15 = vadd.f32 %v1749_v59, %v6445_v7  ;;  %v1643_v42 = vadd.f32 %v1642_v9, %v6440_v53 }
 0x53c   :  { %1909 = vst [vmem:[#allocation3 + $0x130] sm:$0xff] %v1748_v11  ;;  %1913 = vst [vmem:[#allocation3 + $0x150] sm:$0xff] %v1641_v37  ;;  %v7516_v11 = vsub.s32 5, %v5907_v36 }
 0x53d   :  { %1910 = vst [vmem:[#allocation3 + $0x138] sm:$0xff] %v1750_v15  ;;  %v1753_v62 = vpop.f32.mrb[14].mxu1  ;;  %1914 = vst [vmem:[#allocation3 + $0x158] sm:$0xff] %v1643_v42 }
 0x53e   :  { %v1754_v5 = vadd.f32 %v1753_v62, %v6436_v50  ;;  %v1755_v1 = vpop.f32.mrb[15].mxu1  ;;  %v1525_v19 = vrot.slane %v6427_v17, %v7516_v11 }
 0x53f   :  { %v1756_v51 = vadd.f32 %v1755_v1, %v6445_v7 }
 0x540   :  { %1915 = vst [vmem:[#allocation3 + $0x160] sm:$0xff] %v1754_v5 }
 0x541   :  { %1916 = vst [vmem:[#allocation3 + $0x168] sm:$0xff] %v1756_v51 }
 0x55e   :  { %v1824_v2 = vpop.f32.mrb[16].mxu0 }
 0x55f   :  { %v1825_v59 = vadd.f32 %v1824_v2, %v1521_v8  ;;  %v1826_v15 = vpop.f32.mrb[17].mxu0 }
 0x560   :  { %v1827_v10 = vadd.f32 %v1826_v15, %v1525_v19 }
 0x561   :  { %v1848_v50 = vpop.f32.mrb[16].mxu1  ;;  %1875 = vst [vmem:[#allocation3 + $0x20] sm:$0xff] %v1825_v59 }
 0x562   :  { %v1849_v53 = vadd.f32 %v1848_v50, %v1521_v8  ;;  %v1850_v37 = vpop.f32.mrb[17].mxu1  ;;  %1876 = vst [vmem:[#allocation3 + $0x28] sm:$0xff] %v1827_v10  ;;  %v1830_v62 = vpop.f32.mrb[18].mxu0 }
 0x563   :  { %v1851_v7 = vadd.f32 %v1850_v37, %v1525_v19  ;;  %v1831_v9 = vadd.f32 %v1830_v62, %v1521_v8  ;;  %v1832_v42 = vpop.f32.mrb[19].mxu0 }
 0x564   :  { %1899 = vst [vmem:[#allocation3 + $0xe0] sm:$0xff] %v1849_v53  ;;  %v1833_v36 = vadd.f32 %v1832_v42, %v1525_v19 }
 0x565   :  { %1900 = vst [vmem:[#allocation3 + $0xe8] sm:$0xff] %v1851_v7  ;;  %v1854_v5 = vpop.f32.mrb[18].mxu1  ;;  %1881 = vst [vmem:[#allocation3 + $0x50] sm:$0xff] %v1831_v9 }
 0x566   :  { %v1855_v1 = vadd.f32 %v1854_v5, %v1521_v8  ;;  %v1856_v51 = vpop.f32.mrb[19].mxu1  ;;  %1882 = vst [vmem:[#allocation3 + $0x58] sm:$0xff] %v1833_v36  ;;  %v1836_v18 = vpop.f32.mrb[20].mxu0 }
 0x567   :  { %v1857_v17 = vadd.f32 %v1856_v51, %v1525_v19  ;;  %v1837_v11 = vadd.f32 %v1836_v18, %v1521_v8  ;;  %v1838_v59 = vpop.f32.mrb[21].mxu0  ;;  %v6485_v51 = vmov 0.0  }
 0x568   :  { %1905 = vst [vmem:[#allocation3 + $0x110] sm:$0xff] %v1855_v1  ;;  %v1839_v15 = vadd.f32 %v1838_v59, %v1525_v19 }
 0x569   :  { %1906 = vst [vmem:[#allocation3 + $0x118] sm:$0xff] %v1857_v17  ;;  %v1860_v2 = vpop.f32.mrb[20].mxu1  ;;  %1887 = vst [vmem:[#allocation3 + $0x80] sm:$0xff] %v1837_v11  ;;  %v6487_v17 = vmov 0.0  }
 0x56a   :  { %v1861_v50 = vadd.f32 %v1860_v2, %v1521_v8  ;;  %v1862_v53 = vpop.f32.mrb[21].mxu1  ;;  %1888 = vst [vmem:[#allocation3 + $0x88] sm:$0xff] %v1839_v15  ;;  %v1842_v37 = vpop.f32.mrb[22].mxu0 }
 0x56b   :  { %v1863_v10 = vadd.f32 %v1862_v53, %v1525_v19  ;;  %v1843_v7 = vadd.f32 %v1842_v37, %v1521_v8  ;;  %v1844_v9 = vpop.f32.mrb[23].mxu0 }
 0x56c   :  { %1911 = vst [vmem:[#allocation3 + $0x140] sm:$0xff] %v1861_v50  ;;  %v1845_v42 = vadd.f32 %v1844_v9, %v1525_v19 }
 0x56d   :  { %1912 = vst [vmem:[#allocation3 + $0x148] sm:$0xff] %v1863_v10  ;;  %v1866_v62 = vpop.f32.mrb[22].mxu1  ;;  %1893 = vst [vmem:[#allocation3 + $0xb0] sm:$0xff] %v1843_v7 }
 0x56e   :  { %v1867_v5 = vadd.f32 %v1866_v62, %v1521_v8  ;;  %v1868_v1 = vpop.f32.mrb[23].mxu1  ;;  %1894 = vst [vmem:[#allocation3 + $0xb8] sm:$0xff] %v1845_v42 }
 0x56f   :  { %v1869_v36 = vadd.f32 %v1868_v1, %v1525_v19 }
 0x570   :  { %1917 = vst [vmem:[#allocation3 + $0x170] sm:$0xff] %v1867_v5 }
 0x571   :  { %1918 = vst [vmem:[#allocation3 + $0x178] sm:$0xff] %v1869_v36 }
 0x572 LB: > { %v4334_v8 = vpack.c.bf16 %v6239_v40, %v6233_v21  ;;  %v4336_v19 = vpack.c.bf16 %v6237_v29, %v6231_v13  ;;  %v4338_v18 = vpack.c.bf16 %v6251_v4, %v6245_v49  ;;  %s2026_s17 = ssub.s32 7, %s5238_s22  ;;  %v4340_v11 = vpack.c.bf16 %v6249_v45, %v6243_v44  ;;  %s3565_s27 = sshll.u32 %s5238_s22, 3  ;;  %v7518_v0 = vld [vmem:[#allocation41_spill] sm:$0xff]  ;;  %s5238_s22 = sphi %s6489_s22, %s2022_s22   ;;  %v5234_v17 = vphi %v6487_v17, %v2406_v17   ;;  %v5230_v51 = vphi %v6485_v51, %v2407_v51  }
 0x573   : > { %v4367_v2 = vpack.c.bf16 %v6241_v31, %v6235_v23  ;;  %v4342_v59 = vpack.c.bf16 %v6263_v24, %v6257_v16  ;;  %v5268_v50 = vmov 0.0|0.0   ;;  %v4370_v15 = vpack.c.bf16 %v6253_v6, %v6247_v58  ;;  %s6518_s28 = sshll.u32 %s2026_s17, 3  ;;  %s7517_s12 = sld [smem:[#allocation106_spill]] }
 0x574   : > { %4335 = vmatprep.subr.bf16.mxu0 %v4334_v8  ;;  %4366 = vmatprep.subr.bf16.mxu1 %v5268_v50  ;;  %v7298_v53 = vmov 0.0   ;;  %v4344_v10 = vpack.c.bf16 %v6261_v22, %v6255_v12  ;;  %v4346_v37 = vpack.c.bf16 %v6275_v32, %v6269_v27  ;;  %v4373_v7 = vpack.c.bf16 %v6265_v25, %v6259_v20  ;;  %s6637_s15 = sshra.s32 %s3565_s27, 3  ;;  %s2036_s13 = sshra.s32 %s6518_s28, 3 }
 0x575   : > { %4337 = vmatpush1.bf16.msra.mxu0 %v4336_v19  ;;  %4368 = vmatpush3.bf16.msra.mxu1 %v4367_v2  ;;  %v4348_v62 = vpack.c.bf16 %v6273_v30, %v6267_v26  ;;  %vm5270_vm6 = vmmov 0   ;;  %v4350_v42 = vpack.c.bf16 %v7518_v0, %v6281_v38  ;;  %v4376_v1 = vpack.c.bf16 %v6277_v34, %v6271_v28  ;;  %s3590_s30 = smul.u32 48, %s6637_s15  ;;  %s3592_s25 = sshll.u32 %s6637_s15, 4 }
 0x576   : > { %4339 = vmatprep.subr.bf16.mxu0 %v4338_v18  ;;  %2114 = vmatprep.mubr.f32.mxu0 %v7298_v53  ;;  %v5271_v36 = vmov 0   ;;  %v4352_v8 = vpack.c.bf16 %v6285_v47, %v6279_v35  ;;  %v4354_v18 = vpack.c.bf16 %v6299_v52, %v6293_v48  ;;  %s3591_s5 = smul.u32 48, %s2036_s13  ;;  %s2394_s6 = scalar_lea.vmem [#allocation5], %s3592_s25 }
 0x577   : > { %4369 = vmatprep.subr.bf16.mxu1 %v5268_v50  ;;  %3900 = vmatprep.mubr.msk.f32.mxu1 %vm5270_vm6, %v7298_v53  ;;  %s2032_s0 = scalar_lea.vmem [#allocation3], %s3590_s30  ;;  %s3593_s10 = sshll.u32 %s2036_s13, 4 }
 0x578   : > { %4715 = vset.pattern.permute.xlu0 %v5271_v36  ;;  %s6644_s11 = scalar_lea.vmem [#allocation3], %s3591_s5  ;;  %s2404_s2 = scalar_lea.vmem [#allocation5], %s3593_s10 }
 0x579   : > { %4341 = vmatpush1.bf16.msra.mxu0 %v4340_v11  ;;  %s2044_s4 = scalar_lea.vmem %s7517_s12, %s3565_s27  ;;  %s2047_s14 = scalar_lea.vmem %s7517_s12, %s6518_s28  ;;  %4371 = vmatpush3.bf16.msra.mxu1 %v4370_v15  ;;  %v4379_v11 = vpack.c.bf16 %v6289_v43, %v6283_v41  ;;  %v4358_v15 = vpack.c.bf16 %v6311_v39, %v6305_v54 }
 0x57a   : > { %4343 = vmatprep.subr.bf16.mxu0 %v4342_v59  ;;  %4372 = vmatprep.subr.bf16.mxu1 %v5268_v50  ;;  %v2045_v9 = vld [vmem:[%s2044_s4] sm:$0xff]  ;;  %v4356_v59 = vpack.c.bf16 %v6297_v63, %v6291_v61  ;;  %s2022_s22 = sadd.s32 1, %s5238_s22  }
 0x57b   : > { %v2048_v5 = vld [vmem:[%s2047_s14] sm:$0xff]  ;;  %vm2046_vm7 = vcmp.gt.f32.partialorder %v2045_v9, 0.5  ;;  %p2019_p11 = scmp.ge.s32.totalorder %s2022_s22, 8  }
 0x57c   : > { %vm2049_vm8 = vcmp.gt.f32.partialorder %v2048_v5, 0.5  ;;  %v2386_v19 = vsel %vm2046_vm7, 1, %v5271_v36  ;;  %v7519_v9 = vld [vmem:[#allocation42_spill] sm:$0xff]  ;;  %v7520_v5 = vld [vmem:[#allocation44_spill] sm:$0xff]  ;;  %s7577_s16 = sld [smem:[#allocation118_spill]] (%p2019_p11)  ;;  %s7578_s22 = sld [smem:[#allocation119_spill]] (%p2019_p11) }
 0x57d   : > { %4345 = vmatpush1.bf16.msra.mxu0 %v4344_v10  ;;  %4374 = vmatpush3.bf16.msra.mxu1 %v4373_v7  ;;  %v2396_v2 = vsel %vm2049_vm8, 1, %v5271_v36  ;;  %v4382_v10 = vpack.c.bf16 %v6301_v33, %v6295_v14  ;;  %v4362_v7 = vpack.c.bf16 %v6323_v3, %v6317_v60  ;;  %v7522_v36 = vld [vmem:[#allocation50_spill] sm:$0xff]  ;;  %v2428_v13 = vld [vmem:[#allocation25 + $0x20] sm:$0xff] (%p2019_p11)  ;;  %v2447_v29 = vld [vmem:[#allocation25 + $0xb8] sm:$0xff] (%p2019_p11)  ;;  %vm3459_vm11 = vcmask (%p2019_p11), 48128   ;;  %s7579_s28 = sld [smem:[#allocation120_spill]] (%p2019_p11) }
 0x57e   : > { %4347 = vmatprep.subr.bf16.mxu0 %v4346_v37  ;;  %4375 = vmatprep.subr.bf16.mxu1 %v5268_v50  ;;  %v4360_v37 = vpack.c.bf16 %v6309_v57, %v6303_v55  ;;  %v2429_v21 = vld [vmem:[#allocation25 + $0x28] sm:$0xff] (%p2019_p11)  ;;  %v2446_v23 = vld [vmem:[#allocation25 + $0xb0] sm:$0xff] (%p2019_p11)  ;;  %v2431_v49 = vld [vmem:[#allocation25 + $0x38] sm:$0xff] (%p2019_p11) }
 0x57f   : > { %2388 = vperm.xlu0 %4715, %v2386_v19   ;;  %v7523_v19 = vld [vmem:[#allocation43_spill] sm:$0xff]  ;;  %v4456_v40 = vpack.c.bf16 (%p2019_p11), %v2429_v21, %v2428_v13  ;;  %v4458_v31 = vpack.c.bf16 (%p2019_p11), %v2447_v29, %v2446_v23  ;;  %v2448_v58 = vld [vmem:[#allocation25 + $0xc0] sm:$0xff] (%p2019_p11)  ;;  %v2449_v45 = vld [vmem:[#allocation25 + $0xc8] sm:$0xff] (%p2019_p11) }
 0x580   :  { %v2430_v44 = vld [vmem:[#allocation25 + $0x30] sm:$0xff] (%p2019_p11)  ;;  %v4462_v12 = vpack.c.bf16 (%p2019_p11), %v2449_v45, %v2448_v58  ;;  %v2432_v16 = vld [vmem:[#allocation25 + $0x40] sm:$0xff] (%p2019_p11)  ;;  %v2433_v20 = vld [vmem:[#allocation25 + $0x48] sm:$0xff] (%p2019_p11) }
 0x581   : > { %4349 = vmatpush1.bf16.msra.mxu0 %v4348_v62  ;;  %4377 = vmatpush3.bf16.msra.mxu1 %v4376_v1  ;;  %v4385_v62 = vpack.c.bf16 %v6313_v56, %v6307_v46  ;;  %v7521_v1 = vld [vmem:[#allocation47_spill] sm:$0xff]  ;;  %v4460_v6 = vpack.c.bf16 (%p2019_p11), %v2431_v49, %v2430_v44  ;;  %v4464_v25 = vpack.c.bf16 (%p2019_p11), %v2433_v20, %v2432_v16  ;;  %v2452_v30 = vld [vmem:[#allocation25 + $0xe0] sm:$0xff] (%p2019_p11)  ;;  %v2453_v32 = vld [vmem:[#allocation25 + $0xe8] sm:$0xff] (%p2019_p11) }
 0x582   : > { %4351 = vmatprep.subr.bf16.mxu0 %v4350_v42  ;;  %4378 = vmatprep.subr.bf16.mxu1 %v5268_v50  ;;  %v4364_v42 = vpack.c.bf16 %v7520_v5, %v7519_v9  ;;  %v7529_v9 = vld [vmem:[#allocation48_spill] sm:$0xff]  ;;  %v2450_v22 = vld [vmem:[#allocation25 + $0xd0] sm:$0xff] (%p2019_p11)  ;;  %v4470_v35 = vpack.c.bf16 (%p2019_p11), %v2453_v32, %v2452_v30  ;;  %v2437_v41 = vld [vmem:[#allocation25 + $0x68] sm:$0xff] (%p2019_p11) }
 0x583   : > { %2398 = vperm.xlu0 %4715, %v2396_v2   ;;  %v7525_v2 = vld [vmem:[#allocation46_spill] sm:$0xff]  ;;  %v2451_v24 = vld [vmem:[#allocation25 + $0xd8] sm:$0xff] (%p2019_p11)  ;;  %v2436_v38 = vld [vmem:[#allocation25 + $0x60] sm:$0xff] (%p2019_p11) }
 0x584   :  { %v4466_v26 = vpack.c.bf16 (%p2019_p11), %v2451_v24, %v2450_v22  ;;  %v2434_v27 = vld [vmem:[#allocation25 + $0x50] sm:$0xff] (%p2019_p11)  ;;  %v2435_v28 = vld [vmem:[#allocation25 + $0x58] sm:$0xff] (%p2019_p11)  ;;  %v4472_v61 = vpack.c.bf16 (%p2019_p11), %v2437_v41, %v2436_v38 }
 0x585   : > { %4353 = vmatpush1.bf16.msra.mxu0 %v4352_v8  ;;  %4380 = vmatpush3.bf16.msra.mxu1 %v4379_v11  ;;  %v4390_v8 = vpack.c.bf16 %v7522_v36, %v7521_v1  ;;  %v7532_v1 = vld [vmem:[#allocation55_spill] sm:$0xff]  ;;  %v4468_v34 = vpack.c.bf16 (%p2019_p11), %v2435_v28, %v2434_v27 }
 0x586   : > { %4355 = vmatprep.subr.bf16.mxu0 %v4354_v18  ;;  %4381 = vmatprep.subr.bf16.mxu1 %v5268_v50  ;;  %v7524_v18 = vld [vmem:[#allocation45_spill] sm:$0xff]  ;;  %v2454_v47 = vld [vmem:[#allocation25 + $0xf0] sm:$0xff] (%p2019_p11)  ;;  %v2455_v43 = vld [vmem:[#allocation25 + $0xf8] sm:$0xff] (%p2019_p11) }
 0x587   : > { %v4388_v11 = vpack.c.bf16 %v7524_v18, %v7523_v19  ;;  %v7534_v19 = vld [vmem:[#allocation59_spill] sm:$0xff]  ;;  %v4474_v48 = vpack.c.bf16 (%p2019_p11), %v2455_v43, %v2454_v47  ;;  %v2698_v43 = vld [vmem:[%s7260_s18 + $0x18] sm:$0xff] (%p2019_p11) }
 0x588   :  { %v2438_v14 = vld [vmem:[#allocation25 + $0x70] sm:$0xff] (%p2019_p11)  ;;  %v2439_v63 = vld [vmem:[#allocation25 + $0x78] sm:$0xff] (%p2019_p11) }
 0x589   : > { %4357 = vmatpush1.bf16.msra.mxu0 %v4356_v59  ;;  %4383 = vmatpush3.bf16.msra.mxu1 %v4382_v10  ;;  %v7526_v59 = vld [vmem:[#allocation49_spill] sm:$0xff]  ;;  %v4476_v52 = vpack.c.bf16 (%p2019_p11), %v2439_v63, %v2438_v14  ;;  %v2696_v47 = vld [vmem:[%s7260_s18 + $0x8] sm:$0xff] (%p2019_p11) }
 0x58a   : > { %4359 = vmatprep.subr.bf16.mxu0 %v4358_v15  ;;  %4384 = vmatprep.subr.bf16.mxu1 %v5268_v50  ;;  %v4392_v15 = vpack.c.bf16 %v7526_v59, %v7525_v2  ;;  %v7527_v10 = vld [vmem:[#allocation53_spill] sm:$0xff]  ;;  %v2700_v63 = vld [vmem:[%s7260_s18 + $0x28] sm:$0xff] (%p2019_p11) }
 0x58b   : > { %v7537_v2 = vld [vmem:[#allocation57_spill] sm:$0xff] }
 0x58c   :  { %v2697_v14 = vld [vmem:[%s7260_s18 + $0x10] sm:$0xff] (%p2019_p11) }
 0x58d   : > { %4361 = vmatpush1.bf16.msra.mxu0 %v4360_v37  ;;  %4386 = vmatpush3.bf16.msra.mxu1 %v4385_v62  ;;  %v7528_v37 = vld [vmem:[#allocation56_spill] sm:$0xff] }
 0x58e   : > { %4363 = vmatprep.subr.bf16.mxu0 %v4362_v7  ;;  %4387 = vmatprep.subr.bf16.mxu1 %v5268_v50  ;;  %v4394_v53 = vpack.c.bf16 %v7528_v37, %v7527_v10  ;;  %v7530_v7 = vld [vmem:[#allocation51_spill] sm:$0xff]  ;;  %v7531_v62 = vld [vmem:[#allocation52_spill] sm:$0xff]  ;;  %v7539_v10 = vld [vmem:[#allocation61_spill] sm:$0xff] }
 0x58f   : > { %v4423_v5 = vpack.c.bf16 %v7530_v7, %v7529_v9  ;;  %v4396_v36 = vpack.c.bf16 %v7532_v1, %v7531_v62  ;;  %v7541_v9 = vld [vmem:[#allocation68_spill] sm:$0xff]  ;;  %v7543_v1 = vld [vmem:[#allocation63_spill] sm:$0xff] }
 0x590   : > { %v7542_v62 = vld [vmem:[#allocation60_spill] sm:$0xff] }
 0x591   : > { %4365 = vmatpush1.bf16.msra.mxu0 %v4364_v42  ;;  %4389 = vmatpush3.bf16.msra.mxu1 %v4388_v11  ;;  %v7533_v42 = vmov 0.0   ;;  %v7536_v11 = vld [vmem:[#allocation54_spill] sm:$0xff] }
 0x592   : > { %4391 = vmatprep.subr.bf16.mxu0 %v4390_v8  ;;  %4422 = vmatprep.subr.bf16.mxu1 %v5268_v50  ;;  %v7535_v8 = vld [vmem:[#allocation62_spill] sm:$0xff]  ;;  %v4426_v59 = vpack.c.bf16 %v7537_v2, %v7536_v11  ;;  %v7546_v11 = vld [vmem:[#allocation71_spill] sm:$0xff] }
 0x593   : > { %v4398_v18 = vpack.c.bf16 %v7535_v8, %v7534_v19  ;;  %v7544_v19 = vld [vmem:[#allocation64_spill] sm:$0xff]  ;;  %v7545_v8 = vld [vmem:[#allocation67_spill] sm:$0xff] }
 0x594   : > { %2115 = vmatmul.mubr.f32.vlgmr.msra.gmra.mrb[0].mxu0 %v5234_v17  ;;  %3901 = vmatmul.mubr.f32.vlgmr.msra.gmra.mrb[0].mxu1 %v5234_v17 }
 0x595   : > { %4393 = vmatpush1.bf16.msra.mxu0 %v4392_v15  ;;  %2255 = vmatprep.mubr.f32.mxu0 %v7533_v42  ;;  %v7538_v15 = vld [vmem:[#allocation58_spill] sm:$0xff] }
 0x596   : > { %4395 = vmatprep.subr.bf16.mxu0 %v4394_v53  ;;  %4424 = vmatpush3.bf16.msra.mxu1 %v4423_v5  ;;  %v4400_v37 = vpack.c.bf16 %v7539_v10, %v7538_v15  ;;  %v7540_v53 = vld [vmem:[#allocation65_spill] sm:$0xff]  ;;  %v4429_v5 = vpack.c.bf16 %v7543_v1, %v7542_v62  ;;  %v7548_v15 = vld [vmem:[#allocation66_spill] sm:$0xff] }
 0x597   : > { %3935 = vmatprep.mubr.msk.f32.mxu1 %vm5270_vm6, %v7533_v42  ;;  %4425 = vmatprep.subr.bf16.mxu1 %v5268_v50  ;;  %v4402_v7 = vpack.c.bf16 %v7541_v9, %v7540_v53  ;;  %v4404_v42 = vpack.c.bf16 %v7545_v8, %v7544_v19  ;;  %v7551_v53 = vld [vmem:[#allocation73_spill] sm:$0xff]  ;;  %v7554_v19 = vld [vmem:[#allocation72_spill] sm:$0xff] }
 0x598   : > { %v7552_v62 = vld [vmem:[#allocation77_spill] sm:$0xff] }
 0x599   : > { %4397 = vmatpush1.bf16.msra.mxu0 %v4396_v36  ;;  %v7547_v36 = vld [vmem:[#allocation74_spill] sm:$0xff] }
 0x59a   : > { %4399 = vmatprep.subr.bf16.mxu0 %v4398_v18  ;;  %4427 = vmatpush3.bf16.msra.mxu1 %v4426_v59  ;;  %v4406_v2 = vpack.c.bf16 %v7547_v36, %v7546_v11  ;;  %v7549_v18 = vld [vmem:[#allocation69_spill] sm:$0xff]  ;;  %v7550_v59 = vld [vmem:[#allocation70_spill] sm:$0xff]  ;;  %v7557_v11 = vld [vmem:[#allocation79_spill] sm:$0xff] }
 0x59b   : > { %4428 = vmatprep.subr.bf16.mxu1 %v5268_v50  ;;  %v4432_v10 = vpack.c.bf16 %v7549_v18, %v7548_v15  ;;  %v4408_v9 = vpack.c.bf16 %v7551_v53, %v7550_v59  ;;  %v7558_v15 = vld [vmem:[#allocation83_spill] sm:$0xff]  ;;  %v7560_v59 = vld [vmem:[#allocation78_spill] sm:$0xff] }
 0x59d   : > { %4401 = vmatpush1.bf16.msra.mxu0 %v4400_v37  ;;  %v7553_v37 = vld [vmem:[#allocation80_spill] sm:$0xff] }
 0x59e   : > { %4403 = vmatprep.subr.bf16.mxu0 %v4402_v7  ;;  %4430 = vmatpush3.bf16.msra.mxu1 %v4429_v5  ;;  %v4410_v1 = vpack.c.bf16 %v7553_v37, %v7552_v62  ;;  %v7555_v7 = vld [vmem:[#allocation75_spill] sm:$0xff]  ;;  %v7556_v5 = vld [vmem:[#allocation76_spill] sm:$0xff]  ;;  %v7563_v62 = vld [vmem:[#allocation85_spill] sm:$0xff] }
 0x59f   : > { %4431 = vmatprep.subr.bf16.mxu1 %v5268_v50  ;;  %v4435_v8 = vpack.c.bf16 %v7555_v7, %v7554_v19  ;;  %v4412_v36 = vpack.c.bf16 %v7557_v11, %v7556_v5  ;;  %v7565_v19 = vld [vmem:[#allocation92_spill] sm:$0xff]  ;;  %v7567_v5 = vld [vmem:[#allocation87_spill] sm:$0xff] }
 0x5a1   : > { %4405 = vmatpush1.bf16.msra.mxu0 %v4404_v42  ;;  %v7559_v42 = vld [vmem:[#allocation86_spill] sm:$0xff] }
 0x5a2   : > { %4407 = vmatprep.subr.bf16.mxu0 %v4406_v2  ;;  %4433 = vmatpush3.bf16.msra.mxu1 %v4432_v10  ;;  %v4414_v18 = vpack.c.bf16 %v7559_v42, %v7558_v15  ;;  %v7561_v2 = vld [vmem:[#allocation81_spill] sm:$0xff]  ;;  %v7562_v10 = vld [vmem:[#allocation82_spill] sm:$0xff]  ;;  %v7569_v15 = vld [vmem:[#allocation91_spill] sm:$0xff] }
 0x5a3   : > { %4434 = vmatprep.subr.bf16.mxu1 %v5268_v50  ;;  %v4438_v53 = vpack.c.bf16 %v7561_v2, %v7560_v59  ;;  %v4416_v37 = vpack.c.bf16 %v7563_v62, %v7562_v10  ;;  %v7571_v59 = vld [vmem:[#allocation93_spill] sm:$0xff] }
 0x5a5   : > { %4409 = vmatpush1.bf16.msra.mxu0 %v4408_v9  ;;  %v7564_v9 = vld [vmem:[#allocation89_spill] sm:$0xff] }
 0x5a6   : > { %4411 = vmatprep.subr.bf16.mxu0 %v4410_v1  ;;  %4436 = vmatpush3.bf16.msra.mxu1 %v4435_v8  ;;  %v4418_v7 = vpack.c.bf16 %v7565_v19, %v7564_v9  ;;  %v7566_v1 = vld [vmem:[#allocation84_spill] sm:$0xff] }
 0x5a7   : > { %4437 = vmatprep.subr.bf16.mxu1 %v5268_v50  ;;  %v4441_v11 = vpack.c.bf16 %v7567_v5, %v7566_v1  ;;  %v7568_v8 = vld [vmem:[#allocation88_spill] sm:$0xff] }
 0x5a8   : > { %v4420_v42 = vpack.c.bf16 %v7569_v15, %v7568_v8  ;;  %v7572_v8 = vld [vmem:[#allocation94_spill] sm:$0xff] }
 0x5a9   : > { %4413 = vmatpush1.bf16.msra.mxu0 %v4412_v36  ;;  %v7570_v36 = vld [vmem:[#allocation90_spill] sm:$0xff] }
 0x5aa   : > { %4415 = vmatprep.subr.bf16.mxu0 %v4414_v18  ;;  %4439 = vmatpush3.bf16.msra.mxu1 %v4438_v53  ;;  %v4444_v2 = vpack.c.bf16 %v7571_v59, %v7570_v36  ;;  %v2033_v18 = vld [vmem:[%s2032_s0] sm:$0xff]  ;;  %v2034_v53 = vld [vmem:[%s2032_s0 + $0x8] sm:$0xff]  ;;  %v2035_v59 = vld [vmem:[%s2032_s0 + $0x10] sm:$0xff] }
 0x5ab   : > { %4440 = vmatprep.subr.bf16.mxu1 %v5268_v50 }
 0x5ad   : > { %4417 = vmatpush1.bf16.msra.mxu0 %v4416_v37 }
 0x5ae   : > { %4419 = vmatprep.subr.bf16.mxu0 %v4418_v7  ;;  %4442 = vmatpush3.bf16.msra.mxu1 %v4441_v11 }
 0x5af   : > { %4443 = vmatprep.subr.bf16.mxu1 %v5268_v50 }
 0x5b1   : > { %4421 = vmatpush1.bf16.msra.mxu0 %v4420_v42 }
 0x5b2   : > { %4445 = vmatpush3.bf16.msra.mxu1 %v4444_v2 }
 0x5b4   : > { %2256 = vmatmul.mubr.f32.vlgmr.msra.gmra.mrb[2].mxu0 %v5230_v51 }
 0x5b5   : > { %3936 = vmatmul.mubr.f32.vlgmr.msra.gmra.mrb[2].mxu1 %v5230_v51 }
 0x667   : > { %v2116_v10 = vpop.f32.mrb[0].mxu0  ;;  %v2187_v9 = vpop.f32.mrb[0].mxu1 }
 0x668   : > { %v2332_v62 = vadd.f32 %v2116_v10, %v2033_v18  ;;  %v2118_v37 = vpop.f32.mrb[1].mxu0  ;;  %v3902_v7 = vpop.f32.mrb[1].mxu1  ;;  %v2352_v15 = vadd.f32 %v7572_v8, %v2187_v9  ;;  %v2041_v18 = vld [vmem:[%s6644_s11 + $0x18] sm:$0xff] }
 0x669   : > { %v2339_v50 = vadd.f32 %v2118_v37, %v2034_v53  ;;  %v2389_v8 = vpop.permute.xlu0 %2388 }
 0x66a   : > { %v3569_v19 = vmul.f32 -1.442695, %v2332_v62  ;;  %vm2390_vm9 = vcmp.eq.s32.totalorder %v2389_v8, 1 }
 0x66b   : > { %v3570_v1 = vmul.f32 -1.442695, %v2339_v50 }
 0x66c   : > { %4716 = vpow2.f32 %v3569_v19 }
 0x66d   : > { %4718 = vpow2.f32 %v3570_v1  ;;  %v2042_v1 = vld [vmem:[%s6644_s11 + $0x20] sm:$0xff] }
 0x676   : > { %v4717_v5 = vpop.eup %4716 }
 0x677   : > { %v2336_v11 = vadd.f32 1.0, %v4717_v5  ;;  %v4719_v42 = vpop.eup %4718 }
 0x678   : > { %v2343_v53 = vadd.f32 1.0, %v4719_v42 }
 0x679   : > { %4720 = vrcp.f32 %v2336_v11 }
 0x683   : > { %v4721_v36 = vpop.eup %4720 }
 0x684   : > { %v2353_v2 = vmul.f32 %v4721_v36, %v2352_v15 }
 0x686   : > { %v2354_v10 = vadd.f32 %v2353_v2, %v2035_v59 }
 0x687   : > { %v2257_v62 = vpop.f32.mrb[2].mxu0 }
 0x688   : > { %4722 = vtanh.f32 %v2354_v10  ;;  %v2359_v37 = vadd.f32 %v2257_v62, %v2041_v18  ;;  %v2259_v50 = vpop.f32.mrb[3].mxu0  ;;  %v2328_v19 = vpop.f32.mrb[2].mxu1  ;;  %v7573_v10 = vld [vmem:[#allocation95_spill] sm:$0xff] }
 0x689   : > { %4724 = vrcp.f32 %v2343_v53  ;;  %v3937_v9 = vpop.f32.mrb[3].mxu1  ;;  %v2366_v5 = vadd.f32 %v2259_v50, %v2042_v1  ;;  %v2379_v62 = vadd.f32 %v7573_v10, %v2328_v19  ;;  %v2440_v19 = vld [vmem:[#allocation25 + $0x80] sm:$0xff] (%p2019_p11) }
 0x68a   : > { %v3572_v7 = vmul.f32 -1.442695, %v2359_v37 }
 0x68b   : > { %v3573_v0 = vmul.f32 -1.442695, %v2366_v5 }
 0x68c   : > { %4726 = vpow2.f32 %v3572_v7  ;;  %v2043_v7 = vld [vmem:[%s6644_s11 + $0x28] sm:$0xff] }
 0x68d   : > { %4728 = vpow2.f32 %v3573_v0 }
 0x692   : > { %v4723_v11 = vpop.eup %4722 }
 0x693   : > { %v2356_v15 = vsub.f32 %v5234_v17, %v4723_v11  ;;  %v4725_v36 = vpop.eup %4724 }
 0x695   : > { %v2357_v42 = vmul.f32 %v4725_v36, %v2356_v15  ;;  %v2399_v15 = vpop.permute.xlu0 %2398 }
 0x696   : > { %v4727_v59 = vpop.eup %4726  ;;  %vm2400_vm10 = vcmp.eq.s32.totalorder %v2399_v15, 1 }
 0x697   : > { %v2363_v2 = vadd.f32 1.0, %v4727_v59  ;;  %v2358_v18 = vadd.f32 %v4723_v11, %v2357_v42  ;;  %v4729_v37 = vpop.eup %4728 }
 0x698   : > { %v2370_v1 = vadd.f32 1.0, %v4729_v37  ;;  %v2442_v37 = vld [vmem:[#allocation25 + $0x90] sm:$0xff] (%p2019_p11) }
 0x699   : > { %4730 = vrcp.f32 %v2363_v2  ;;  %v2391_v53 = vsel %vm2390_vm9, %v2358_v18, 0.0  ;;  %v2406_v17 = vsel %vm2390_vm9, %v2358_v18, %v5234_v17   ;;  %v2441_v2 = vld [vmem:[#allocation25 + $0x88] sm:$0xff] (%p2019_p11)  ;;  %v2424_v18 = vld [vmem:[#allocation25] sm:$0xff] (%p2019_p11) }
 0x69a   : > { %2395 = vst [vmem:[%s2394_s6] sm:$0xff] %v2391_v53  ;;  %v7574_v53 = vmov (%p2019_p11), 0.0   ;;  %v4446_v10 = vpack.c.bf16 (%p2019_p11), %v2441_v2, %v2440_v19 }
 0x69b   :  { %2803 = vmatprep.mubr.f32.mxu1 (%p2019_p11), %v7574_v53 }
 0x69c   :  { %4447 = vmatprep.subr.bf16.mxu0 (%p2019_p11), %v4446_v10  ;;  %v3579_v10 = vld [vmem:[#allocation26] ss:$0 sm:$0xff] (%p2019_p11) }
 0x6a3   : > { %v4731_v50 = vpop.eup %4730 }
 0x6a4   : > { %v2380_v9 = vmul.f32 %v4731_v50, %v2379_v62  ;;  %v2425_v62 = vld [vmem:[#allocation25 + $0x8] sm:$0xff] (%p2019_p11)  ;;  %v2443_v50 = vld [vmem:[#allocation25 + $0x98] sm:$0xff] (%p2019_p11) }
 0x6a6   : > { %v2381_v5 = vadd.f32 %v2380_v9, %v2043_v7  ;;  %v4448_v7 = vpack.c.bf16 (%p2019_p11), %v2425_v62, %v2424_v18  ;;  %v4450_v9 = vpack.c.bf16 (%p2019_p11), %v2443_v50, %v2442_v37 }
 0x6a8   : > { %4732 = vtanh.f32 %v2381_v5  ;;  %v2427_v5 = vld [vmem:[#allocation25 + $0x18] sm:$0xff] (%p2019_p11)  ;;  %4449 = vmatpush3.bf16.msra.mxu0 (%p2019_p11), %v4448_v7 }
 0x6a9   : > { %4734 = vrcp.f32 %v2370_v1  ;;  %v2426_v1 = vld [vmem:[#allocation25 + $0x10] sm:$0xff] (%p2019_p11)  ;;  %4451 = vmatprep.subr.bf16.mxu0 (%p2019_p11), %v4450_v9 }
 0x6aa   :  { %v4452_v17 = vpack.c.bf16 (%p2019_p11), %v2427_v5, %v2426_v1 }
 0x6ac   :  { %4453 = vmatpush3.bf16.msra.mxu0 (%p2019_p11), %v4452_v17 }
 0x6b2   : > { %v4733_v8 = vpop.eup %4732 }
 0x6b3   : > { %v2383_v0 = vsub.f32 %v5230_v51, %v4733_v8  ;;  %v4735_v11 = vpop.eup %4734 }
 0x6b4   :  { %2021 = sbr.rel (!%p2019_p11) target bundleno = 1394 (0x572), region = 237 }
 0x6b5   : > { %v2384_v36 = vmul.f32 %v4735_v11, %v2383_v0  ;;  %v2445_v0 = vld [vmem:[#allocation25 + $0xa8] sm:$0xff] (%p2019_p11) }
 0x6b7   : > { %v2385_v42 = vadd.f32 %v4733_v8, %v2384_v36  ;;  %v2444_v8 = vld [vmem:[#allocation25 + $0xa0] sm:$0xff] (%p2019_p11) }
 0x6b8   :  { %v4454_v11 = vpack.c.bf16 (%p2019_p11), %v2445_v0, %v2444_v8 }
 0x6b9   : > { %v2401_v59 = vsel %vm2400_vm10, %v2385_v42, 0.0  ;;  %v2407_v51 = vsel %vm2400_vm10, %v2385_v42, %v5230_v51  }
 0x6ba   : > { %2405 = vst [vmem:[%s2404_s2 + $0x8] sm:$0xff] %v2401_v59  ;;  %4455 = vmatprep.subr.bf16.mxu0 (%p2019_p11), %v4454_v11 }
 0x6bb   :  { %4457 = vmatpush3.bf16.msra.mxu0 %v4456_v40 }
 0x6bc   :  { %4459 = vmatprep.subr.bf16.mxu0 %v4458_v31 }
 0x6bf   :  { %4461 = vmatpush3.bf16.msra.mxu0 %v4460_v6 }
 0x6c0   :  { %4463 = vmatprep.subr.bf16.mxu0 %v4462_v12 }
 0x6c1   :  { %v2409_v4 = vld [vmem:[#allocation5 + $0x8] sm:$0xff]  ;;  %v2408_v33 = vld [vmem:[#allocation5] sm:$0xff]  ;;  %v2411_v55 = vld [vmem:[#allocation5 + $0x18] sm:$0xff] }
 0x6c2   :  { %2527 = vmatprep.mubr.f32.mxu0 %v2409_v4  ;;  %v2410_v54 = vld [vmem:[#allocation5 + $0x10] sm:$0xff]  ;;  %v2413_v46 = vld [vmem:[#allocation5 + $0x28] sm:$0xff]  ;;  %v2412_v57 = vld [vmem:[#allocation5 + $0x20] sm:$0xff] }
 0x6c3   :  { %4465 = vmatpush3.bf16.msra.mxu0 %v4464_v25  ;;  %v2415_v39 = vld [vmem:[#allocation5 + $0x38] sm:$0xff]  ;;  %v2414_v56 = vld [vmem:[#allocation5 + $0x30] sm:$0xff]  ;;  %v2417_v60 = vld [vmem:[#allocation5 + $0x48] sm:$0xff] }
 0x6c4   :  { %4467 = vmatprep.subr.bf16.mxu0 %v4466_v26  ;;  %v2416_v3 = vld [vmem:[#allocation5 + $0x40] sm:$0xff]  ;;  %v2419_v51 = vld [vmem:[#allocation5 + $0x58] sm:$0xff]  ;;  %v2418_v15 = vld [vmem:[#allocation5 + $0x50] sm:$0xff] }
 0x6c5   :  { %v2421_v36 = vld [vmem:[#allocation5 + $0x68] sm:$0xff]  ;;  %v2420_v42 = vld [vmem:[#allocation5 + $0x60] sm:$0xff]  ;;  %v2423_v59 = vld [vmem:[#allocation5 + $0x78] sm:$0xff] }
 0x6c6   :  { %v2422_v19 = vld [vmem:[#allocation5 + $0x70] sm:$0xff] }
 0x6c7   :  { %4469 = vmatpush3.bf16.msra.mxu0 %v4468_v34 }
 0x6c8   :  { %4471 = vmatprep.subr.bf16.mxu0 %v4470_v35 }
 0x6cb   :  { %4473 = vmatpush3.bf16.msra.mxu0 %v4472_v61  ;;  %v2695_v61 = vld [vmem:[%s7260_s18] sm:$0xff] }
 0x6cc   :  { %4475 = vmatprep.subr.bf16.mxu0 %v4474_v48  ;;  %v4478_v48 = vpack.c.bf16 %v2698_v43, %v2696_v47 }
 0x6ce   :  { %4479 = vmatprep.subr.bf16.mxu1 %v4478_v48 }
 0x6cf   :  { %4477 = vmatpush3.bf16.msra.mxu0 %v4476_v52  ;;  %v2702_v52 = vld [vmem:[%s7260_s18 + $0x38] sm:$0xff] }
 0x6d2   :  { %2528 = vmatmul.mubr.f32.vlgmr.msra.gmra.mrb[0].mxu0 %v2408_v33  ;;  %v4480_v33 = vpack.c.bf16 %v2697_v14, %v2695_v61  ;;  %v2715_v61 = vld [vmem:[%s7260_s18 + $0xa0] sm:$0xff] }
 0x6d3   :  { %2532 = vmatprep.mubr.f32.mxu0 %v2411_v55  ;;  %v4482_v55 = vpack.c.bf16 %v2702_v52, %v2700_v63  ;;  %v2720_v52 = vld [vmem:[%s7260_s18 + $0xc8] sm:$0xff] }
 0x6d4   :  { %4481 = vmatpush1.bf16.msra.mxu1 %v4480_v33  ;;  %v2722_v33 = vld [vmem:[%s7260_s18 + $0xd8] sm:$0xff] }
 0x6d5   :  { %4483 = vmatprep.subr.bf16.mxu1 %v4482_v55  ;;  %v4502_v55 = vpack.c.bf16 %v2722_v33, %v2720_v52 }
 0x6d6   :  { %2533 = vmatmul.mubr.f32.gmra.mrb[2].mxu0 %v2410_v54  ;;  %v2699_v54 = vld [vmem:[%s7260_s18 + $0x20] sm:$0xff] }
 0x6d7   :  { %2537 = vmatprep.mubr.f32.mxu0 %v2413_v46  ;;  %v2701_v46 = vld [vmem:[%s7260_s18 + $0x30] sm:$0xff] }
 0x6da   :  { %2538 = vmatmul.mubr.f32.gmra.mrb[4].mxu0 %v2412_v57  ;;  %v2704_v57 = vld [vmem:[%s7260_s18 + $0x48] sm:$0xff] }
 0x6db   :  { %2542 = vmatprep.mubr.f32.mxu0 %v2415_v39  ;;  %v2706_v39 = vld [vmem:[%s7260_s18 + $0x58] sm:$0xff] }
 0x6de   :  { %2543 = vmatmul.mubr.f32.gmra.mrb[6].mxu0 %v2414_v56  ;;  %v4484_v56 = vpack.c.bf16 %v2701_v46, %v2699_v54  ;;  %v2719_v54 = vld [vmem:[%s7260_s18 + $0xc0] sm:$0xff] }
 0x6df   :  { %2547 = vmatprep.mubr.f32.mxu0 %v2417_v60  ;;  %v4486_v60 = vpack.c.bf16 %v2706_v39, %v2704_v57  ;;  %v2724_v57 = vld [vmem:[%s7260_s18 + $0xe8] sm:$0xff]  ;;  %v2726_v39 = vld [vmem:[%s7260_s18 + $0xf8] sm:$0xff] }
 0x6e0   :  { %4485 = vmatpush1.bf16.msra.mxu1 %v4484_v56  ;;  %v4506_v56 = vpack.c.bf16 %v2726_v39, %v2724_v57 }
 0x6e1   :  { %4487 = vmatprep.subr.bf16.mxu1 %v4486_v60  ;;  %v2723_v60 = vld [vmem:[%s7260_s18 + $0xe0] sm:$0xff] }
 0x6e2   :  { %2548 = vmatmul.mubr.f32.gmra.mrb[8].mxu0 %v2416_v3  ;;  %v2703_v3 = vld [vmem:[%s7260_s18 + $0x40] sm:$0xff] }
 0x6e3   :  { %2552 = vmatprep.mubr.f32.mxu0 %v2419_v51  ;;  %v2705_v51 = vld [vmem:[%s7260_s18 + $0x50] sm:$0xff] }
 0x6e6   :  { %2553 = vmatmul.mubr.f32.gmra.mrb[10].mxu0 %v2418_v15  ;;  %v4488_v15 = vpack.c.bf16 %v2705_v51, %v2703_v3  ;;  %v2725_v3 = vld [vmem:[%s7260_s18 + $0xf0] sm:$0xff] }
 0x6e7   :  { %2557 = vmatprep.mubr.f32.mxu0 %v2421_v36  ;;  %v4508_v51 = vpack.c.bf16 %v2725_v3, %v2723_v60  ;;  %v2727_v60 = vld [vmem:[%s7261_s19] sm:$0x3]  ;;  %v7575_v3 = vld [vmem:[#allocation103_spill] sm:$0xff] }
 0x6e8   :  { %4489 = vmatpush1.bf16.msra.mxu1 %v4488_v15 }
 0x6ea   :  { %2558 = vmatmul.mubr.f32.gmra.mrb[12].mxu0 %v2420_v42 }
 0x6eb   :  { %2562 = vmatprep.mubr.f32.mxu0 %v2423_v59 }
 0x6ee   :  { %2563 = vmatmul.mubr.f32.gmra.mrb[14].mxu0 %v2422_v19 }
 0x7a5   :  { %v3694_v2 = vpop.f32.mrb[0].mxu0 }
 0x7a6   :  { %v3695_v18 = vpop.f32.mrb[1].mxu0 }
 0x7a7   :  { %v3696_v62 = vadd.f32 %v3695_v18, %v3694_v2 }
 0x7a9   :  { %v3697_v37 = vpop.f32.mrb[2].mxu0  ;;  %v6665_v50 = vadd.f32 %v3696_v62, %v3579_v10 }
 0x7aa   :  { %v3698_v7 = vpop.f32.mrb[3].mxu0 }
 0x7ab   :  { %v3699_v9 = vadd.f32 %v3698_v7, %v3697_v37  ;;  %v2568_v1 = vmax.f32 %v6665_v50, 0.0 }
 0x7ad   :  { %v3700_v5 = vpop.f32.mrb[4].mxu0  ;;  %2578 = vadd.xlane.f32.xlu0 %v2568_v1  ;;  %v6670_v8 = vadd.f32 %v3699_v9, %v3579_v10 }
 0x7ae   :  { %v3701_v0 = vpop.f32.mrb[5].mxu0 }
 0x7af   :  { %v3702_v17 = vadd.f32 %v3701_v0, %v3700_v5  ;;  %v2569_v11 = vmax.f32 %v6670_v8, 0.0 }
 0x7b1   :  { %v3703_v13 = vpop.f32.mrb[6].mxu0  ;;  %2580 = vadd.xlane.f32.xlu0 %v2569_v11  ;;  %v6675_v21 = vadd.f32 %v3702_v17, %v3579_v10 }
 0x7b2   :  { %v3704_v23 = vpop.f32.mrb[7].mxu0 }
 0x7b3   :  { %v3705_v29 = vadd.f32 %v3704_v23, %v3703_v13  ;;  %v2570_v40 = vmax.f32 %v6675_v21, 0.0  ;;  %v2708_v21 = vld [vmem:[%s7260_s18 + $0x68] sm:$0xff]  ;;  %v2710_v23 = vld [vmem:[%s7260_s18 + $0x78] sm:$0xff] }
 0x7b5   :  { %v3706_v31 = vpop.f32.mrb[8].mxu0  ;;  %2582 = vadd.xlane.f32.xlu1 %v2570_v40  ;;  %v6680_v44 = vadd.f32 %v3705_v29, %v3579_v10 }
 0x7b6   :  { %v3707_v49 = vpop.f32.mrb[9].mxu0 }
 0x7b7   :  { %v3708_v58 = vadd.f32 %v3707_v49, %v3706_v31  ;;  %v2571_v45 = vmax.f32 %v6680_v44, 0.0  ;;  %v2707_v31 = vld [vmem:[%s7260_s18 + $0x60] sm:$0xff]  ;;  %v2709_v44 = vld [vmem:[%s7260_s18 + $0x70] sm:$0xff] }
 0x7b9   :  { %v3709_v4 = vpop.f32.mrb[10].mxu0  ;;  %2584 = vadd.xlane.f32.xlu1 %v2571_v45  ;;  %v6685_v6 = vadd.f32 %v3708_v58, %v3579_v10 }
 0x7ba   :  { %v3710_v12 = vpop.f32.mrb[11].mxu0 }
 0x7bb   :  { %v3711_v16 = vadd.f32 %v3710_v12, %v3709_v4  ;;  %v2572_v20 = vmax.f32 %v6685_v6, 0.0  ;;  %v2712_v6 = vld [vmem:[%s7260_s18 + $0x88] sm:$0xff]  ;;  %v2714_v12 = vld [vmem:[%s7260_s18 + $0x98] sm:$0xff] }
 0x7bd   :  { %v3712_v22 = vpop.f32.mrb[12].mxu0  ;;  %2586 = vadd.xlane.f32.xlu0 %v2572_v20  ;;  %v6688_v24 = vadd.f32 %v3711_v16, %v3579_v10 }
 0x7be   :  { %v3713_v25 = vpop.f32.mrb[13].mxu0 }
 0x7bf   :  { %v3714_v26 = vadd.f32 %v3713_v25, %v3712_v22  ;;  %v2573_v27 = vmax.f32 %v6688_v24, 0.0  ;;  %v2711_v22 = vld [vmem:[%s7260_s18 + $0x80] sm:$0xff]  ;;  %v2713_v24 = vld [vmem:[%s7260_s18 + $0x90] sm:$0xff] }
 0x7c1   :  { %v3715_v28 = vpop.f32.mrb[14].mxu0  ;;  %2588 = vadd.xlane.f32.xlu1 %v2573_v27  ;;  %v6693_v30 = vadd.f32 %v3714_v26, %v3579_v10 }
 0x7c2   :  { %v3716_v32 = vpop.f32.mrb[15].mxu0 }
 0x7c3   :  { %v3717_v34 = vadd.f32 %v3716_v32, %v3715_v28  ;;  %v2574_v35 = vmax.f32 %v6693_v30, 0.0  ;;  %v2716_v32 = vld [vmem:[%s7260_s18 + $0xa8] sm:$0xff]  ;;  %v2717_v30 = vld [vmem:[%s7260_s18 + $0xb0] sm:$0xff] }
 0x7c4   :  { %v4500_v14 = vpack.c.bf16 %v2717_v30, %v2715_v61 }
 0x7c5   :  { %2590 = vadd.xlane.f32.xlu0 %v2574_v35  ;;  %v6698_v38 = vadd.f32 %v3717_v34, %v3579_v10  ;;  %v2718_v34 = vld [vmem:[%s7260_s18 + $0xb8] sm:$0xff] }
 0x7c6   :  { %v4498_v43 = vpack.c.bf16 %v2718_v34, %v2716_v32 }
 0x7c7   :  { %v2575_v41 = vmax.f32 %v6698_v38, 0.0  ;;  %v2721_v38 = vld [vmem:[%s7260_s18 + $0xd0] sm:$0xff] }
 0x7c8   :  { %v4504_v46 = vpack.c.bf16 %v2721_v38, %v2719_v54 }
 0x7c9   :  { %2592 = vadd.xlane.f32.xlu1 %v2575_v41 }
 0x83a   :  { %v2579_v36 = vpop.xlane.xlu0 %2578 }
 0x83b   :  { %v2595_v42 = vmul.f32 0.0078125, %v2579_v36 }
 0x83d   :  { %v6741_v59 = vsub.f32 %v2568_v1, %v2595_v42 }
 0x83e   :  { %v2581_v19 = vpop.xlane.xlu0 %2580 }
 0x83f   :  { %v2596_v2 = vmul.f32 0.0078125, %v2581_v19  ;;  %v2611_v18 = vmul.f32 %v6741_v59, %v6741_v59 }
 0x841   :  { %v6747_v10 = vsub.f32 %v2569_v11, %v2596_v2  ;;  %2619 = vadd.xlane.f32.xlu0 %v2611_v18 }
 0x842   :  { %v2583_v62 = vpop.xlane.xlu1 %2582 }
 0x843   :  { %v2597_v37 = vmul.f32 0.0078125, %v2583_v62  ;;  %v2612_v7 = vmul.f32 %v6747_v10, %v6747_v10 }
 0x845   :  { %v6753_v50 = vsub.f32 %v2570_v40, %v2597_v37  ;;  %2621 = vadd.xlane.f32.xlu1 %v2612_v7  ;;  %v4490_v40 = vpack.c.bf16 %v2710_v23, %v2708_v21 }
 0x846   :  { %v2585_v9 = vpop.xlane.xlu1 %2584 }
 0x847   :  { %v2598_v1 = vmul.f32 0.0078125, %v2585_v9  ;;  %v2613_v5 = vmul.f32 %v6753_v50, %v6753_v50  ;;  %4491 = vmatprep.subr.bf16.mxu1 %v4490_v40 }
 0x849   :  { %v6759_v8 = vsub.f32 %v2571_v45, %v2598_v1  ;;  %2623 = vadd.xlane.f32.xlu0 %v2613_v5  ;;  %v4492_v45 = vpack.c.bf16 %v2709_v44, %v2707_v31 }
 0x84a   :  { %v2587_v0 = vpop.xlane.xlu0 %2586 }
 0x84b   :  { %v2599_v17 = vmul.f32 0.0078125, %v2587_v0  ;;  %v2614_v11 = vmul.f32 %v6759_v8, %v6759_v8  ;;  %4493 = vmatpush1.bf16.msra.mxu1 %v4492_v45 }
 0x84d   :  { %v6763_v13 = vsub.f32 %v2572_v20, %v2599_v17  ;;  %2625 = vadd.xlane.f32.xlu1 %v2614_v11  ;;  %v4494_v20 = vpack.c.bf16 %v2714_v12, %v2712_v6  ;;  %v3580_v17 = vld [vmem:[#allocation28] ss:$0 sm:$0xff] }
 0x84e   :  { %v2589_v29 = vpop.xlane.xlu1 %2588 }
 0x84f   :  { %v2600_v49 = vmul.f32 0.0078125, %v2589_v29  ;;  %v2615_v58 = vmul.f32 %v6763_v13, %v6763_v13  ;;  %4495 = vmatprep.subr.bf16.mxu1 %v4494_v20  ;;  %v3581_v29 = vld [vmem:[#allocation29] ss:$0 sm:$0xff] }
 0x851   :  { %v6781_v4 = vsub.f32 %v2573_v27, %v2600_v49  ;;  %2627 = vadd.xlane.f32.xlu0 %v2615_v58  ;;  %v4496_v27 = vpack.c.bf16 %v2713_v24, %v2711_v22 }
 0x852   :  { %v2591_v16 = vpop.xlane.xlu0 %2590 }
 0x853   :  { %v2601_v25 = vmul.f32 0.0078125, %v2591_v16  ;;  %v2616_v26 = vmul.f32 %v6781_v4, %v6781_v4  ;;  %4497 = vmatpush1.bf16.msra.mxu1 %v4496_v27 }
 0x854   :  { %4499 = vmatprep.subr.bf16.mxu1 %v4498_v43 }
 0x855   :  { %v6799_v28 = vsub.f32 %v2574_v35, %v2601_v25  ;;  %2629 = vadd.xlane.f32.xlu1 %v2616_v26 }
 0x856   :  { %v2593_v47 = vpop.xlane.xlu1 %2592 }
 0x857   :  { %v2602_v35 = vmul.f32 0.0078125, %v2593_v47  ;;  %v2617_v48 = vmul.f32 %v6799_v28, %v6799_v28  ;;  %4501 = vmatpush1.bf16.msra.mxu1 %v4500_v14 }
 0x858   :  { %4503 = vmatprep.subr.bf16.mxu1 %v4502_v55 }
 0x859   :  { %v6817_v63 = vsub.f32 %v2575_v41, %v2602_v35  ;;  %2631 = vadd.xlane.f32.xlu0 %v2617_v48 }
 0x85b   :  { %v2618_v41 = vmul.f32 %v6817_v63, %v6817_v63  ;;  %4505 = vmatpush1.bf16.msra.mxu1 %v4504_v46 }
 0x85c   :  { %4507 = vmatprep.subr.bf16.mxu1 %v4506_v56 }
 0x85d   :  { %2633 = vadd.xlane.f32.xlu1 %v2618_v41 }
 0x85f   :  { %4509 = vmatpush1.bf16.msra.mxu1 %v4508_v51  ;;  %v7576_v51 = vld [vmem:[#allocation104_spill] sm:$0xff] }
 0x8ce   :  { %v2620_v15 = vpop.xlane.xlu0 %2619 }
 0x8cf   :  { %v2635_v36 = vmul.f32 0.0078125, %v2620_v15  ;;  %v2736_v15 = vrot.slane %v2727_v60, %v7576_v51 }
 0x8d1   :  { %v2643_v42 = vadd.f32 1e-05, %v2635_v36 }
 0x8d2   :  { %v2622_v19 = vpop.xlane.xlu1 %2621 }
 0x8d3   :  { %4736 = vrsqrt.f32 %v2643_v42  ;;  %v2636_v2 = vmul.f32 0.0078125, %v2622_v19 }
 0x8d5   :  { %v2644_v18 = vadd.f32 1e-05, %v2636_v2 }
 0x8d6   :  { %v2624_v62 = vpop.xlane.xlu0 %2623 }
 0x8d7   :  { %4738 = vrsqrt.f32 %v2644_v18  ;;  %v2637_v37 = vmul.f32 0.0078125, %v2624_v62 }
 0x8d9   :  { %v2645_v7 = vadd.f32 1e-05, %v2637_v37 }
 0x8da   :  { %v2626_v9 = vpop.xlane.xlu1 %2625 }
 0x8db   :  { %4740 = vrsqrt.f32 %v2645_v7  ;;  %v2638_v1 = vmul.f32 0.0078125, %v2626_v9 }
 0x8dd   :  { %v4737_v5 = vpop.eup %4736  ;;  %v2646_v0 = vadd.f32 1e-05, %v2638_v1 }
 0x8de   :  { %v2628_v11 = vpop.xlane.xlu0 %2627  ;;  %v2659_v21 = vmul.f32 %v4737_v5, %v6741_v59 }
 0x8df   :  { %4742 = vrsqrt.f32 %v2646_v0  ;;  %v2639_v23 = vmul.f32 0.0078125, %v2628_v11 }
 0x8e0   :  { %v2673_v40 = vmul.f32 %v3580_v17, %v2659_v21 }
 0x8e1   :  { %v4739_v31 = vpop.eup %4738  ;;  %v2647_v44 = vadd.f32 1e-05, %v2639_v23 }
 0x8e2   :  { %v2630_v49 = vpop.xlane.xlu1 %2629  ;;  %v2687_v58 = vadd.f32 %v3581_v29, %v2673_v40  ;;  %v2660_v45 = vmul.f32 %v4739_v31, %v6747_v10 }
 0x8e3   :  { %4744 = vrsqrt.f32 %v2647_v44  ;;  %v2640_v6 = vmul.f32 0.0078125, %v2630_v49 }
 0x8e4   :  { %2804 = vmatmul.mubr.f32.vlgmr.msra.gmra.mrb[0].mxu1 %v2687_v58  ;;  %v2674_v12 = vmul.f32 %v3580_v17, %v2660_v45 }
 0x8e5   :  { %v4741_v16 = vpop.eup %4740  ;;  %v2648_v20 = vadd.f32 1e-05, %v2640_v6  ;;  %2809 = vmatprep.mubr.f32.mxu1 %v7574_v53 }
 0x8e6   :  { %v2632_v22 = vpop.xlane.xlu0 %2631  ;;  %v2688_v59 = vadd.f32 %v3581_v29, %v2674_v12  ;;  %v2661_v24 = vmul.f32 %v4741_v16, %v6753_v50 }
 0x8e7   :  { %4746 = vrsqrt.f32 %v2648_v20  ;;  %v2641_v25 = vmul.f32 0.0078125, %v2632_v22 }
 0x8e8   :  { %2810 = vmatmul.mubr.f32.gmra.mrb[2].mxu1 %v2688_v59  ;;  %v2675_v26 = vmul.f32 %v3580_v17, %v2661_v24 }
 0x8e9   :  { %v4743_v27 = vpop.eup %4742  ;;  %v2649_v32 = vadd.f32 1e-05, %v2641_v25  ;;  %2815 = vmatprep.mubr.f32.mxu1 %v7574_v53 }
 0x8ea   :  { %v2634_v10 = vpop.xlane.xlu1 %2633  ;;  %v2689_v34 = vadd.f32 %v3581_v29, %v2675_v26  ;;  %v2662_v47 = vmul.f32 %v4743_v27, %v6759_v8 }
 0x8eb   :  { %4748 = vrsqrt.f32 %v2649_v32  ;;  %v2642_v43 = vmul.f32 0.0078125, %v2634_v10 }
 0x8ec   :  { %2816 = vmatmul.mubr.f32.gmra.mrb[4].mxu1 %v2689_v34  ;;  %v2676_v61 = vmul.f32 %v3580_v17, %v2662_v47 }
 0x8ed   :  { %v4745_v30 = vpop.eup %4744  ;;  %v2650_v35 = vadd.f32 1e-05, %v2642_v43  ;;  %2821 = vmatprep.mubr.f32.mxu1 %v7574_v53 }
 0x8ee   :  { %v2690_v50 = vadd.f32 %v3581_v29, %v2676_v61  ;;  %v2663_v48 = vmul.f32 %v4745_v30, %v6763_v13 }
 0x8ef   :  { %4750 = vrsqrt.f32 %v2650_v35 }
 0x8f0   :  { %2822 = vmatmul.mubr.f32.gmra.mrb[6].mxu1 %v2690_v50  ;;  %v2677_v14 = vmul.f32 %v3580_v17, %v2663_v48 }
 0x8f1   :  { %v4747_v52 = vpop.eup %4746  ;;  %2827 = vmatprep.mubr.f32.mxu1 %v7574_v53 }
 0x8f2   :  { %v2691_v33 = vadd.f32 %v3581_v29, %v2677_v14  ;;  %v2664_v8 = vmul.f32 %v4747_v52, %v6781_v4 }
 0x8f4   :  { %2828 = vmatmul.mubr.f32.gmra.mrb[8].mxu1 %v2691_v33  ;;  %v2678_v55 = vmul.f32 %v3580_v17, %v2664_v8 }
 0x8f5   :  { %v4749_v54 = vpop.eup %4748  ;;  %2833 = vmatprep.mubr.f32.mxu1 %v7574_v53 }
 0x8f6   :  { %v2692_v38 = vadd.f32 %v3581_v29, %v2678_v55  ;;  %v2665_v41 = vmul.f32 %v4749_v54, %v6799_v28  ;;  %v2732_v28 = vrot.slane %v2727_v60, %v7575_v3 }
 0x8f8   :  { %2834 = vmatmul.mubr.f32.gmra.mrb[10].mxu1 %v2692_v38  ;;  %v2679_v46 = vmul.f32 %v3580_v17, %v2665_v41 }
 0x8f9   :  { %v4751_v13 = vpop.eup %4750  ;;  %2839 = vmatprep.mubr.f32.mxu1 %v7574_v53 }
 0x8fa   :  { %v2693_v57 = vadd.f32 %v3581_v29, %v2679_v46  ;;  %v2666_v39 = vmul.f32 %v4751_v13, %v6817_v63 }
 0x8fc   :  { %2840 = vmatmul.mubr.f32.gmra.mrb[12].mxu1 %v2693_v57  ;;  %v2680_v56 = vmul.f32 %v3580_v17, %v2666_v39  ;;  %v3069_v39 = vld [vmem:[#allocation31 + $0x80] sm:$0xff] }
 0x8fd   :  { %2845 = vmatprep.mubr.f32.mxu1 %v7574_v53 }
 0x8fe   :  { %v2694_v4 = vadd.f32 %v3581_v29, %v2680_v56  ;;  %v3070_v56 = vld [vmem:[#allocation31 + $0x88] sm:$0xff] }
 0x8ff   :  { %v4510_v60 = vpack.c.bf16 %v3070_v56, %v3069_v39 }
 0x900   :  { %2846 = vmatmul.mubr.f32.gmra.mrb[14].mxu1 %v2694_v4  ;;  %v3053_v4 = vld [vmem:[#allocation31] sm:$0xff] }
 0x901   :  { %4511 = vmatprep.subr.bf16.mxu0 %v4510_v60 }
 0x9b7   :  { %v2805_v36 = vpop.f32.mrb[0].mxu1 }
 0x9b8   :  { %v6865_v42 = vadd.f32 %v2805_v36, %v2732_v28  ;;  %v2807_v19 = vpop.f32.mrb[1].mxu1  ;;  %v3072_v36 = vld [vmem:[#allocation31 + $0x98] sm:$0xff] }
 0x9b9   :  { %v6867_v2 = vadd.f32 %v2807_v19, %v2736_v15 }
 0x9ba   :  { %v2852_v63 = vmax.f32 %v6865_v42, 0.0 }
 0x9bb   :  { %v2853_v53 = vmax.f32 %v6867_v2, 0.0  ;;  %v2811_v18 = vpop.f32.mrb[2].mxu1 }
 0x9bc   :  { %v6871_v62 = vadd.f32 %v2811_v18, %v2732_v28  ;;  %v2813_v37 = vpop.f32.mrb[3].mxu1 }
 0x9bd   :  { %v6873_v7 = vadd.f32 %v2813_v37, %v2736_v15  ;;  %v2870_v9 = vadd.f32 %v2853_v53, %v2852_v63  ;;  %v3055_v37 = vld [vmem:[#allocation31 + $0x10] sm:$0xff] }
 0x9be   :  { %v2854_v1 = vmax.f32 %v6871_v62, 0.0 }
 0x9bf   :  { %v2855_v5 = vmax.f32 %v6873_v7, 0.0  ;;  %2871 = vadd.xlane.f32.xlu0 %v2870_v9  ;;  %v2817_v0 = vpop.f32.mrb[4].mxu1  ;;  %v3056_v9 = vld [vmem:[#allocation31 + $0x18] sm:$0xff] }
 0x9c0   :  { %v6881_v17 = vadd.f32 %v2817_v0, %v2732_v28  ;;  %v2819_v11 = vpop.f32.mrb[5].mxu1  ;;  %v3073_v0 = vld [vmem:[#allocation31 + $0xa0] sm:$0xff] }
 0x9c1   :  { %v6883_v21 = vadd.f32 %v2819_v11, %v2736_v15  ;;  %v2873_v23 = vadd.f32 %v2855_v5, %v2854_v1  ;;  %v3074_v11 = vld [vmem:[#allocation31 + $0xa8] sm:$0xff] }
 0x9c2   :  { %v2856_v29 = vmax.f32 %v6881_v17, 0.0 }
 0x9c3   :  { %v2857_v40 = vmax.f32 %v6883_v21, 0.0  ;;  %2874 = vadd.xlane.f32.xlu1 %v2873_v23  ;;  %v2823_v31 = vpop.f32.mrb[6].mxu1  ;;  %v4516_v23 = vpack.c.bf16 %v3056_v9, %v3055_v37  ;;  %v3076_v37 = vld [vmem:[#allocation31 + $0xb8] sm:$0xff]  ;;  %v3059_v9 = vld [vmem:[#allocation31 + $0x30] sm:$0xff] }
 0x9c4   :  { %v6891_v44 = vadd.f32 %v2823_v31, %v2732_v28  ;;  %v2825_v49 = vpop.f32.mrb[7].mxu1  ;;  %v4518_v31 = vpack.c.bf16 %v3074_v11, %v3073_v0  ;;  %v3060_v0 = vld [vmem:[#allocation31 + $0x38] sm:$0xff] }
 0x9c5   :  { %v6893_v58 = vadd.f32 %v2825_v49, %v2736_v15  ;;  %v2876_v45 = vadd.f32 %v2857_v40, %v2856_v29  ;;  %v3057_v49 = vld [vmem:[#allocation31 + $0x20] sm:$0xff] }
 0x9c6   :  { %v2858_v6 = vmax.f32 %v6891_v44, 0.0 }
 0x9c7   :  { %v2859_v12 = vmax.f32 %v6893_v58, 0.0  ;;  %2877 = vadd.xlane.f32.xlu0 %v2876_v45  ;;  %v2829_v16 = vpop.f32.mrb[8].mxu1  ;;  %v3058_v45 = vld [vmem:[#allocation31 + $0x28] sm:$0xff] }
 0x9c8   :  { %v6901_v20 = vadd.f32 %v2829_v16, %v2732_v28  ;;  %v2831_v22 = vpop.f32.mrb[9].mxu1  ;;  %v4520_v16 = vpack.c.bf16 %v3058_v45, %v3057_v49 }
 0x9c9   :  { %v6903_v59 = vadd.f32 %v2831_v22, %v2736_v15  ;;  %v2879_v24 = vadd.f32 %v2859_v12, %v2858_v6 }
 0x9ca   :  { %v2860_v25 = vmax.f32 %v6901_v20, 0.0 }
 0x9cb   :  { %v2861_v26 = vmax.f32 %v6903_v59, 0.0  ;;  %2880 = vadd.xlane.f32.xlu1 %v2879_v24  ;;  %v2835_v27 = vpop.f32.mrb[10].mxu1 }
 0x9cc   :  { %v6911_v32 = vadd.f32 %v2835_v27, %v2732_v28  ;;  %v2837_v10 = vpop.f32.mrb[11].mxu1 }
 0x9cd   :  { %v6913_v34 = vadd.f32 %v2837_v10, %v2736_v15  ;;  %v2882_v47 = vadd.f32 %v2861_v26, %v2860_v25 }
 0x9ce   :  { %v2862_v43 = vmax.f32 %v6911_v32, 0.0 }
 0x9cf   :  { %v2863_v61 = vmax.f32 %v6913_v34, 0.0  ;;  %2883 = vadd.xlane.f32.xlu0 %v2882_v47  ;;  %v2841_v30 = vpop.f32.mrb[12].mxu1  ;;  %v3078_v34 = vld [vmem:[#allocation31 + $0xc8] sm:$0xff] }
 0x9d0   :  { %v6921_v35 = vadd.f32 %v2841_v30, %v2732_v28  ;;  %v2843_v50 = vpop.f32.mrb[13].mxu1 }
 0x9d1   :  { %v6923_v48 = vadd.f32 %v2843_v50, %v2736_v15  ;;  %v2885_v14 = vadd.f32 %v2863_v61, %v2862_v43 }
 0x9d2   :  { %v2864_v52 = vmax.f32 %v6921_v35, 0.0 }
 0x9d3   :  { %v2865_v33 = vmax.f32 %v6923_v48, 0.0  ;;  %2886 = vadd.xlane.f32.xlu1 %v2885_v14  ;;  %v2847_v8 = vpop.f32.mrb[14].mxu1  ;;  %v3080_v48 = vld [vmem:[#allocation31 + $0xd8] sm:$0xff] }
 0x9d4   :  { %v6931_v55 = vadd.f32 %v2847_v8, %v2732_v28  ;;  %v2849_v54 = vpop.f32.mrb[15].mxu1  ;;  %v3054_v28 = vld [vmem:[#allocation31 + $0x8] sm:$0xff] }
 0x9d5   :  { %v6933_v38 = vadd.f32 %v2849_v54, %v2736_v15  ;;  %v2888_v41 = vadd.f32 %v2865_v33, %v2864_v52  ;;  %v3071_v15 = vld [vmem:[#allocation31 + $0x90] sm:$0xff]  ;;  %v4512_v19 = vpack.c.bf16 %v3054_v28, %v3053_v4 }
 0x9d6   :  { %v2866_v46 = vmax.f32 %v6931_v55, 0.0  ;;  %v4514_v18 = vpack.c.bf16 %v3072_v36, %v3071_v15  ;;  %v3081_v55 = vld [vmem:[#allocation31 + $0xe0] sm:$0xff] }
 0x9d7   :  { %v2867_v13 = vmax.f32 %v6933_v38, 0.0  ;;  %2889 = vadd.xlane.f32.xlu0 %v2888_v41  ;;  %4513 = vmatpush3.bf16.msra.mxu0 %v4512_v19 }
 0x9d8   :  { %4515 = vmatprep.subr.bf16.mxu0 %v4514_v18  ;;  %v3075_v18 = vld [vmem:[#allocation31 + $0xb0] sm:$0xff] }
 0x9d9   :  { %v2891_v57 = vadd.f32 %v2867_v13, %v2866_v46 }
 0x9db   :  { %2892 = vadd.xlane.f32.xlu1 %v2891_v57  ;;  %4517 = vmatpush3.bf16.msra.mxu0 %v4516_v23  ;;  %v4524_v23 = vpack.c.bf16 %v3060_v0, %v3059_v9 }
 0x9dc   :  { %4519 = vmatprep.subr.bf16.mxu0 %v4518_v31 }
 0x9df   :  { %4521 = vmatpush3.bf16.msra.mxu0 %v4520_v16 }
 0xa4c   :  { %v2872_v22 = vpop.xlane.xlu0 %2871 }
 0xa4d   :  { %v2895_v24 = vmul.f32 0.00390625, %v2872_v22 }
 0xa4f   :  { %v6947_v27 = vsub.f32 %v2852_v63, %v2895_v24  ;;  %v6951_v10 = vsub.f32 %v2853_v53, %v2895_v24  ;;  %v3061_v24 = vld [vmem:[#allocation31 + $0x40] sm:$0xff] }
 0xa50   :  { %v2875_v47 = vpop.xlane.xlu1 %2874 }
 0xa51   :  { %v2896_v30 = vmul.f32 0.00390625, %v2875_v47  ;;  %v2919_v50 = vmul.f32 %v6947_v27, %v6947_v27  ;;  %v2920_v14 = vmul.f32 %v6951_v10, %v6951_v10  ;;  %v3062_v47 = vld [vmem:[#allocation31 + $0x48] sm:$0xff] }
 0xa53   :  { %v6959_v8 = vsub.f32 %v2854_v1, %v2896_v30  ;;  %v6963_v42 = vsub.f32 %v2855_v5, %v2896_v30  ;;  %v2935_v63 = vadd.f32 %v2920_v14, %v2919_v50  ;;  %v4528_v50 = vpack.c.bf16 %v3062_v47, %v3061_v24 }
 0xa54   :  { %v2878_v2 = vpop.xlane.xlu0 %2877 }
 0xa55   :  { %v2897_v53 = vmul.f32 0.00390625, %v2878_v2  ;;  %2936 = vadd.xlane.f32.xlu0 %v2935_v63  ;;  %v2921_v54 = vmul.f32 %v6959_v8, %v6959_v8  ;;  %v2922_v41 = vmul.f32 %v6963_v42, %v6963_v42 }
 0xa57   :  { %v6971_v57 = vsub.f32 %v2856_v29, %v2897_v53  ;;  %v6975_v62 = vsub.f32 %v2857_v40, %v2897_v53  ;;  %v2938_v7 = vadd.f32 %v2922_v41, %v2921_v54  ;;  %v3063_v41 = vld [vmem:[#allocation31 + $0x50] sm:$0xff] }
 0xa58   :  { %v2881_v1 = vpop.xlane.xlu1 %2880 }
 0xa59   :  { %v2898_v5 = vmul.f32 0.00390625, %v2881_v1  ;;  %2939 = vadd.xlane.f32.xlu1 %v2938_v7  ;;  %v2923_v39 = vmul.f32 %v6971_v57, %v6971_v57  ;;  %v2924_v56 = vmul.f32 %v6975_v62, %v6975_v62  ;;  %v3064_v7 = vld [vmem:[#allocation31 + $0x58] sm:$0xff] }
 0xa5a   :  { %v4532_v1 = vpack.c.bf16 %v3064_v7, %v3063_v41 }
 0xa5b   :  { %v6983_v4 = vsub.f32 %v2858_v6, %v2898_v5  ;;  %v6987_v17 = vsub.f32 %v2859_v12, %v2898_v5  ;;  %v2941_v21 = vadd.f32 %v2924_v56, %v2923_v39 }
 0xa5c   :  { %v2884_v29 = vpop.xlane.xlu0 %2883 }
 0xa5d   :  { %v2899_v40 = vmul.f32 0.00390625, %v2884_v29  ;;  %2942 = vadd.xlane.f32.xlu0 %v2941_v21  ;;  %v2925_v60 = vmul.f32 %v6983_v4, %v6983_v4  ;;  %v2926_v28 = vmul.f32 %v6987_v17, %v6987_v17  ;;  %v3066_v21 = vld [vmem:[#allocation31 + $0x68] sm:$0xff] }
 0xa5f   :  { %v6995_v15 = vsub.f32 %v2860_v25, %v2899_v40  ;;  %v6999_v44 = vsub.f32 %v2861_v26, %v2899_v40  ;;  %v2944_v58 = vadd.f32 %v2926_v28, %v2925_v60  ;;  %v4522_v26 = vpack.c.bf16 %v3076_v37, %v3075_v18  ;;  %v3083_v40 = vld [vmem:[#allocation31 + $0xf0] sm:$0xff]  ;;  %v3084_v60 = vld [vmem:[#allocation31 + $0xf8] sm:$0xff] }
 0xa60   :  { %v2887_v6 = vpop.xlane.xlu1 %2886  ;;  %v4538_v28 = vpack.c.bf16 %v3084_v60, %v3083_v40 }
 0xa61   :  { %v2900_v12 = vmul.f32 0.00390625, %v2887_v6  ;;  %2945 = vadd.xlane.f32.xlu1 %v2944_v58  ;;  %v2927_v36 = vmul.f32 %v6995_v15, %v6995_v15  ;;  %v2928_v19 = vmul.f32 %v6999_v44, %v6999_v44  ;;  %4523 = vmatprep.subr.bf16.mxu0 %v4522_v26  ;;  %v3067_v58 = vld [vmem:[#allocation31 + $0x70] sm:$0xff]  ;;  %v3068_v6 = vld [vmem:[#allocation31 + $0x78] sm:$0xff] }
 0xa62   :  { %4525 = vmatpush3.bf16.msra.mxu0 %v4524_v23  ;;  %v2868_v23 = vld [vmem:[%s7262_s20] sm:$0x3] }
 0xa63   :  { %v7007_v20 = vsub.f32 %v2862_v43, %v2900_v12  ;;  %v7011_v59 = vsub.f32 %v2863_v61, %v2900_v12  ;;  %v2947_v25 = vadd.f32 %v2928_v19, %v2927_v36  ;;  %v3077_v43 = vld [vmem:[#allocation31 + $0xc0] sm:$0xff]  ;;  %v4540_v12 = vpack.c.bf16 %v3068_v6, %v3067_v58 }
 0xa64   :  { %v2890_v11 = vpop.xlane.xlu0 %2889  ;;  %v4526_v22 = vpack.c.bf16 %v3078_v34, %v3077_v43  ;;  %v7048_v43 = vrot.slane %v2868_v23, %v7575_v3  ;;  %v7051_v34 = vrot.slane %v2868_v23, %v7576_v51 }
 0xa65   :  { %v2901_v31 = vmul.f32 0.00390625, %v2890_v11  ;;  %2948 = vadd.xlane.f32.xlu0 %v2947_v25  ;;  %v2929_v49 = vmul.f32 %v7007_v20, %v7007_v20  ;;  %v2930_v32 = vmul.f32 %v7011_v59, %v7011_v59 }
 0xa66   :  { %4527 = vmatprep.subr.bf16.mxu0 %v4526_v22 }
 0xa67   :  { %v7019_v61 = vsub.f32 %v2864_v52, %v2901_v31  ;;  %v7023_v45 = vsub.f32 %v2865_v33, %v2901_v31  ;;  %v2950_v16 = vadd.f32 %v2930_v32, %v2929_v49  ;;  %4529 = vmatpush3.bf16.msra.mxu0 %v4528_v50  ;;  %v3079_v52 = vld [vmem:[#allocation31 + $0xd0] sm:$0xff]  ;;  %v2869_v32 = vld [vmem:[%s7263_s21] sm:$0x3] }
 0xa68   :  { %v2893_v30 = vpop.xlane.xlu1 %2892  ;;  %v4530_v54 = vpack.c.bf16 %v3080_v48, %v3079_v52  ;;  %v7056_v50 = vrot.slane %v2869_v32, %v7575_v3 }
 0xa69   :  { %v2902_v14 = vmul.f32 0.00390625, %v2893_v30  ;;  %2951 = vadd.xlane.f32.xlu1 %v2950_v16  ;;  %v2931_v63 = vmul.f32 %v7019_v61, %v7019_v61  ;;  %v2932_v35 = vmul.f32 %v7023_v45, %v7023_v45 }
 0xa6a   :  { %4531 = vmatprep.subr.bf16.mxu0 %v4530_v54 }
 0xa6b   :  { %v7031_v33 = vsub.f32 %v2866_v46, %v2902_v14  ;;  %v7035_v2 = vsub.f32 %v2867_v13, %v2902_v14  ;;  %v2953_v53 = vadd.f32 %v2932_v35, %v2931_v63  ;;  %4533 = vmatpush3.bf16.msra.mxu0 %v4532_v1  ;;  %v3082_v46 = vld [vmem:[#allocation31 + $0xe8] sm:$0xff]  ;;  %v3065_v13 = vld [vmem:[#allocation31 + $0x60] sm:$0xff]  ;;  %v7059_v14 = vrot.slane %v2869_v32, %v7576_v51 }
 0xa6c   :  { %v4534_v38 = vpack.c.bf16 %v3082_v46, %v3081_v55  ;;  %v4536_v29 = vpack.c.bf16 %v3066_v21, %v3065_v13 }
 0xa6d   :  { %2954 = vadd.xlane.f32.xlu0 %v2953_v53  ;;  %v2933_v5 = vmul.f32 %v7031_v33, %v7031_v33  ;;  %v2934_v39 = vmul.f32 %v7035_v2, %v7035_v2 }
 0xa6e   :  { %4535 = vmatprep.subr.bf16.mxu0 %v4534_v38 }
 0xa6f   :  { %v2956_v56 = vadd.f32 %v2934_v39, %v2933_v5  ;;  %4537 = vmatpush3.bf16.msra.mxu0 %v4536_v29 }
 0xa70   :  { %4539 = vmatprep.subr.bf16.mxu0 %v4538_v28 }
 0xa71   :  { %2957 = vadd.xlane.f32.xlu1 %v2956_v56 }
 0xa73   :  { %4541 = vmatpush3.bf16.msra.mxu0 %v4540_v12 }
 0xae2   :  { %v2937_v36 = vpop.xlane.xlu0 %2936 }
 0xae3   :  { %v2959_v19 = vmul.f32 0.00390625, %v2937_v36 }
 0xae5   :  { %v2967_v18 = vadd.f32 1e-05, %v2959_v19 }
 0xae6   :  { %v2940_v37 = vpop.xlane.xlu1 %2939 }
 0xae7   :  { %4752 = vrsqrt.f32 %v2967_v18  ;;  %v2960_v25 = vmul.f32 0.00390625, %v2940_v37 }
 0xae9   :  { %v2968_v26 = vadd.f32 1e-05, %v2960_v25 }
 0xaea   :  { %v2943_v9 = vpop.xlane.xlu0 %2942 }
 0xaeb   :  { %4754 = vrsqrt.f32 %v2968_v26  ;;  %v2961_v0 = vmul.f32 0.00390625, %v2943_v9 }
 0xaed   :  { %v2969_v11 = vadd.f32 1e-05, %v2961_v0 }
 0xaee   :  { %v2946_v31 = vpop.xlane.xlu1 %2945 }
 0xaef   :  { %4756 = vrsqrt.f32 %v2969_v11  ;;  %v2962_v49 = vmul.f32 0.00390625, %v2946_v31 }
 0xaf1   :  { %v4753_v16 = vpop.eup %4752  ;;  %v2970_v22 = vadd.f32 1e-05, %v2962_v49 }
 0xaf2   :  { %v2983_v24 = vmul.f32 %v4753_v16, %v6947_v27  ;;  %v2949_v47 = vpop.xlane.xlu0 %2948  ;;  %v2984_v30 = vmul.f32 %v4753_v16, %v6951_v10 }
 0xaf3   :  { %4758 = vrsqrt.f32 %v2970_v22  ;;  %v2963_v63 = vmul.f32 0.00390625, %v2949_v47 }
 0xaf4   :  { %v3011_v35 = vmul.f32 %v7051_v34, %v2984_v30  ;;  %v3010_v52 = vmul.f32 %v7048_v43, %v2983_v24 }
 0xaf5   :  { %v4755_v48 = vpop.eup %4754  ;;  %v2971_v53 = vadd.f32 1e-05, %v2963_v63 }
 0xaf6   :  { %v2952_v54 = vpop.xlane.xlu1 %2951  ;;  %v3038_v27 = vadd.f32 %v7059_v14, %v3011_v35  ;;  %v3037_v41 = vadd.f32 %v7056_v50, %v3010_v52  ;;  %v2986_v10 = vmul.f32 %v4755_v48, %v6963_v42  ;;  %v2985_v3 = vmul.f32 %v4755_v48, %v6959_v8 }
 0xaf7   :  { %4760 = vrsqrt.f32 %v2971_v53  ;;  %v2964_v51 = vmul.f32 0.00390625, %v2952_v54 }
 0xaf8   :  { %3156 = vmatprep.mubr.f32.mxu0 %v3038_v27  ;;  %v3013_v7 = vmul.f32 %v7051_v34, %v2986_v10  ;;  %v3012_v1 = vmul.f32 %v7048_v43, %v2985_v3 }
 0xaf9   :  { %v4757_v5 = vpop.eup %4756  ;;  %v2972_v39 = vadd.f32 1e-05, %v2964_v51  ;;  %3157 = vmatmul.mubr.f32.vlgmr.msra.gmra.mrb[16].mxu0 %v3037_v41 }
 0xafa   :  { %v2955_v55 = vpop.xlane.xlu0 %2954  ;;  %v3040_v46 = vadd.f32 %v7059_v14, %v3013_v7  ;;  %v3039_v56 = vadd.f32 %v7056_v50, %v3012_v1  ;;  %v2988_v38 = vmul.f32 %v4757_v5, %v6975_v62  ;;  %v2987_v42 = vmul.f32 %v4757_v5, %v6971_v57 }
 0xafb   :  { %4762 = vrsqrt.f32 %v2972_v39  ;;  %v2965_v8 = vmul.f32 0.00390625, %v2955_v55 }
 0xafc   :  { %3161 = vmatprep.mubr.f32.mxu0 %v3040_v46  ;;  %v3015_v13 = vmul.f32 %v7051_v34, %v2988_v38  ;;  %v3014_v21 = vmul.f32 %v7048_v43, %v2987_v42 }
 0xafd   :  { %v4759_v29 = vpop.eup %4758  ;;  %v2973_v40 = vadd.f32 1e-05, %v2965_v8  ;;  %3162 = vmatmul.mubr.f32.gmra.mrb[18].mxu0 %v3039_v56 }
 0xafe   :  { %v2958_v60 = vpop.xlane.xlu1 %2957  ;;  %v3042_v28 = vadd.f32 %v7059_v14, %v3015_v13  ;;  %v3041_v58 = vadd.f32 %v7056_v50, %v3014_v21  ;;  %v2990_v6 = vmul.f32 %v4759_v29, %v6987_v17  ;;  %v2989_v62 = vmul.f32 %v4759_v29, %v6983_v4 }
 0xaff   :  { %4764 = vrsqrt.f32 %v2973_v40  ;;  %v2966_v57 = vmul.f32 0.00390625, %v2958_v60 }
 0xb00   :  { %3166 = vmatprep.mubr.f32.mxu0 %v3042_v28  ;;  %v3017_v12 = vmul.f32 %v7051_v34, %v2990_v6  ;;  %v3016_v36 = vmul.f32 %v7048_v43, %v2989_v62 }
 0xb01   :  { %v4761_v19 = vpop.eup %4760  ;;  %v2974_v18 = vadd.f32 1e-05, %v2966_v57  ;;  %3167 = vmatmul.mubr.f32.gmra.mrb[20].mxu0 %v3041_v58 }
 0xb02   :  { %v3044_v37 = vadd.f32 %v7059_v14, %v3017_v12  ;;  %v3043_v25 = vadd.f32 %v7056_v50, %v3016_v36  ;;  %v2992_v26 = vmul.f32 %v4761_v19, %v6999_v44  ;;  %v2991_v17 = vmul.f32 %v4761_v19, %v6995_v15 }
 0xb03   :  { %4766 = vrsqrt.f32 %v2974_v18 }
 0xb04   :  { %3171 = vmatprep.mubr.f32.mxu0 %v3044_v37  ;;  %v3019_v4 = vmul.f32 %v7051_v34, %v2992_v26  ;;  %v3018_v9 = vmul.f32 %v7048_v43, %v2991_v17 }
 0xb05   :  { %v4763_v0 = vpop.eup %4762  ;;  %3172 = vmatmul.mubr.f32.gmra.mrb[22].mxu0 %v3043_v25 }
 0xb06   :  { %v3046_v11 = vadd.f32 %v7059_v14, %v3019_v4  ;;  %v3045_v23 = vadd.f32 %v7056_v50, %v3018_v9  ;;  %v2994_v31 = vmul.f32 %v4763_v0, %v7011_v59  ;;  %v2993_v49 = vmul.f32 %v4763_v0, %v7007_v20  ;;  %v3323_v0 = vld [vmem:[%s7268_s26] sm:$0xff] }
 0xb08   :  { %3176 = vmatprep.mubr.f32.mxu0 %v3046_v11  ;;  %v3021_v44 = vmul.f32 %v7051_v34, %v2994_v31  ;;  %v3020_v15 = vmul.f32 %v7048_v43, %v2993_v49  ;;  %v3324_v11 = vld [vmem:[%s7268_s26 + $0x8] sm:$0xff]  ;;  %v3326_v49 = vld [vmem:[%s7268_s26 + $0x18] sm:$0xff] }
 0xb09   :  { %v4765_v32 = vpop.eup %4764  ;;  %3177 = vmatmul.mubr.f32.gmra.mrb[24].mxu0 %v3045_v23  ;;  %v3325_v23 = vld [vmem:[%s7268_s26 + $0x10] sm:$0xff]  ;;  %v4542_v31 = vpack.c.bf16 %v3324_v11, %v3323_v0 }
 0xb0a   :  { %v3048_v16 = vadd.f32 %v7059_v14, %v3021_v44  ;;  %v3047_v22 = vadd.f32 %v7056_v50, %v3020_v15  ;;  %v2996_v24 = vmul.f32 %v4765_v32, %v7023_v45  ;;  %v2995_v47 = vmul.f32 %v4765_v32, %v7019_v61 }
 0xb0b   :  { %v4546_v44 = vpack.c.bf16 %v3326_v49, %v3325_v23  ;;  %4543 = vmatprep.subr.bf16.mxu1 %v4542_v31 }
 0xb0c   :  { %3181 = vmatprep.mubr.f32.mxu0 %v3048_v16  ;;  %v3023_v59 = vmul.f32 %v7051_v34, %v2996_v24  ;;  %v3022_v20 = vmul.f32 %v7048_v43, %v2995_v47  ;;  %4545 = vmatpush3.bf16.msra.mxu1 %v4542_v31 }
 0xb0d   :  { %v4767_v30 = vpop.eup %4766  ;;  %3182 = vmatmul.mubr.f32.gmra.mrb[26].mxu0 %v3047_v22  ;;  %4547 = vmatprep.subr.bf16.mxu1 %v4546_v44 }
 0xb0e   :  { %v3050_v63 = vadd.f32 %v7059_v14, %v3023_v59  ;;  %v3049_v35 = vadd.f32 %v7056_v50, %v3022_v20  ;;  %v2998_v52 = vmul.f32 %v4767_v30, %v7035_v2  ;;  %v2997_v48 = vmul.f32 %v4767_v30, %v7031_v33  ;;  %v3582_v2 = vld [vmem:[%s7265_s23] ss:$0 sm:$0xff] }
 0xb10   :  { %3186 = vmatprep.mubr.f32.mxu0 %v3050_v63  ;;  %v3025_v45 = vmul.f32 %v7051_v34, %v2998_v52  ;;  %v3024_v61 = vmul.f32 %v7048_v43, %v2997_v48  ;;  %4549 = vmatpush3.bf16.msra.mxu1 %v4546_v44  ;;  %v3583_v44 = vld [vmem:[%s7266_s24] ss:$0 sm:$0xff] }
 0xb11   :  { %3187 = vmatmul.mubr.f32.gmra.mrb[28].mxu0 %v3049_v35 }
 0xb12   :  { %v3052_v53 = vadd.f32 %v7059_v14, %v3025_v45  ;;  %v3051_v54 = vadd.f32 %v7056_v50, %v3024_v61 }
 0xb14   :  { %3191 = vmatprep.mubr.f32.mxu0 %v3052_v53 }
 0xb15   :  { %3192 = vmatmul.mubr.f32.gmra.mrb[30].mxu0 %v3051_v54 }
 0xbcc   :  { %v3750_v27 = vpop.f32.mrb[16].mxu0 }
 0xbcd   :  { %v3751_v41 = vpop.f32.mrb[17].mxu0 }
 0xbce   :  { %v3752_v10 = vadd.f32 %v3751_v41, %v3750_v27 }
 0xbd0   :  { %v3753_v33 = vpop.f32.mrb[18].mxu0  ;;  %v3159_v3 = vadd.f32 %v3752_v10, %v3582_v2  ;;  %v3328_v10 = vld [vmem:[%s7268_s26 + $0x28] sm:$0xff] }
 0xbd1   :  { %v3754_v51 = vpop.f32.mrb[19].mxu0 }
 0xbd2   :  { %v3755_v34 = vadd.f32 %v3754_v51, %v3753_v33  ;;  %v3197_v7 = vmax.f32 %v3159_v3, 0.0 }
 0xbd4   :  { %3207 = vadd.xlane.f32.xlu0 %v3197_v7  ;;  %v3756_v43 = vpop.f32.mrb[20].mxu0  ;;  %v3164_v1 = vadd.f32 %v3755_v34, %v3582_v2 }
 0xbd5   :  { %v3757_v14 = vpop.f32.mrb[21].mxu0 }
 0xbd6   :  { %v3758_v5 = vadd.f32 %v3757_v14, %v3756_v43  ;;  %v3198_v50 = vmax.f32 %v3164_v1, 0.0  ;;  %v3329_v43 = vld [vmem:[%s7268_s26 + $0x30] sm:$0xff]  ;;  %v3330_v1 = vld [vmem:[%s7268_s26 + $0x38] sm:$0xff] }
 0xbd8   :  { %3209 = vadd.xlane.f32.xlu1 %v3198_v50  ;;  %v3759_v39 = vpop.f32.mrb[22].mxu0  ;;  %v3169_v55 = vadd.f32 %v3758_v5, %v3582_v2  ;;  %v4554_v5 = vpack.c.bf16 %v3330_v1, %v3329_v43 }
 0xbd9   :  { %v3760_v46 = vpop.f32.mrb[23].mxu0 }
 0xbda   :  { %v3761_v56 = vadd.f32 %v3760_v46, %v3759_v39  ;;  %v3199_v38 = vmax.f32 %v3169_v55, 0.0  ;;  %v3331_v46 = vld [vmem:[%s7268_s26 + $0x40] sm:$0xff] }
 0xbdc   :  { %3211 = vadd.xlane.f32.xlu0 %v3199_v38  ;;  %v3762_v42 = vpop.f32.mrb[24].mxu0  ;;  %v3174_v8 = vadd.f32 %v3761_v56, %v3582_v2  ;;  %v3332_v56 = vld [vmem:[%s7268_s26 + $0x48] sm:$0xff] }
 0xbdd   :  { %v3763_v13 = vpop.f32.mrb[25].mxu0 }
 0xbde   :  { %v3764_v21 = vadd.f32 %v3763_v13, %v3762_v42  ;;  %v3200_v29 = vmax.f32 %v3174_v8, 0.0  ;;  %v4558_v42 = vpack.c.bf16 %v3332_v56, %v3331_v46 }
 0xbe0   :  { %3213 = vadd.xlane.f32.xlu1 %v3200_v29  ;;  %v3765_v40 = vpop.f32.mrb[26].mxu0  ;;  %v3179_v60 = vadd.f32 %v3764_v21, %v3582_v2 }
 0xbe1   :  { %v3766_v28 = vpop.f32.mrb[27].mxu0 }
 0xbe2   :  { %v3767_v58 = vadd.f32 %v3766_v28, %v3765_v40  ;;  %v3201_v6 = vmax.f32 %v3179_v60, 0.0  ;;  %v3334_v40 = vld [vmem:[%s7268_s26 + $0x58] sm:$0xff] }
 0xbe4   :  { %3215 = vadd.xlane.f32.xlu0 %v3201_v6  ;;  %v3768_v62 = vpop.f32.mrb[28].mxu0  ;;  %v3184_v57 = vadd.f32 %v3767_v58, %v3582_v2  ;;  %v3335_v58 = vld [vmem:[%s7268_s26 + $0x60] sm:$0xff] }
 0xbe5   :  { %v3769_v12 = vpop.f32.mrb[29].mxu0 }
 0xbe6   :  { %v3770_v36 = vadd.f32 %v3769_v12, %v3768_v62  ;;  %v3202_v19 = vmax.f32 %v3184_v57, 0.0  ;;  %v3337_v57 = vld [vmem:[%s7268_s26 + $0x70] sm:$0xff]  ;;  %v3338_v12 = vld [vmem:[%s7268_s26 + $0x78] sm:$0xff] }
 0xbe8   :  { %3217 = vadd.xlane.f32.xlu1 %v3202_v19  ;;  %v3771_v18 = vpop.f32.mrb[30].mxu0  ;;  %v3189_v37 = vadd.f32 %v3770_v36, %v3582_v2  ;;  %v4570_v36 = vpack.c.bf16 %v3338_v12, %v3337_v57 }
 0xbe9   :  { %v3772_v25 = vpop.f32.mrb[31].mxu0 }
 0xbea   :  { %v3773_v26 = vadd.f32 %v3772_v25, %v3771_v18  ;;  %v3203_v17 = vmax.f32 %v3189_v37, 0.0 }
 0xbec   :  { %3219 = vadd.xlane.f32.xlu0 %v3203_v17  ;;  %v7110_v4 = vadd.f32 %v3773_v26, %v3582_v2  ;;  %v3327_v2 = vld [vmem:[%s7268_s26 + $0x20] sm:$0xff] }
 0xbed   :  { %v4550_v3 = vpack.c.bf16 %v3328_v10, %v3327_v2 }
 0xbee   :  { %v3204_v9 = vmax.f32 %v7110_v4, 0.0 }
 0xbef   :  { %4551 = vmatprep.subr.bf16.mxu1 %v4550_v3 }
 0xbf0   :  { %3221 = vadd.xlane.f32.xlu1 %v3204_v9  ;;  %4553 = vmatpush3.bf16.msra.mxu1 %v4550_v3 }
 0xbf1   :  { %4555 = vmatprep.subr.bf16.mxu1 %v4554_v5 }
 0xbf4   :  { %4557 = vmatpush3.bf16.msra.mxu1 %v4554_v5 }
 0xbf5   :  { %4559 = vmatprep.subr.bf16.mxu1 %v4558_v42 }
 0xbf8   :  { %4561 = vmatpush3.bf16.msra.mxu1 %v4558_v42 }
 0xc61   :  { %v3208_v15 = vpop.xlane.xlu0 %3207 }
 0xc62   :  { %v3223_v32 = vmul.f32 0.0078125, %v3208_v15 }
 0xc64   :  { %v7125_v16 = vsub.f32 %v3197_v7, %v3223_v32 }
 0xc65   :  { %v3210_v22 = vpop.xlane.xlu1 %3209 }
 0xc66   :  { %v3224_v24 = vmul.f32 0.0078125, %v3210_v22  ;;  %v3239_v47 = vmul.f32 %v7125_v16, %v7125_v16 }
 0xc68   :  { %v7129_v59 = vsub.f32 %v3198_v50, %v3224_v24  ;;  %3247 = vadd.xlane.f32.xlu0 %v3239_v47  ;;  %v3584_v24 = vld [vmem:[%s7577_s16] ss:$0 sm:$0xff] }
 0xc69   :  { %v3212_v20 = vpop.xlane.xlu0 %3211 }
 0xc6a   :  { %v3225_v30 = vmul.f32 0.0078125, %v3212_v20  ;;  %v3240_v63 = vmul.f32 %v7129_v59, %v7129_v59 }
 0xc6c   :  { %v7133_v35 = vsub.f32 %v3199_v38, %v3225_v30  ;;  %3249 = vadd.xlane.f32.xlu1 %v3240_v63 }
 0xc6d   :  { %v3214_v52 = vpop.xlane.xlu1 %3213 }
 0xc6e   :  { %v3226_v48 = vmul.f32 0.0078125, %v3214_v52  ;;  %v3241_v45 = vmul.f32 %v7133_v35, %v7133_v35 }
 0xc70   :  { %v7137_v61 = vsub.f32 %v3200_v29, %v3226_v48  ;;  %3251 = vadd.xlane.f32.xlu0 %v3241_v45  ;;  %v3333_v29 = vld [vmem:[%s7268_s26 + $0x50] sm:$0xff] }
 0xc71   :  { %v3216_v53 = vpop.xlane.xlu0 %3215  ;;  %v4562_v60 = vpack.c.bf16 %v3334_v40, %v3333_v29 }
 0xc72   :  { %v3227_v54 = vmul.f32 0.0078125, %v3216_v53  ;;  %v3242_v27 = vmul.f32 %v7137_v61, %v7137_v61 }
 0xc73   :  { %4563 = vmatprep.subr.bf16.mxu1 %v4562_v60 }
 0xc74   :  { %v7141_v41 = vsub.f32 %v3201_v6, %v3227_v54  ;;  %3253 = vadd.xlane.f32.xlu1 %v3242_v27  ;;  %4565 = vmatpush3.bf16.msra.mxu1 %v4562_v60  ;;  %v3336_v6 = vld [vmem:[%s7268_s26 + $0x68] sm:$0xff] }
 0xc75   :  { %v3218_v33 = vpop.xlane.xlu1 %3217  ;;  %v4566_v62 = vpack.c.bf16 %v3336_v6, %v3335_v58 }
 0xc76   :  { %v3228_v51 = vmul.f32 0.0078125, %v3218_v33  ;;  %v3243_v34 = vmul.f32 %v7141_v41, %v7141_v41 }
 0xc77   :  { %4567 = vmatprep.subr.bf16.mxu1 %v4566_v62 }
 0xc78   :  { %v7151_v7 = vsub.f32 %v3202_v19, %v3228_v51  ;;  %3255 = vadd.xlane.f32.xlu0 %v3243_v34  ;;  %4569 = vmatpush3.bf16.msra.mxu1 %v4566_v62 }
 0xc79   :  { %v3220_v14 = vpop.xlane.xlu0 %3219  ;;  %4571 = vmatprep.subr.bf16.mxu1 %v4570_v36 }
 0xc7a   :  { %v3229_v50 = vmul.f32 0.0078125, %v3220_v14  ;;  %v3244_v39 = vmul.f32 %v7151_v7, %v7151_v7 }
 0xc7c   :  { %v7161_v55 = vsub.f32 %v3203_v17, %v3229_v50  ;;  %3257 = vadd.xlane.f32.xlu1 %v3244_v39  ;;  %4573 = vmatpush3.bf16.msra.mxu1 %v4570_v36 }
 0xc7d   :  { %v3222_v38 = vpop.xlane.xlu1 %3221 }
 0xc7e   :  { %v3230_v8 = vmul.f32 0.0078125, %v3222_v38  ;;  %v3245_v13 = vmul.f32 %v7161_v55, %v7161_v55 }
 0xc80   :  { %v7171_v21 = vsub.f32 %v3204_v9, %v3230_v8  ;;  %3259 = vadd.xlane.f32.xlu0 %v3245_v13 }
 0xc82   :  { %v3246_v28 = vmul.f32 %v7171_v21, %v7171_v21 }
 0xc84   :  { %3261 = vadd.xlane.f32.xlu1 %v3246_v28 }
 0xcf5   :  { %v3248_v19 = vpop.xlane.xlu0 %3247 }
 0xcf6   :  { %v3263_v18 = vmul.f32 0.0078125, %v3248_v19 }
 0xcf8   :  { %v3271_v37 = vadd.f32 1e-05, %v3263_v18 }
 0xcf9   :  { %v3250_v25 = vpop.xlane.xlu1 %3249 }
 0xcfa   :  { %4768 = vrsqrt.f32 %v3271_v37  ;;  %v3264_v26 = vmul.f32 0.0078125, %v3250_v25 }
 0xcfc   :  { %v3272_v17 = vadd.f32 1e-05, %v3264_v26 }
 0xcfd   :  { %v3252_v4 = vpop.xlane.xlu0 %3251 }
 0xcfe   :  { %4770 = vrsqrt.f32 %v3272_v17  ;;  %v3265_v9 = vmul.f32 0.0078125, %v3252_v4 }
 0xd00   :  { %v3273_v0 = vadd.f32 1e-05, %v3265_v9 }
 0xd01   :  { %v3254_v11 = vpop.xlane.xlu1 %3253 }
 0xd02   :  { %4772 = vrsqrt.f32 %v3273_v0  ;;  %v3266_v23 = vmul.f32 0.0078125, %v3254_v11 }
 0xd04   :  { %v4769_v31 = vpop.eup %4768  ;;  %v3274_v49 = vadd.f32 1e-05, %v3266_v23 }
 0xd05   :  { %v3256_v15 = vpop.xlane.xlu0 %3255  ;;  %v3287_v32 = vmul.f32 %v4769_v31, %v7125_v16 }
 0xd06   :  { %4774 = vrsqrt.f32 %v3274_v49  ;;  %v3267_v22 = vmul.f32 0.0078125, %v3256_v15 }
 0xd07   :  { %v3301_v47 = vmul.f32 %v3583_v44, %v3287_v32 }
 0xd08   :  { %v4771_v20 = vpop.eup %4770  ;;  %v3275_v30 = vadd.f32 1e-05, %v3267_v22 }
 0xd09   :  { %v3288_v63 = vmul.f32 %v4771_v20, %v7129_v59  ;;  %v3258_v52 = vpop.xlane.xlu1 %3257  ;;  %v3315_v48 = vadd.f32 %v3584_v24, %v3301_v47 }
 0xd0a   :  { %4776 = vrsqrt.f32 %v3275_v30  ;;  %v3268_v45 = vmul.f32 0.0078125, %v3258_v52 }
 0xd0b   :  { %3970 = vmatprep.mubr.f32.mxu1 %v3315_v48  ;;  %v3302_v53 = vmul.f32 %v3583_v44, %v3288_v63 }
 0xd0c   :  { %v4773_v54 = vpop.eup %4772  ;;  %v3276_v27 = vadd.f32 1e-05, %v3268_v45 }
 0xd0d   :  { %v3260_v16 = vpop.xlane.xlu0 %3259  ;;  %v3316_v2 = vadd.f32 %v3584_v24, %v3302_v53  ;;  %v3289_v10 = vmul.f32 %v4773_v54, %v7133_v35 }
 0xd0e   :  { %4778 = vrsqrt.f32 %v3276_v27  ;;  %v3269_v33 = vmul.f32 0.0078125, %v3260_v16 }
 0xd0f   :  { %3971 = vmatmul.mubr.f32.vlgmr.msra.gmra.mrb[16].mxu1 %v3316_v2  ;;  %v3303_v3 = vmul.f32 %v3583_v44, %v3289_v10 }
 0xd10   :  { %v4775_v51 = vpop.eup %4774  ;;  %v3277_v34 = vadd.f32 1e-05, %v3269_v33 }
 0xd11   :  { %v3262_v43 = vpop.xlane.xlu1 %3261  ;;  %v3317_v59 = vadd.f32 %v3584_v24, %v3303_v3  ;;  %v3290_v1 = vmul.f32 %v4775_v51, %v7137_v61 }
 0xd12   :  { %4780 = vrsqrt.f32 %v3277_v34  ;;  %v3270_v14 = vmul.f32 0.0078125, %v3262_v43 }
 0xd13   :  { %3973 = vmatprep.mubr.f32.mxu1 %v3317_v59  ;;  %v3304_v5 = vmul.f32 %v3583_v44, %v3290_v1 }
 0xd14   :  { %v4777_v50 = vpop.eup %4776  ;;  %v3278_v39 = vadd.f32 1e-05, %v3270_v14 }
 0xd15   :  { %v3318_v46 = vadd.f32 %v3584_v24, %v3304_v5  ;;  %v3291_v56 = vmul.f32 %v4777_v50, %v7141_v41 }
 0xd16   :  { %4782 = vrsqrt.f32 %v3278_v39 }
 0xd17   :  { %3974 = vmatmul.mubr.f32.gmra.mrb[18].mxu1 %v3318_v46  ;;  %v3305_v35 = vmul.f32 %v3583_v44, %v3291_v56 }
 0xd18   :  { %v4779_v38 = vpop.eup %4778 }
 0xd19   :  { %v3319_v42 = vadd.f32 %v3584_v24, %v3305_v35  ;;  %v3292_v8 = vmul.f32 %v4779_v38, %v7151_v7  ;;  %v3585_v7 = vld [vmem:[%s7578_s22] ss:$0 sm:$0xff] }
 0xd1b   :  { %3976 = vmatprep.mubr.f32.mxu1 %v3319_v42  ;;  %v3306_v13 = vmul.f32 %v3583_v44, %v3292_v8 }
 0xd1c   :  { %v4781_v29 = vpop.eup %4780 }
 0xd1d   :  { %v3320_v61 = vadd.f32 %v3584_v24, %v3306_v13  ;;  %v3293_v40 = vmul.f32 %v4781_v29, %v7161_v55 }
 0xd1f   :  { %3977 = vmatmul.mubr.f32.gmra.mrb[20].mxu1 %v3320_v61  ;;  %v3307_v60 = vmul.f32 %v3583_v44, %v3293_v40 }
 0xd20   :  { %v4783_v28 = vpop.eup %4782 }
 0xd21   :  { %v3321_v58 = vadd.f32 %v3584_v24, %v3307_v60  ;;  %v3294_v6 = vmul.f32 %v4783_v28, %v7171_v21 }
 0xd23   :  { %3979 = vmatprep.mubr.f32.mxu1 %v3321_v58  ;;  %v3308_v41 = vmul.f32 %v3583_v44, %v3294_v6 }
 0xd25   :  { %v3322_v62 = vadd.f32 %v3584_v24, %v3308_v41 }
 0xd27   :  { %3980 = vmatmul.mubr.f32.gmra.mrb[22].mxu1 %v3322_v62 }
 0xde2   :  { %v3972_v57 = vpop.f32.mrb[16].mxu1 }
 0xde3   :  { %v3418_v12 = vadd.f32 %v3972_v57, %v3585_v7  ;;  %v3412_v36 = vpop.f32.mrb[17].mxu1 }
 0xde4   :  { %v3413_v19 = vadd.f32 %v3585_v7, %v3412_v36 }
 0xde5   :  { %4784 = vtanh.f32 %v3418_v12 }
 0xde6   :  { %4786 = vtanh.f32 %v3413_v19 }
 0xdea   :  { %v3975_v55 = vpop.f32.mrb[18].mxu1 }
 0xdeb   :  { %v3428_v18 = vadd.f32 %v3975_v55, %v3585_v7  ;;  %v3422_v37 = vpop.f32.mrb[19].mxu1 }
 0xdec   :  { %v3423_v25 = vadd.f32 %v3585_v7, %v3422_v37 }
 0xded   :  { %4788 = vtanh.f32 %v3428_v18 }
 0xdee   :  { %4790 = vtanh.f32 %v3423_v25 }
 0xdef   :  { %v4785_v21 = vpop.eup %4784 }
 0xdf0   :  { %v4787_v26 = vpop.eup %4786  ;;  %3461 = vst.msk [vmem:[%s7579_s28 + $0x8] sm:$0xff] %vm3459_vm11, %v4785_v21 }
 0xdf1   :  { %3460 = vst.msk [vmem:[%s7579_s28] sm:$0xff] %vm3459_vm11, %v4787_v26 }
 0xdf2   :  { %v3978_v17 = vpop.f32.mrb[20].mxu1 }
 0xdf3   :  { %v3438_v4 = vadd.f32 %v3978_v17, %v3585_v7  ;;  %v3432_v9 = vpop.f32.mrb[21].mxu1 }
 0xdf4   :  { %v3433_v0 = vadd.f32 %v3585_v7, %v3432_v9 }
 0xdf5   :  { %4792 = vtanh.f32 %v3438_v4 }
 0xdf6   :  { %4794 = vtanh.f32 %v3433_v0 }
 0xdf7   :  { %v4789_v11 = vpop.eup %4788 }
 0xdf8   :  { %v4791_v23 = vpop.eup %4790  ;;  %3463 = vst.msk [vmem:[%s7579_s28 + $0x18] sm:$0xff] %vm3459_vm11, %v4789_v11 }
 0xdf9   :  { %3462 = vst.msk [vmem:[%s7579_s28 + $0x10] sm:$0xff] %vm3459_vm11, %v4791_v23 }
 0xdfa   :  { %v3981_v31 = vpop.f32.mrb[22].mxu1 }
 0xdfb   :  { %v3448_v49 = vadd.f32 %v3981_v31, %v3585_v7  ;;  %v3442_v44 = vpop.f32.mrb[23].mxu1 }
 0xdfc   :  { %v3443_v15 = vadd.f32 %v3585_v7, %v3442_v44 }
 0xdfd   :  { %4796 = vtanh.f32 %v3448_v49 }
 0xdfe   :  { %4798 = vtanh.f32 %v3443_v15 }
 0xdff   :  { %v4793_v32 = vpop.eup %4792 }
 0xe00   :  { %v4795_v22 = vpop.eup %4794  ;;  %3465 = vst.msk [vmem:[%s7579_s28 + $0x28] sm:$0xff] %vm3459_vm11, %v4793_v32 }
 0xe01   :  { %3464 = vst.msk [vmem:[%s7579_s28 + $0x20] sm:$0xff] %vm3459_vm11, %v4795_v22 }
 0xe07   :  { %v4797_v24 = vpop.eup %4796 }
 0xe08   :  { %v4799_v47 = vpop.eup %4798  ;;  %3467 = vst.msk [vmem:[%s7579_s28 + $0x38] sm:$0xff] %vm3459_vm11, %v4797_v24 }
 0xe09   :  { %3466 = vst.msk [vmem:[%s7579_s28 + $0x30] sm:$0xff] %vm3459_vm11, %v4799_v47 }
 0xe0a   :  { %3472 = vsyncpa [#allocation7], 1 }
 0xe0b   :  { %3473 = vsyncpa [#allocation9], 1 }
 0xe0c   :  { %3474 = vsyncpa [#allocation12], 1 }
 0xe0d   :  { %3475 = vsyncpa [#allocation15], 1 }
 0xe0e   :  { %3476 = vsyncpa [#allocation18], 1 }
 0xe0f   :  { %3477 = vsyncpa [#allocation21], 1 }
 0xe10   :  { %3478 = vsyncpa [#allocation24], 1 }
 0xe11   :  { %3479 = vsyncpa [#allocation27], 1 }
 0xe12   :  { %3480 = vsyncpa [#allocation30], 1 }

</bundles_post_ra>
